<compile_context>
chip_gen: v6e
topology: v6e:2x2x1
jax: 0.10.0
libtpu: 0.0.40
codegen_flags: <defaults>
</compile_context>

<pallas_src>
import jax
import jax.numpy as jnp
from jax.experimental import pallas as pl
from jax.experimental.pallas import tpu as pltpu

# -------------------- model hyper-parameters (small, synthetic) -------------
B = 2                       # batch
C_IN = 3                    # rgb channels
IMG = 16                    # spatial H = W
PATCH = 4                   # patch-embed "backbone" stride
HP = IMG // PATCH
S = HP * HP                 # encoder tokens (16)
CPP = C_IN * PATCH * PATCH  # patch feature dim (48)
D = 32                      # hidden dim
NH = 4                      # attention heads
DH = D // NH                # per-head dim
FFN = 64                    # feed-forward dim
NQ = 8                      # object queries
NUM_CLASSES = 10
NUM_LOGITS = NUM_CLASSES + 1
LN_EPS = 1e-5
SCALE = 1.0 / (DH ** 0.5)


# ============================ parameter layout ===============================
def _attn_shapes(pre):
    # QKV weights fused into a single [D, 3D] matrix (biases into [1, 3D]).
    return [(f"{pre}_wqkv", (D, 3 * D)), (f"{pre}_bqkv", (1, 3 * D)),
            (f"{pre}_wo", (D, D)), (f"{pre}_bo", (1, D))]


def _ln_shapes(pre):
    return [(f"{pre}_g", (1, D)), (f"{pre}_b", (1, D))]


def _ffn_shapes(pre):
    return [(f"{pre}_w1", (D, FFN)), (f"{pre}_b1", (1, FFN)),
            (f"{pre}_w2", (FFN, D)), (f"{pre}_b2", (1, D))]


PARAM_SHAPES = (
    [("patch_w", (CPP, D)), ("patch_b", (1, D)),
     ("pos_embed", (S, D)), ("query_embed", (NQ, D))]
    + _attn_shapes("enc_sa") + _ln_shapes("enc_ln1")
    + _ffn_shapes("enc_ffn") + _ln_shapes("enc_ln2")
    + _attn_shapes("dec_sa") + _ln_shapes("dec_ln1")
    + _attn_shapes("dec_ca") + _ln_shapes("dec_ln2")
    + _ffn_shapes("dec_ffn") + _ln_shapes("dec_ln3")
    + [("cls_w", (D, NUM_LOGITS)), ("cls_b", (1, NUM_LOGITS)),
       ("box_w1", (D, D)), ("box_b1", (1, D)),
       ("box_w2", (D, D)), ("box_b2", (1, D)),
       ("box_w3", (D, 4)), ("box_b3", (1, 4))]
)
PARAM_NAMES = [n for n, _ in PARAM_SHAPES]


# ============================== fused kernel =================================
def _ddetr_fused_kernel(patch_ref, *refs):
    """One grid step == one batch element.  All weights resident in VMEM."""
    n = len(PARAM_NAMES)
    p = {name: refs[i] for i, name in enumerate(PARAM_NAMES)}
    logits_ref, boxes_ref = refs[n], refs[n + 1]

    def mm(a, b):
        return jnp.dot(a, b, preferred_element_type=jnp.float32)

    def layernorm(x, pre):
        g = p[pre + "_g"][...]
        bb = p[pre + "_b"][...]
        mu = jnp.mean(x, axis=-1, keepdims=True)
        xc = x - mu
        var = jnp.mean(xc * xc, axis=-1, keepdims=True)
        return xc * jax.lax.rsqrt(var + LN_EPS) * g + bb

    def mha(q_in, k_in, v_in, pre, shared_qk):
        wqkv = p[pre + "_wqkv"][...]     # [D, 3D]
        bqkv = p[pre + "_bqkv"][...]     # [1, 3D]
        if shared_qk:
            # q_in == k_in: fuse the Q and K projections into one matmul.
            qk = mm(q_in, wqkv[:, : 2 * D]) + bqkv[:, : 2 * D]   # [Lq, 2D]
            q, k = qk[:, :D], qk[:, D: 2 * D]
        else:
            q = mm(q_in, wqkv[:, :D]) + bqkv[:, :D]
            k = mm(k_in, wqkv[:, D: 2 * D]) + bqkv[:, D: 2 * D]
        v = mm(v_in, wqkv[:, 2 * D:]) + bqkv[:, 2 * D:]

        outs = []
        for h in range(NH):              # static unrolled loop over heads
            sl = slice(h * DH, (h + 1) * DH)
            qh, kh, vh = q[:, sl], k[:, sl], v[:, sl]
            s = jax.lax.dot_general(
                qh, kh, (((1,), (1,)), ((), ())),
                preferred_element_type=jnp.float32) * SCALE      # [Lq, Lk]
            m = jnp.max(s, axis=-1, keepdims=True)
            e = jnp.exp(s - m)
            inv = pl.reciprocal(jnp.sum(e, axis=-1, keepdims=True), approx=True)
            outs.append(mm(e * inv, vh))                          # [Lq, DH]
        o = jnp.concatenate(outs, axis=-1)                        # [Lq, D]
        return mm(o, p[pre + "_wo"][...]) + p[pre + "_bo"][...]

    def ffn(x, pre):
        h = jnp.maximum(mm(x, p[pre + "_w1"][...]) + p[pre + "_b1"][...], 0.0)
        return mm(h, p[pre + "_w2"][...]) + p[pre + "_b2"][...]

    # ---- backbone / patch embed (folded into the fused kernel) ----
    x = mm(patch_ref[0], p["patch_w"][...]) + p["patch_b"][...]   # [S, D]
    pos = p["pos_embed"][...]                                     # [S, D]

    # ---- transformer encoder layer ----
    qk_in = x + pos
    src = layernorm(x + mha(qk_in, qk_in, x, "enc_sa", True), "enc_ln1")
    src = layernorm(src + ffn(src, "enc_ffn"), "enc_ln2")
    memory = src                                                  # [S, D]

    # ---- transformer decoder layer ----
    qpos = p["query_embed"][...]                                  # [NQ, D]
    tgt = jnp.zeros((NQ, D), jnp.float32)
    qk_t = tgt + qpos
    tgt = layernorm(tgt + mha(qk_t, qk_t, tgt, "dec_sa", True), "dec_ln1")
    tgt = layernorm(
        tgt + mha(tgt + qpos, memory + pos, memory, "dec_ca", False),
        "dec_ln2")
    tgt = layernorm(tgt + ffn(tgt, "dec_ffn"), "dec_ln3")

    # ---- prediction heads (kept in f32 so sigmoid output stays in [0,1]) ----
    logits_ref[0] = mm(tgt, p["cls_w"][...]) + p["cls_b"][...]
    h1 = jnp.maximum(mm(tgt, p["box_w1"][...]) + p["box_b1"][...], 0.0)
    h2 = jnp.maximum(mm(h1, p["box_w2"][...]) + p["box_b2"][...], 0.0)
    boxes_ref[0] = jax.nn.sigmoid(mm(h2, p["box_w3"][...]) + p["box_b3"][...])


def _const_index_map(ndim):
    return lambda i: (0,) * ndim


# ============================== model wrappers ===============================
@jax.jit
def ddetr_model_forward(params, rgb):
    """rgb: NCHW float32 [B, 3, IMG, IMG] -> dict(pred_logits, pred_boxes)."""
    b = rgb.shape[0]
    # Patch extraction (pure layout work) stays in XLA; projection is fused
    # into the kernel's first matmul.
    x = rgb.reshape(b, C_IN, HP, PATCH, HP, PATCH)
    patches = x.transpose(0, 2, 4, 1, 3, 5).reshape(b, S, CPP)

    args = [patches] + [params[name] for name in PARAM_NAMES]

    logits, boxes = pl.pallas_call(
        _ddetr_fused_kernel,
        grid=(b,),
        in_specs=(
            [pl.BlockSpec((1, S, CPP), lambda i: (i, 0, 0))]
            + [pl.BlockSpec(shape, _const_index_map(len(shape)))
               for _, shape in PARAM_SHAPES]
        ),
        out_specs=(
            pl.BlockSpec((1, NQ, NUM_LOGITS), lambda i: (i, 0, 0)),
            pl.BlockSpec((1, NQ, 4), lambda i: (i, 0, 0)),
        ),
        out_shape=(
            jax.ShapeDtypeStruct((b, NQ, NUM_LOGITS), jnp.float32),
            jax.ShapeDtypeStruct((b, NQ, 4), jnp.float32),
        ),
        compiler_params=pltpu.CompilerParams(
            dimension_semantics=("parallel",)),
    )(*args)

    # TODO(synk): SOLQ's DCT mask-vector head (pred_vectors) not implemented.
    return {"pred_logits": logits, "pred_boxes": boxes}


def ddetr_forward(params, rgb, targets=None, do_loss=False,
                  return_features=False):
    """Mirrors DDETR.forward (do_loss=False path)."""
    outputs = ddetr_model_forward(params, rgb)
    # TODO(synk): criterion (Hungarian matching + weighted losses) omitted.
    return {
        "outputs": outputs,
        "losses": None,
        "loss_dict_reduced": None,
        "loss_dict_reduced_unscaled": None,
        "loss_dict_reduced_scaled": None,
        "postprocessors": None,
    }


# ============================== parameter init ===============================
def init_params(key):
    p = {}
    keys = jax.random.split(key, len(PARAM_SHAPES))
    for (name, shape), k in zip(PARAM_SHAPES, keys):
        tail = name.rsplit("_", 1)[-1]
        if tail.startswith("g"):                     # layernorm gamma
            p[name] = jnp.ones(shape, jnp.float32)
        elif tail.startswith("b"):                   # all biases / LN beta
            p[name] = jnp.zeros(shape, jnp.float32)
        elif tail == "embed":                        # pos / query embeddings
            p[name] = (0.1 * jax.random.normal(k, shape)).astype(jnp.float32)
        else:                                        # weights
            p[name] = (0.02 * jax.random.normal(k, shape)).astype(jnp.float32)
    return p


# ============================== main =========================================
if __name__ == "__main__":
    key = jax.random.PRNGKey(0)
    pkey, xkey = jax.random.split(key)
    params = init_params(pkey)
    rgb = jax.random.normal(xkey, (B, C_IN, IMG, IMG), jnp.float32)  # NCHW

    out_dict = ddetr_forward(params, rgb, do_loss=False)
    logits = jax.block_until_ready(out_dict["outputs"]["pred_logits"])
    boxes = jax.block_until_ready(out_dict["outputs"]["pred_boxes"])

    assert logits.shape == (B, NQ, NUM_LOGITS)
    assert boxes.shape == (B, NQ, 4)
    assert bool(jnp.all(jnp.isfinite(logits))) and bool(jnp.all(jnp.isfinite(boxes)))
    assert bool(jnp.all((boxes >= 0.0) & (boxes <= 1.0)))
    print("KERNEL_OK")
</pallas_src>

<mosaic_0001>
module attributes {stable_mosaic.version = 11 : i64} {
  func.func @_ddetr_fused_kernel(%arg0: i32, %arg1: memref<1x16x48xf32, #tpu.memory_space<vmem>>, %arg2: memref<48x32xf32, #tpu.memory_space<vmem>>, %arg3: memref<1x32xf32, #tpu.memory_space<vmem>>, %arg4: memref<16x32xf32, #tpu.memory_space<vmem>>, %arg5: memref<8x32xf32, #tpu.memory_space<vmem>>, %arg6: memref<32x96xf32, #tpu.memory_space<vmem>>, %arg7: memref<1x96xf32, #tpu.memory_space<vmem>>, %arg8: memref<32x32xf32, #tpu.memory_space<vmem>>, %arg9: memref<1x32xf32, #tpu.memory_space<vmem>>, %arg10: memref<1x32xf32, #tpu.memory_space<vmem>>, %arg11: memref<1x32xf32, #tpu.memory_space<vmem>>, %arg12: memref<32x64xf32, #tpu.memory_space<vmem>>, %arg13: memref<1x64xf32, #tpu.memory_space<vmem>>, %arg14: memref<64x32xf32, #tpu.memory_space<vmem>>, %arg15: memref<1x32xf32, #tpu.memory_space<vmem>>, %arg16: memref<1x32xf32, #tpu.memory_space<vmem>>, %arg17: memref<1x32xf32, #tpu.memory_space<vmem>>, %arg18: memref<32x96xf32, #tpu.memory_space<vmem>>, %arg19: memref<1x96xf32, #tpu.memory_space<vmem>>, %arg20: memref<32x32xf32, #tpu.memory_space<vmem>>, %arg21: memref<1x32xf32, #tpu.memory_space<vmem>>, %arg22: memref<1x32xf32, #tpu.memory_space<vmem>>, %arg23: memref<1x32xf32, #tpu.memory_space<vmem>>, %arg24: memref<32x96xf32, #tpu.memory_space<vmem>>, %arg25: memref<1x96xf32, #tpu.memory_space<vmem>>, %arg26: memref<32x32xf32, #tpu.memory_space<vmem>>, %arg27: memref<1x32xf32, #tpu.memory_space<vmem>>, %arg28: memref<1x32xf32, #tpu.memory_space<vmem>>, %arg29: memref<1x32xf32, #tpu.memory_space<vmem>>, %arg30: memref<32x64xf32, #tpu.memory_space<vmem>>, %arg31: memref<1x64xf32, #tpu.memory_space<vmem>>, %arg32: memref<64x32xf32, #tpu.memory_space<vmem>>, %arg33: memref<1x32xf32, #tpu.memory_space<vmem>>, %arg34: memref<1x32xf32, #tpu.memory_space<vmem>>, %arg35: memref<1x32xf32, #tpu.memory_space<vmem>>, %arg36: memref<32x11xf32, #tpu.memory_space<vmem>>, %arg37: memref<1x11xf32, #tpu.memory_space<vmem>>, %arg38: memref<32x32xf32, #tpu.memory_space<vmem>>, %arg39: memref<1x32xf32, #tpu.memory_space<vmem>>, %arg40: memref<32x32xf32, #tpu.memory_space<vmem>>, %arg41: memref<1x32xf32, #tpu.memory_space<vmem>>, %arg42: memref<32x4xf32, #tpu.memory_space<vmem>>, %arg43: memref<1x4xf32, #tpu.memory_space<vmem>>, %arg44: memref<1x8x11xf32, #tpu.memory_space<vmem>>, %arg45: memref<1x8x4xf32, #tpu.memory_space<vmem>>) attributes {dimension_semantics = [#tpu.dimension_semantics<parallel>], iteration_bounds = array<i64: 2>, scalar_prefetch = 0 : i64, scratch_operands = 0 : i64, tpu.core_type = #tpu.core_type<tc>, window_params = [{transform_indices = @transform_0, window_bounds = array<i64: 1, 16, 48>}, {pipeline_mode = #tpu.pipeline_mode<synchronous>, transform_indices = @transform_1, window_bounds = array<i64: 48, 32>}, {pipeline_mode = #tpu.pipeline_mode<synchronous>, transform_indices = @transform_2, window_bounds = array<i64: 1, 32>}, {pipeline_mode = #tpu.pipeline_mode<synchronous>, transform_indices = @transform_3, window_bounds = array<i64: 16, 32>}, {pipeline_mode = #tpu.pipeline_mode<synchronous>, transform_indices = @transform_4, window_bounds = array<i64: 8, 32>}, {pipeline_mode = #tpu.pipeline_mode<synchronous>, transform_indices = @transform_5, window_bounds = array<i64: 32, 96>}, {pipeline_mode = #tpu.pipeline_mode<synchronous>, transform_indices = @transform_6, window_bounds = array<i64: 1, 96>}, {pipeline_mode = #tpu.pipeline_mode<synchronous>, transform_indices = @transform_7, window_bounds = array<i64: 32, 32>}, {pipeline_mode = #tpu.pipeline_mode<synchronous>, transform_indices = @transform_8, window_bounds = array<i64: 1, 32>}, {pipeline_mode = #tpu.pipeline_mode<synchronous>, transform_indices = @transform_9, window_bounds = array<i64: 1, 32>}, {pipeline_mode = #tpu.pipeline_mode<synchronous>, transform_indices = @transform_10, window_bounds = array<i64: 1, 32>}, {pipeline_mode = #tpu.pipeline_mode<synchronous>, transform_indices = @transform_11, window_bounds = array<i64: 32, 64>}, {pipeline_mode = #tpu.pipeline_mode<synchronous>, transform_indices = @transform_12, window_bounds = array<i64: 1, 64>}, {pipeline_mode = #tpu.pipeline_mode<synchronous>, transform_indices = @transform_13, window_bounds = array<i64: 64, 32>}, {pipeline_mode = #tpu.pipeline_mode<synchronous>, transform_indices = @transform_14, window_bounds = array<i64: 1, 32>}, {pipeline_mode = #tpu.pipeline_mode<synchronous>, transform_indices = @transform_15, window_bounds = array<i64: 1, 32>}, {pipeline_mode = #tpu.pipeline_mode<synchronous>, transform_indices = @transform_16, window_bounds = array<i64: 1, 32>}, {pipeline_mode = #tpu.pipeline_mode<synchronous>, transform_indices = @transform_17, window_bounds = array<i64: 32, 96>}, {pipeline_mode = #tpu.pipeline_mode<synchronous>, transform_indices = @transform_18, window_bounds = array<i64: 1, 96>}, {pipeline_mode = #tpu.pipeline_mode<synchronous>, transform_indices = @transform_19, window_bounds = array<i64: 32, 32>}, {pipeline_mode = #tpu.pipeline_mode<synchronous>, transform_indices = @transform_20, window_bounds = array<i64: 1, 32>}, {pipeline_mode = #tpu.pipeline_mode<synchronous>, transform_indices = @transform_21, window_bounds = array<i64: 1, 32>}, {pipeline_mode = #tpu.pipeline_mode<synchronous>, transform_indices = @transform_22, window_bounds = array<i64: 1, 32>}, {pipeline_mode = #tpu.pipeline_mode<synchronous>, transform_indices = @transform_23, window_bounds = array<i64: 32, 96>}, {pipeline_mode = #tpu.pipeline_mode<synchronous>, transform_indices = @transform_24, window_bounds = array<i64: 1, 96>}, {pipeline_mode = #tpu.pipeline_mode<synchronous>, transform_indices = @transform_25, window_bounds = array<i64: 32, 32>}, {pipeline_mode = #tpu.pipeline_mode<synchronous>, transform_indices = @transform_26, window_bounds = array<i64: 1, 32>}, {pipeline_mode = #tpu.pipeline_mode<synchronous>, transform_indices = @transform_27, window_bounds = array<i64: 1, 32>}, {pipeline_mode = #tpu.pipeline_mode<synchronous>, transform_indices = @transform_28, window_bounds = array<i64: 1, 32>}, {pipeline_mode = #tpu.pipeline_mode<synchronous>, transform_indices = @transform_29, window_bounds = array<i64: 32, 64>}, {pipeline_mode = #tpu.pipeline_mode<synchronous>, transform_indices = @transform_30, window_bounds = array<i64: 1, 64>}, {pipeline_mode = #tpu.pipeline_mode<synchronous>, transform_indices = @transform_31, window_bounds = array<i64: 64, 32>}, {pipeline_mode = #tpu.pipeline_mode<synchronous>, transform_indices = @transform_32, window_bounds = array<i64: 1, 32>}, {pipeline_mode = #tpu.pipeline_mode<synchronous>, transform_indices = @transform_33, window_bounds = array<i64: 1, 32>}, {pipeline_mode = #tpu.pipeline_mode<synchronous>, transform_indices = @transform_34, window_bounds = array<i64: 1, 32>}, {pipeline_mode = #tpu.pipeline_mode<synchronous>, transform_indices = @transform_35, window_bounds = array<i64: 32, 11>}, {pipeline_mode = #tpu.pipeline_mode<synchronous>, transform_indices = @transform_36, window_bounds = array<i64: 1, 11>}, {pipeline_mode = #tpu.pipeline_mode<synchronous>, transform_indices = @transform_37, window_bounds = array<i64: 32, 32>}, {pipeline_mode = #tpu.pipeline_mode<synchronous>, transform_indices = @transform_38, window_bounds = array<i64: 1, 32>}, {pipeline_mode = #tpu.pipeline_mode<synchronous>, transform_indices = @transform_39, window_bounds = array<i64: 32, 32>}, {pipeline_mode = #tpu.pipeline_mode<synchronous>, transform_indices = @transform_40, window_bounds = array<i64: 1, 32>}, {pipeline_mode = #tpu.pipeline_mode<synchronous>, transform_indices = @transform_41, window_bounds = array<i64: 32, 4>}, {pipeline_mode = #tpu.pipeline_mode<synchronous>, transform_indices = @transform_42, window_bounds = array<i64: 1, 4>}, {transform_indices = @transform_43, window_bounds = array<i64: 1, 8, 11>}, {transform_indices = @transform_44, window_bounds = array<i64: 1, 8, 4>}]} {
    %c0 = arith.constant 0 : index
    %c0_0 = arith.constant 0 : index
    %c0_1 = arith.constant 0 : index
    %0 = vector.load %arg1[%c0, %c0_0, %c0_1] : memref<1x16x48xf32, #tpu.memory_space<vmem>>, vector<1x16x48xf32>
    %1 = vector.shape_cast %0 : vector<1x16x48xf32> to vector<16x48xf32>
    %c0_2 = arith.constant 0 : index
    %c0_3 = arith.constant 0 : index
    %2 = vector.load %arg2[%c0_2, %c0_3] : memref<48x32xf32, #tpu.memory_space<vmem>>, vector<48x32xf32>
    %cst = arith.constant dense<0.000000e+00> : vector<16x32xf32>
    %3 = tpu.matmul %1, %2, %cst {dimension_numbers = #tpu.dot_dimension_numbers<[1], [0], [0], [1], [0, 0, 1, 1], [], []>} : vector<16x48xf32>, vector<48x32xf32>, vector<16x32xf32> -> vector<16x32xf32>
    %c0_4 = arith.constant 0 : index
    %c0_5 = arith.constant 0 : index
    %4 = vector.load %arg3[%c0_4, %c0_5] : memref<1x32xf32, #tpu.memory_space<vmem>>, vector<1x32xf32>
    %5 = vector.broadcast %4 : vector<1x32xf32> to vector<16x32xf32>
    %6 = arith.addf %3, %5 : vector<16x32xf32>
    %c0_6 = arith.constant 0 : index
    %c0_7 = arith.constant 0 : index
    %7 = vector.load %arg4[%c0_6, %c0_7] : memref<16x32xf32, #tpu.memory_space<vmem>>, vector<16x32xf32>
    %8 = arith.addf %6, %7 : vector<16x32xf32>
    %c0_8 = arith.constant 0 : index
    %c0_9 = arith.constant 0 : index
    %9 = vector.load %arg6[%c0_8, %c0_9] : memref<32x96xf32, #tpu.memory_space<vmem>>, vector<32x96xf32>
    %c0_10 = arith.constant 0 : index
    %c0_11 = arith.constant 0 : index
    %10 = vector.load %arg7[%c0_10, %c0_11] : memref<1x96xf32, #tpu.memory_space<vmem>>, vector<1x96xf32>
    %11 = vector.extract_strided_slice %9 {offsets = [0, 0], sizes = [32, 64], strides = [1, 1]} : vector<32x96xf32> to vector<32x64xf32>
    %cst_12 = arith.constant dense<0.000000e+00> : vector<16x64xf32>
    %12 = tpu.matmul %8, %11, %cst_12 {dimension_numbers = #tpu.dot_dimension_numbers<[1], [0], [0], [1], [0, 0, 1, 1], [], []>} : vector<16x32xf32>, vector<32x64xf32>, vector<16x64xf32> -> vector<16x64xf32>
    %13 = vector.extract_strided_slice %10 {offsets = [0, 0], sizes = [1, 64], strides = [1, 1]} : vector<1x96xf32> to vector<1x64xf32>
    %14 = vector.broadcast %13 : vector<1x64xf32> to vector<16x64xf32>
    %15 = arith.addf %12, %14 : vector<16x64xf32>
    %16 = vector.extract_strided_slice %15 {offsets = [0, 0], sizes = [16, 32], strides = [1, 1]} : vector<16x64xf32> to vector<16x32xf32>
    %17 = vector.extract_strided_slice %15 {offsets = [0, 32], sizes = [16, 32], strides = [1, 1]} : vector<16x64xf32> to vector<16x32xf32>
    %18 = vector.extract_strided_slice %9 {offsets = [0, 64], sizes = [32, 32], strides = [1, 1]} : vector<32x96xf32> to vector<32x32xf32>
    %cst_13 = arith.constant dense<0.000000e+00> : vector<16x32xf32>
    %19 = tpu.matmul %6, %18, %cst_13 {dimension_numbers = #tpu.dot_dimension_numbers<[1], [0], [0], [1], [0, 0, 1, 1], [], []>} : vector<16x32xf32>, vector<32x32xf32>, vector<16x32xf32> -> vector<16x32xf32>
    %20 = vector.extract_strided_slice %10 {offsets = [0, 64], sizes = [1, 32], strides = [1, 1]} : vector<1x96xf32> to vector<1x32xf32>
    %21 = vector.broadcast %20 : vector<1x32xf32> to vector<16x32xf32>
    %22 = arith.addf %19, %21 : vector<16x32xf32>
    %23 = vector.extract_strided_slice %16 {offsets = [0, 0], sizes = [16, 8], strides = [1, 1]} : vector<16x32xf32> to vector<16x8xf32>
    %24 = vector.extract_strided_slice %17 {offsets = [0, 0], sizes = [16, 8], strides = [1, 1]} : vector<16x32xf32> to vector<16x8xf32>
    %25 = vector.extract_strided_slice %22 {offsets = [0, 0], sizes = [16, 8], strides = [1, 1]} : vector<16x32xf32> to vector<16x8xf32>
    %cst_14 = arith.constant dense<0.000000e+00> : vector<16x16xf32>
    %26 = tpu.matmul %23, %24, %cst_14 {dimension_numbers = #tpu.dot_dimension_numbers<[1], [1], [0], [0], [0, 0, 1, 0], [], []>} : vector<16x8xf32>, vector<16x8xf32>, vector<16x16xf32> -> vector<16x16xf32>
    %cst_15 = arith.constant 0.353553385 : f32
    %27 = vector.broadcast %cst_15 : f32 to vector<16x16xf32>
    %28 = arith.mulf %26, %27 : vector<16x16xf32>
    %cst_16 = arith.constant dense<0xFF800000> : vector<16xf32>
    %29 = vector.multi_reduction <maximumf>, %28, %cst_16 [1] : vector<16x16xf32> to vector<16xf32>
    %30 = vector.shape_cast %29 : vector<16xf32> to vector<16x1xf32>
    %31 = vector.broadcast %30 : vector<16x1xf32> to vector<16x16xf32>
    %32 = arith.subf %28, %31 : vector<16x16xf32>
    %33 = math.exp %32 : vector<16x16xf32>
    %cst_17 = arith.constant dense<0.000000e+00> : vector<16xf32>
    %34 = vector.multi_reduction <add>, %33, %cst_17 [1] : vector<16x16xf32> to vector<16xf32>
    %35 = vector.shape_cast %34 : vector<16xf32> to vector<16x1xf32>
    %36 = tpu.reciprocal %35 {approx = true} : vector<16x1xf32> -> vector<16x1xf32>
    %37 = vector.broadcast %36 : vector<16x1xf32> to vector<16x16xf32>
    %38 = arith.mulf %33, %37 : vector<16x16xf32>
    %cst_18 = arith.constant dense<0.000000e+00> : vector<16x8xf32>
    %39 = tpu.matmul %38, %25, %cst_18 {dimension_numbers = #tpu.dot_dimension_numbers<[1], [0], [0], [1], [0, 0, 1, 1], [], []>} : vector<16x16xf32>, vector<16x8xf32>, vector<16x8xf32> -> vector<16x8xf32>
    %40 = vector.extract_strided_slice %16 {offsets = [0, 8], sizes = [16, 8], strides = [1, 1]} : vector<16x32xf32> to vector<16x8xf32>
    %41 = vector.extract_strided_slice %17 {offsets = [0, 8], sizes = [16, 8], strides = [1, 1]} : vector<16x32xf32> to vector<16x8xf32>
    %42 = vector.extract_strided_slice %22 {offsets = [0, 8], sizes = [16, 8], strides = [1, 1]} : vector<16x32xf32> to vector<16x8xf32>
    %cst_19 = arith.constant dense<0.000000e+00> : vector<16x16xf32>
    %43 = tpu.matmul %40, %41, %cst_19 {dimension_numbers = #tpu.dot_dimension_numbers<[1], [1], [0], [0], [0, 0, 1, 0], [], []>} : vector<16x8xf32>, vector<16x8xf32>, vector<16x16xf32> -> vector<16x16xf32>
    %cst_20 = arith.constant 0.353553385 : f32
    %44 = vector.broadcast %cst_20 : f32 to vector<16x16xf32>
    %45 = arith.mulf %43, %44 : vector<16x16xf32>
    %cst_21 = arith.constant dense<0xFF800000> : vector<16xf32>
    %46 = vector.multi_reduction <maximumf>, %45, %cst_21 [1] : vector<16x16xf32> to vector<16xf32>
    %47 = vector.shape_cast %46 : vector<16xf32> to vector<16x1xf32>
    %48 = vector.broadcast %47 : vector<16x1xf32> to vector<16x16xf32>
    %49 = arith.subf %45, %48 : vector<16x16xf32>
    %50 = math.exp %49 : vector<16x16xf32>
    %cst_22 = arith.constant dense<0.000000e+00> : vector<16xf32>
    %51 = vector.multi_reduction <add>, %50, %cst_22 [1] : vector<16x16xf32> to vector<16xf32>
    %52 = vector.shape_cast %51 : vector<16xf32> to vector<16x1xf32>
    %53 = tpu.reciprocal %52 {approx = true} : vector<16x1xf32> -> vector<16x1xf32>
    %54 = vector.broadcast %53 : vector<16x1xf32> to vector<16x16xf32>
    %55 = arith.mulf %50, %54 : vector<16x16xf32>
    %cst_23 = arith.constant dense<0.000000e+00> : vector<16x8xf32>
    %56 = tpu.matmul %55, %42, %cst_23 {dimension_numbers = #tpu.dot_dimension_numbers<[1], [0], [0], [1], [0, 0, 1, 1], [], []>} : vector<16x16xf32>, vector<16x8xf32>, vector<16x8xf32> -> vector<16x8xf32>
    %57 = vector.extract_strided_slice %16 {offsets = [0, 16], sizes = [16, 8], strides = [1, 1]} : vector<16x32xf32> to vector<16x8xf32>
    %58 = vector.extract_strided_slice %17 {offsets = [0, 16], sizes = [16, 8], strides = [1, 1]} : vector<16x32xf32> to vector<16x8xf32>
    %59 = vector.extract_strided_slice %22 {offsets = [0, 16], sizes = [16, 8], strides = [1, 1]} : vector<16x32xf32> to vector<16x8xf32>
    %cst_24 = arith.constant dense<0.000000e+00> : vector<16x16xf32>
    %60 = tpu.matmul %57, %58, %cst_24 {dimension_numbers = #tpu.dot_dimension_numbers<[1], [1], [0], [0], [0, 0, 1, 0], [], []>} : vector<16x8xf32>, vector<16x8xf32>, vector<16x16xf32> -> vector<16x16xf32>
    %cst_25 = arith.constant 0.353553385 : f32
    %61 = vector.broadcast %cst_25 : f32 to vector<16x16xf32>
    %62 = arith.mulf %60, %61 : vector<16x16xf32>
    %cst_26 = arith.constant dense<0xFF800000> : vector<16xf32>
    %63 = vector.multi_reduction <maximumf>, %62, %cst_26 [1] : vector<16x16xf32> to vector<16xf32>
    %64 = vector.shape_cast %63 : vector<16xf32> to vector<16x1xf32>
    %65 = vector.broadcast %64 : vector<16x1xf32> to vector<16x16xf32>
    %66 = arith.subf %62, %65 : vector<16x16xf32>
    %67 = math.exp %66 : vector<16x16xf32>
    %cst_27 = arith.constant dense<0.000000e+00> : vector<16xf32>
    %68 = vector.multi_reduction <add>, %67, %cst_27 [1] : vector<16x16xf32> to vector<16xf32>
    %69 = vector.shape_cast %68 : vector<16xf32> to vector<16x1xf32>
    %70 = tpu.reciprocal %69 {approx = true} : vector<16x1xf32> -> vector<16x1xf32>
    %71 = vector.broadcast %70 : vector<16x1xf32> to vector<16x16xf32>
    %72 = arith.mulf %67, %71 : vector<16x16xf32>
    %cst_28 = arith.constant dense<0.000000e+00> : vector<16x8xf32>
    %73 = tpu.matmul %72, %59, %cst_28 {dimension_numbers = #tpu.dot_dimension_numbers<[1], [0], [0], [1], [0, 0, 1, 1], [], []>} : vector<16x16xf32>, vector<16x8xf32>, vector<16x8xf32> -> vector<16x8xf32>
    %74 = vector.extract_strided_slice %16 {offsets = [0, 24], sizes = [16, 8], strides = [1, 1]} : vector<16x32xf32> to vector<16x8xf32>
    %75 = vector.extract_strided_slice %17 {offsets = [0, 24], sizes = [16, 8], strides = [1, 1]} : vector<16x32xf32> to vector<16x8xf32>
    %76 = vector.extract_strided_slice %22 {offsets = [0, 24], sizes = [16, 8], strides = [1, 1]} : vector<16x32xf32> to vector<16x8xf32>
    %cst_29 = arith.constant dense<0.000000e+00> : vector<16x16xf32>
    %77 = tpu.matmul %74, %75, %cst_29 {dimension_numbers = #tpu.dot_dimension_numbers<[1], [1], [0], [0], [0, 0, 1, 0], [], []>} : vector<16x8xf32>, vector<16x8xf32>, vector<16x16xf32> -> vector<16x16xf32>
    %cst_30 = arith.constant 0.353553385 : f32
    %78 = vector.broadcast %cst_30 : f32 to vector<16x16xf32>
    %79 = arith.mulf %77, %78 : vector<16x16xf32>
    %cst_31 = arith.constant dense<0xFF800000> : vector<16xf32>
    %80 = vector.multi_reduction <maximumf>, %79, %cst_31 [1] : vector<16x16xf32> to vector<16xf32>
    %81 = vector.shape_cast %80 : vector<16xf32> to vector<16x1xf32>
    %82 = vector.broadcast %81 : vector<16x1xf32> to vector<16x16xf32>
    %83 = arith.subf %79, %82 : vector<16x16xf32>
    %84 = math.exp %83 : vector<16x16xf32>
    %cst_32 = arith.constant dense<0.000000e+00> : vector<16xf32>
    %85 = vector.multi_reduction <add>, %84, %cst_32 [1] : vector<16x16xf32> to vector<16xf32>
    %86 = vector.shape_cast %85 : vector<16xf32> to vector<16x1xf32>
    %87 = tpu.reciprocal %86 {approx = true} : vector<16x1xf32> -> vector<16x1xf32>
    %88 = vector.broadcast %87 : vector<16x1xf32> to vector<16x16xf32>
    %89 = arith.mulf %84, %88 : vector<16x16xf32>
    %cst_33 = arith.constant dense<0.000000e+00> : vector<16x8xf32>
    %90 = tpu.matmul %89, %76, %cst_33 {dimension_numbers = #tpu.dot_dimension_numbers<[1], [0], [0], [1], [0, 0, 1, 1], [], []>} : vector<16x16xf32>, vector<16x8xf32>, vector<16x8xf32> -> vector<16x8xf32>
    %91 = tpu.concatenate %39, %56, %73, %90 in 1 : vector<16x8xf32>, vector<16x8xf32>, vector<16x8xf32>, vector<16x8xf32> -> vector<16x32xf32>
    %c0_34 = arith.constant 0 : index
    %c0_35 = arith.constant 0 : index
    %92 = vector.load %arg8[%c0_34, %c0_35] : memref<32x32xf32, #tpu.memory_space<vmem>>, vector<32x32xf32>
    %cst_36 = arith.constant dense<0.000000e+00> : vector<16x32xf32>
    %93 = tpu.matmul %91, %92, %cst_36 {dimension_numbers = #tpu.dot_dimension_numbers<[1], [0], [0], [1], [0, 0, 1, 1], [], []>} : vector<16x32xf32>, vector<32x32xf32>, vector<16x32xf32> -> vector<16x32xf32>
    %c0_37 = arith.constant 0 : index
    %c0_38 = arith.constant 0 : index
    %94 = vector.load %arg9[%c0_37, %c0_38] : memref<1x32xf32, #tpu.memory_space<vmem>>, vector<1x32xf32>
    %95 = vector.broadcast %94 : vector<1x32xf32> to vector<16x32xf32>
    %96 = arith.addf %93, %95 : vector<16x32xf32>
    %97 = arith.addf %6, %96 : vector<16x32xf32>
    %c0_39 = arith.constant 0 : index
    %c0_40 = arith.constant 0 : index
    %98 = vector.load %arg10[%c0_39, %c0_40] : memref<1x32xf32, #tpu.memory_space<vmem>>, vector<1x32xf32>
    %c0_41 = arith.constant 0 : index
    %c0_42 = arith.constant 0 : index
    %99 = vector.load %arg11[%c0_41, %c0_42] : memref<1x32xf32, #tpu.memory_space<vmem>>, vector<1x32xf32>
    %cst_43 = arith.constant dense<0.000000e+00> : vector<16xf32>
    %100 = vector.multi_reduction <add>, %97, %cst_43 [1] : vector<16x32xf32> to vector<16xf32>
    %101 = vector.shape_cast %100 : vector<16xf32> to vector<16x1xf32>
    %cst_44 = arith.constant 3.200000e+01 : f32
    %102 = vector.broadcast %cst_44 : f32 to vector<16x1xf32>
    %103 = arith.divf %101, %102 : vector<16x1xf32>
    %104 = vector.broadcast %103 : vector<16x1xf32> to vector<16x32xf32>
    %105 = arith.subf %97, %104 : vector<16x32xf32>
    %106 = arith.mulf %105, %105 : vector<16x32xf32>
    %cst_45 = arith.constant dense<0.000000e+00> : vector<16xf32>
    %107 = vector.multi_reduction <add>, %106, %cst_45 [1] : vector<16x32xf32> to vector<16xf32>
    %108 = vector.shape_cast %107 : vector<16xf32> to vector<16x1xf32>
    %cst_46 = arith.constant 3.200000e+01 : f32
    %109 = vector.broadcast %cst_46 : f32 to vector<16x1xf32>
    %110 = arith.divf %108, %109 : vector<16x1xf32>
    %cst_47 = arith.constant 9.99999974E-6 : f32
    %111 = vector.broadcast %cst_47 : f32 to vector<16x1xf32>
    %112 = arith.addf %110, %111 : vector<16x1xf32>
    %113 = math.rsqrt %112 : vector<16x1xf32>
    %114 = vector.broadcast %113 : vector<16x1xf32> to vector<16x32xf32>
    %115 = arith.mulf %105, %114 : vector<16x32xf32>
    %116 = vector.broadcast %98 : vector<1x32xf32> to vector<16x32xf32>
    %117 = arith.mulf %115, %116 : vector<16x32xf32>
    %118 = vector.broadcast %99 : vector<1x32xf32> to vector<16x32xf32>
    %119 = arith.addf %117, %118 : vector<16x32xf32>
    %c0_48 = arith.constant 0 : index
    %c0_49 = arith.constant 0 : index
    %120 = vector.load %arg12[%c0_48, %c0_49] : memref<32x64xf32, #tpu.memory_space<vmem>>, vector<32x64xf32>
    %cst_50 = arith.constant dense<0.000000e+00> : vector<16x64xf32>
    %121 = tpu.matmul %119, %120, %cst_50 {dimension_numbers = #tpu.dot_dimension_numbers<[1], [0], [0], [1], [0, 0, 1, 1], [], []>} : vector<16x32xf32>, vector<32x64xf32>, vector<16x64xf32> -> vector<16x64xf32>
    %c0_51 = arith.constant 0 : index
    %c0_52 = arith.constant 0 : index
    %122 = vector.load %arg13[%c0_51, %c0_52] : memref<1x64xf32, #tpu.memory_space<vmem>>, vector<1x64xf32>
    %123 = vector.broadcast %122 : vector<1x64xf32> to vector<16x64xf32>
    %124 = arith.addf %121, %123 : vector<16x64xf32>
    %cst_53 = arith.constant 0.000000e+00 : f32
    %125 = vector.broadcast %cst_53 : f32 to vector<16x64xf32>
    %126 = arith.maximumf %124, %125 : vector<16x64xf32>
    %c0_54 = arith.constant 0 : index
    %c0_55 = arith.constant 0 : index
    %127 = vector.load %arg14[%c0_54, %c0_55] : memref<64x32xf32, #tpu.memory_space<vmem>>, vector<64x32xf32>
    %cst_56 = arith.constant dense<0.000000e+00> : vector<16x32xf32>
    %128 = tpu.matmul %126, %127, %cst_56 {dimension_numbers = #tpu.dot_dimension_numbers<[1], [0], [0], [1], [0, 0, 1, 1], [], []>} : vector<16x64xf32>, vector<64x32xf32>, vector<16x32xf32> -> vector<16x32xf32>
    %c0_57 = arith.constant 0 : index
    %c0_58 = arith.constant 0 : index
    %129 = vector.load %arg15[%c0_57, %c0_58] : memref<1x32xf32, #tpu.memory_space<vmem>>, vector<1x32xf32>
    %130 = vector.broadcast %129 : vector<1x32xf32> to vector<16x32xf32>
    %131 = arith.addf %128, %130 : vector<16x32xf32>
    %132 = arith.addf %119, %131 : vector<16x32xf32>
    %c0_59 = arith.constant 0 : index
    %c0_60 = arith.constant 0 : index
    %133 = vector.load %arg16[%c0_59, %c0_60] : memref<1x32xf32, #tpu.memory_space<vmem>>, vector<1x32xf32>
    %c0_61 = arith.constant 0 : index
    %c0_62 = arith.constant 0 : index
    %134 = vector.load %arg17[%c0_61, %c0_62] : memref<1x32xf32, #tpu.memory_space<vmem>>, vector<1x32xf32>
    %cst_63 = arith.constant dense<0.000000e+00> : vector<16xf32>
    %135 = vector.multi_reduction <add>, %132, %cst_63 [1] : vector<16x32xf32> to vector<16xf32>
    %136 = vector.shape_cast %135 : vector<16xf32> to vector<16x1xf32>
    %cst_64 = arith.constant 3.200000e+01 : f32
    %137 = vector.broadcast %cst_64 : f32 to vector<16x1xf32>
    %138 = arith.divf %136, %137 : vector<16x1xf32>
    %139 = vector.broadcast %138 : vector<16x1xf32> to vector<16x32xf32>
    %140 = arith.subf %132, %139 : vector<16x32xf32>
    %141 = arith.mulf %140, %140 : vector<16x32xf32>
    %cst_65 = arith.constant dense<0.000000e+00> : vector<16xf32>
    %142 = vector.multi_reduction <add>, %141, %cst_65 [1] : vector<16x32xf32> to vector<16xf32>
    %143 = vector.shape_cast %142 : vector<16xf32> to vector<16x1xf32>
    %cst_66 = arith.constant 3.200000e+01 : f32
    %144 = vector.broadcast %cst_66 : f32 to vector<16x1xf32>
    %145 = arith.divf %143, %144 : vector<16x1xf32>
    %cst_67 = arith.constant 9.99999974E-6 : f32
    %146 = vector.broadcast %cst_67 : f32 to vector<16x1xf32>
    %147 = arith.addf %145, %146 : vector<16x1xf32>
    %148 = math.rsqrt %147 : vector<16x1xf32>
    %149 = vector.broadcast %148 : vector<16x1xf32> to vector<16x32xf32>
    %150 = arith.mulf %140, %149 : vector<16x32xf32>
    %151 = vector.broadcast %133 : vector<1x32xf32> to vector<16x32xf32>
    %152 = arith.mulf %150, %151 : vector<16x32xf32>
    %153 = vector.broadcast %134 : vector<1x32xf32> to vector<16x32xf32>
    %154 = arith.addf %152, %153 : vector<16x32xf32>
    %c0_68 = arith.constant 0 : index
    %c0_69 = arith.constant 0 : index
    %155 = vector.load %arg5[%c0_68, %c0_69] : memref<8x32xf32, #tpu.memory_space<vmem>>, vector<8x32xf32>
    %cst_70 = arith.constant 0.000000e+00 : f32
    %156 = vector.broadcast %cst_70 : f32 to vector<8x32xf32>
    %157 = arith.addf %156, %155 : vector<8x32xf32>
    %c0_71 = arith.constant 0 : index
    %c0_72 = arith.constant 0 : index
    %158 = vector.load %arg18[%c0_71, %c0_72] : memref<32x96xf32, #tpu.memory_space<vmem>>, vector<32x96xf32>
    %c0_73 = arith.constant 0 : index
    %c0_74 = arith.constant 0 : index
    %159 = vector.load %arg19[%c0_73, %c0_74] : memref<1x96xf32, #tpu.memory_space<vmem>>, vector<1x96xf32>
    %160 = vector.extract_strided_slice %158 {offsets = [0, 0], sizes = [32, 64], strides = [1, 1]} : vector<32x96xf32> to vector<32x64xf32>
    %cst_75 = arith.constant dense<0.000000e+00> : vector<8x64xf32>
    %161 = tpu.matmul %157, %160, %cst_75 {dimension_numbers = #tpu.dot_dimension_numbers<[1], [0], [0], [1], [0, 0, 1, 1], [], []>} : vector<8x32xf32>, vector<32x64xf32>, vector<8x64xf32> -> vector<8x64xf32>
    %162 = vector.extract_strided_slice %159 {offsets = [0, 0], sizes = [1, 64], strides = [1, 1]} : vector<1x96xf32> to vector<1x64xf32>
    %163 = vector.broadcast %162 : vector<1x64xf32> to vector<8x64xf32>
    %164 = arith.addf %161, %163 : vector<8x64xf32>
    %165 = vector.extract_strided_slice %164 {offsets = [0, 0], sizes = [8, 32], strides = [1, 1]} : vector<8x64xf32> to vector<8x32xf32>
    %166 = vector.extract_strided_slice %164 {offsets = [0, 32], sizes = [8, 32], strides = [1, 1]} : vector<8x64xf32> to vector<8x32xf32>
    %167 = vector.extract_strided_slice %158 {offsets = [0, 64], sizes = [32, 32], strides = [1, 1]} : vector<32x96xf32> to vector<32x32xf32>
    %cst_76 = arith.constant dense<0.000000e+00> : vector<8x32xf32>
    %168 = tpu.matmul %156, %167, %cst_76 {dimension_numbers = #tpu.dot_dimension_numbers<[1], [0], [0], [1], [0, 0, 1, 1], [], []>} : vector<8x32xf32>, vector<32x32xf32>, vector<8x32xf32> -> vector<8x32xf32>
    %169 = vector.extract_strided_slice %159 {offsets = [0, 64], sizes = [1, 32], strides = [1, 1]} : vector<1x96xf32> to vector<1x32xf32>
    %170 = vector.broadcast %169 : vector<1x32xf32> to vector<8x32xf32>
    %171 = arith.addf %168, %170 : vector<8x32xf32>
    %172 = vector.extract_strided_slice %165 {offsets = [0, 0], sizes = [8, 8], strides = [1, 1]} : vector<8x32xf32> to vector<8x8xf32>
    %173 = vector.extract_strided_slice %166 {offsets = [0, 0], sizes = [8, 8], strides = [1, 1]} : vector<8x32xf32> to vector<8x8xf32>
    %174 = vector.extract_strided_slice %171 {offsets = [0, 0], sizes = [8, 8], strides = [1, 1]} : vector<8x32xf32> to vector<8x8xf32>
    %cst_77 = arith.constant dense<0.000000e+00> : vector<8x8xf32>
    %175 = tpu.matmul %172, %173, %cst_77 {dimension_numbers = #tpu.dot_dimension_numbers<[1], [1], [0], [0], [0, 0, 1, 0], [], []>} : vector<8x8xf32>, vector<8x8xf32>, vector<8x8xf32> -> vector<8x8xf32>
    %cst_78 = arith.constant 0.353553385 : f32
    %176 = vector.broadcast %cst_78 : f32 to vector<8x8xf32>
    %177 = arith.mulf %175, %176 : vector<8x8xf32>
    %cst_79 = arith.constant dense<0xFF800000> : vector<8xf32>
    %178 = vector.multi_reduction <maximumf>, %177, %cst_79 [1] : vector<8x8xf32> to vector<8xf32>
    %179 = vector.shape_cast %178 : vector<8xf32> to vector<8x1xf32>
    %180 = vector.broadcast %179 : vector<8x1xf32> to vector<8x8xf32>
    %181 = arith.subf %177, %180 : vector<8x8xf32>
    %182 = math.exp %181 : vector<8x8xf32>
    %cst_80 = arith.constant dense<0.000000e+00> : vector<8xf32>
    %183 = vector.multi_reduction <add>, %182, %cst_80 [1] : vector<8x8xf32> to vector<8xf32>
    %184 = vector.shape_cast %183 : vector<8xf32> to vector<8x1xf32>
    %185 = tpu.reciprocal %184 {approx = true} : vector<8x1xf32> -> vector<8x1xf32>
    %186 = vector.broadcast %185 : vector<8x1xf32> to vector<8x8xf32>
    %187 = arith.mulf %182, %186 : vector<8x8xf32>
    %cst_81 = arith.constant dense<0.000000e+00> : vector<8x8xf32>
    %188 = tpu.matmul %187, %174, %cst_81 {dimension_numbers = #tpu.dot_dimension_numbers<[1], [0], [0], [1], [0, 0, 1, 1], [], []>} : vector<8x8xf32>, vector<8x8xf32>, vector<8x8xf32> -> vector<8x8xf32>
    %189 = vector.extract_strided_slice %165 {offsets = [0, 8], sizes = [8, 8], strides = [1, 1]} : vector<8x32xf32> to vector<8x8xf32>
    %190 = vector.extract_strided_slice %166 {offsets = [0, 8], sizes = [8, 8], strides = [1, 1]} : vector<8x32xf32> to vector<8x8xf32>
    %191 = vector.extract_strided_slice %171 {offsets = [0, 8], sizes = [8, 8], strides = [1, 1]} : vector<8x32xf32> to vector<8x8xf32>
    %cst_82 = arith.constant dense<0.000000e+00> : vector<8x8xf32>
    %192 = tpu.matmul %189, %190, %cst_82 {dimension_numbers = #tpu.dot_dimension_numbers<[1], [1], [0], [0], [0, 0, 1, 0], [], []>} : vector<8x8xf32>, vector<8x8xf32>, vector<8x8xf32> -> vector<8x8xf32>
    %cst_83 = arith.constant 0.353553385 : f32
    %193 = vector.broadcast %cst_83 : f32 to vector<8x8xf32>
    %194 = arith.mulf %192, %193 : vector<8x8xf32>
    %cst_84 = arith.constant dense<0xFF800000> : vector<8xf32>
    %195 = vector.multi_reduction <maximumf>, %194, %cst_84 [1] : vector<8x8xf32> to vector<8xf32>
    %196 = vector.shape_cast %195 : vector<8xf32> to vector<8x1xf32>
    %197 = vector.broadcast %196 : vector<8x1xf32> to vector<8x8xf32>
    %198 = arith.subf %194, %197 : vector<8x8xf32>
    %199 = math.exp %198 : vector<8x8xf32>
    %cst_85 = arith.constant dense<0.000000e+00> : vector<8xf32>
    %200 = vector.multi_reduction <add>, %199, %cst_85 [1] : vector<8x8xf32> to vector<8xf32>
    %201 = vector.shape_cast %200 : vector<8xf32> to vector<8x1xf32>
    %202 = tpu.reciprocal %201 {approx = true} : vector<8x1xf32> -> vector<8x1xf32>
    %203 = vector.broadcast %202 : vector<8x1xf32> to vector<8x8xf32>
    %204 = arith.mulf %199, %203 : vector<8x8xf32>
    %cst_86 = arith.constant dense<0.000000e+00> : vector<8x8xf32>
    %205 = tpu.matmul %204, %191, %cst_86 {dimension_numbers = #tpu.dot_dimension_numbers<[1], [0], [0], [1], [0, 0, 1, 1], [], []>} : vector<8x8xf32>, vector<8x8xf32>, vector<8x8xf32> -> vector<8x8xf32>
    %206 = vector.extract_strided_slice %165 {offsets = [0, 16], sizes = [8, 8], strides = [1, 1]} : vector<8x32xf32> to vector<8x8xf32>
    %207 = vector.extract_strided_slice %166 {offsets = [0, 16], sizes = [8, 8], strides = [1, 1]} : vector<8x32xf32> to vector<8x8xf32>
    %208 = vector.extract_strided_slice %171 {offsets = [0, 16], sizes = [8, 8], strides = [1, 1]} : vector<8x32xf32> to vector<8x8xf32>
    %cst_87 = arith.constant dense<0.000000e+00> : vector<8x8xf32>
    %209 = tpu.matmul %206, %207, %cst_87 {dimension_numbers = #tpu.dot_dimension_numbers<[1], [1], [0], [0], [0, 0, 1, 0], [], []>} : vector<8x8xf32>, vector<8x8xf32>, vector<8x8xf32> -> vector<8x8xf32>
    %cst_88 = arith.constant 0.353553385 : f32
    %210 = vector.broadcast %cst_88 : f32 to vector<8x8xf32>
    %211 = arith.mulf %209, %210 : vector<8x8xf32>
    %cst_89 = arith.constant dense<0xFF800000> : vector<8xf32>
    %212 = vector.multi_reduction <maximumf>, %211, %cst_89 [1] : vector<8x8xf32> to vector<8xf32>
    %213 = vector.shape_cast %212 : vector<8xf32> to vector<8x1xf32>
    %214 = vector.broadcast %213 : vector<8x1xf32> to vector<8x8xf32>
    %215 = arith.subf %211, %214 : vector<8x8xf32>
    %216 = math.exp %215 : vector<8x8xf32>
    %cst_90 = arith.constant dense<0.000000e+00> : vector<8xf32>
    %217 = vector.multi_reduction <add>, %216, %cst_90 [1] : vector<8x8xf32> to vector<8xf32>
    %218 = vector.shape_cast %217 : vector<8xf32> to vector<8x1xf32>
    %219 = tpu.reciprocal %218 {approx = true} : vector<8x1xf32> -> vector<8x1xf32>
    %220 = vector.broadcast %219 : vector<8x1xf32> to vector<8x8xf32>
    %221 = arith.mulf %216, %220 : vector<8x8xf32>
    %cst_91 = arith.constant dense<0.000000e+00> : vector<8x8xf32>
    %222 = tpu.matmul %221, %208, %cst_91 {dimension_numbers = #tpu.dot_dimension_numbers<[1], [0], [0], [1], [0, 0, 1, 1], [], []>} : vector<8x8xf32>, vector<8x8xf32>, vector<8x8xf32> -> vector<8x8xf32>
    %223 = vector.extract_strided_slice %165 {offsets = [0, 24], sizes = [8, 8], strides = [1, 1]} : vector<8x32xf32> to vector<8x8xf32>
    %224 = vector.extract_strided_slice %166 {offsets = [0, 24], sizes = [8, 8], strides = [1, 1]} : vector<8x32xf32> to vector<8x8xf32>
    %225 = vector.extract_strided_slice %171 {offsets = [0, 24], sizes = [8, 8], strides = [1, 1]} : vector<8x32xf32> to vector<8x8xf32>
    %cst_92 = arith.constant dense<0.000000e+00> : vector<8x8xf32>
    %226 = tpu.matmul %223, %224, %cst_92 {dimension_numbers = #tpu.dot_dimension_numbers<[1], [1], [0], [0], [0, 0, 1, 0], [], []>} : vector<8x8xf32>, vector<8x8xf32>, vector<8x8xf32> -> vector<8x8xf32>
    %cst_93 = arith.constant 0.353553385 : f32
    %227 = vector.broadcast %cst_93 : f32 to vector<8x8xf32>
    %228 = arith.mulf %226, %227 : vector<8x8xf32>
    %cst_94 = arith.constant dense<0xFF800000> : vector<8xf32>
    %229 = vector.multi_reduction <maximumf>, %228, %cst_94 [1] : vector<8x8xf32> to vector<8xf32>
    %230 = vector.shape_cast %229 : vector<8xf32> to vector<8x1xf32>
    %231 = vector.broadcast %230 : vector<8x1xf32> to vector<8x8xf32>
    %232 = arith.subf %228, %231 : vector<8x8xf32>
    %233 = math.exp %232 : vector<8x8xf32>
    %cst_95 = arith.constant dense<0.000000e+00> : vector<8xf32>
    %234 = vector.multi_reduction <add>, %233, %cst_95 [1] : vector<8x8xf32> to vector<8xf32>
    %235 = vector.shape_cast %234 : vector<8xf32> to vector<8x1xf32>
    %236 = tpu.reciprocal %235 {approx = true} : vector<8x1xf32> -> vector<8x1xf32>
    %237 = vector.broadcast %236 : vector<8x1xf32> to vector<8x8xf32>
    %238 = arith.mulf %233, %237 : vector<8x8xf32>
    %cst_96 = arith.constant dense<0.000000e+00> : vector<8x8xf32>
    %239 = tpu.matmul %238, %225, %cst_96 {dimension_numbers = #tpu.dot_dimension_numbers<[1], [0], [0], [1], [0, 0, 1, 1], [], []>} : vector<8x8xf32>, vector<8x8xf32>, vector<8x8xf32> -> vector<8x8xf32>
    %240 = tpu.concatenate %188, %205, %222, %239 in 1 : vector<8x8xf32>, vector<8x8xf32>, vector<8x8xf32>, vector<8x8xf32> -> vector<8x32xf32>
    %c0_97 = arith.constant 0 : index
    %c0_98 = arith.constant 0 : index
    %241 = vector.load %arg20[%c0_97, %c0_98] : memref<32x32xf32, #tpu.memory_space<vmem>>, vector<32x32xf32>
    %cst_99 = arith.constant dense<0.000000e+00> : vector<8x32xf32>
    %242 = tpu.matmul %240, %241, %cst_99 {dimension_numbers = #tpu.dot_dimension_numbers<[1], [0], [0], [1], [0, 0, 1, 1], [], []>} : vector<8x32xf32>, vector<32x32xf32>, vector<8x32xf32> -> vector<8x32xf32>
    %c0_100 = arith.constant 0 : index
    %c0_101 = arith.constant 0 : index
    %243 = vector.load %arg21[%c0_100, %c0_101] : memref<1x32xf32, #tpu.memory_space<vmem>>, vector<1x32xf32>
    %244 = vector.broadcast %243 : vector<1x32xf32> to vector<8x32xf32>
    %245 = arith.addf %242, %244 : vector<8x32xf32>
    %246 = arith.addf %156, %245 : vector<8x32xf32>
    %c0_102 = arith.constant 0 : index
    %c0_103 = arith.constant 0 : index
    %247 = vector.load %arg22[%c0_102, %c0_103] : memref<1x32xf32, #tpu.memory_space<vmem>>, vector<1x32xf32>
    %c0_104 = arith.constant 0 : index
    %c0_105 = arith.constant 0 : index
    %248 = vector.load %arg23[%c0_104, %c0_105] : memref<1x32xf32, #tpu.memory_space<vmem>>, vector<1x32xf32>
    %cst_106 = arith.constant dense<0.000000e+00> : vector<8xf32>
    %249 = vector.multi_reduction <add>, %246, %cst_106 [1] : vector<8x32xf32> to vector<8xf32>
    %250 = vector.shape_cast %249 : vector<8xf32> to vector<8x1xf32>
    %cst_107 = arith.constant 3.200000e+01 : f32
    %251 = vector.broadcast %cst_107 : f32 to vector<8x1xf32>
    %252 = arith.divf %250, %251 : vector<8x1xf32>
    %253 = vector.broadcast %252 : vector<8x1xf32> to vector<8x32xf32>
    %254 = arith.subf %246, %253 : vector<8x32xf32>
    %255 = arith.mulf %254, %254 : vector<8x32xf32>
    %cst_108 = arith.constant dense<0.000000e+00> : vector<8xf32>
    %256 = vector.multi_reduction <add>, %255, %cst_108 [1] : vector<8x32xf32> to vector<8xf32>
    %257 = vector.shape_cast %256 : vector<8xf32> to vector<8x1xf32>
    %cst_109 = arith.constant 3.200000e+01 : f32
    %258 = vector.broadcast %cst_109 : f32 to vector<8x1xf32>
    %259 = arith.divf %257, %258 : vector<8x1xf32>
    %cst_110 = arith.constant 9.99999974E-6 : f32
    %260 = vector.broadcast %cst_110 : f32 to vector<8x1xf32>
    %261 = arith.addf %259, %260 : vector<8x1xf32>
    %262 = math.rsqrt %261 : vector<8x1xf32>
    %263 = vector.broadcast %262 : vector<8x1xf32> to vector<8x32xf32>
    %264 = arith.mulf %254, %263 : vector<8x32xf32>
    %265 = vector.broadcast %247 : vector<1x32xf32> to vector<8x32xf32>
    %266 = arith.mulf %264, %265 : vector<8x32xf32>
    %267 = vector.broadcast %248 : vector<1x32xf32> to vector<8x32xf32>
    %268 = arith.addf %266, %267 : vector<8x32xf32>
    %269 = arith.addf %268, %155 : vector<8x32xf32>
    %270 = arith.addf %154, %7 : vector<16x32xf32>
    %c0_111 = arith.constant 0 : index
    %c0_112 = arith.constant 0 : index
    %271 = vector.load %arg24[%c0_111, %c0_112] : memref<32x96xf32, #tpu.memory_space<vmem>>, vector<32x96xf32>
    %c0_113 = arith.constant 0 : index
    %c0_114 = arith.constant 0 : index
    %272 = vector.load %arg25[%c0_113, %c0_114] : memref<1x96xf32, #tpu.memory_space<vmem>>, vector<1x96xf32>
    %273 = vector.extract_strided_slice %271 {offsets = [0, 0], sizes = [32, 32], strides = [1, 1]} : vector<32x96xf32> to vector<32x32xf32>
    %cst_115 = arith.constant dense<0.000000e+00> : vector<8x32xf32>
    %274 = tpu.matmul %269, %273, %cst_115 {dimension_numbers = #tpu.dot_dimension_numbers<[1], [0], [0], [1], [0, 0, 1, 1], [], []>} : vector<8x32xf32>, vector<32x32xf32>, vector<8x32xf32> -> vector<8x32xf32>
    %275 = vector.extract_strided_slice %272 {offsets = [0, 0], sizes = [1, 32], strides = [1, 1]} : vector<1x96xf32> to vector<1x32xf32>
    %276 = vector.broadcast %275 : vector<1x32xf32> to vector<8x32xf32>
    %277 = arith.addf %274, %276 : vector<8x32xf32>
    %278 = vector.extract_strided_slice %271 {offsets = [0, 32], sizes = [32, 32], strides = [1, 1]} : vector<32x96xf32> to vector<32x32xf32>
    %cst_116 = arith.constant dense<0.000000e+00> : vector<16x32xf32>
    %279 = tpu.matmul %270, %278, %cst_116 {dimension_numbers = #tpu.dot_dimension_numbers<[1], [0], [0], [1], [0, 0, 1, 1], [], []>} : vector<16x32xf32>, vector<32x32xf32>, vector<16x32xf32> -> vector<16x32xf32>
    %280 = vector.extract_strided_slice %272 {offsets = [0, 32], sizes = [1, 32], strides = [1, 1]} : vector<1x96xf32> to vector<1x32xf32>
    %281 = vector.broadcast %280 : vector<1x32xf32> to vector<16x32xf32>
    %282 = arith.addf %279, %281 : vector<16x32xf32>
    %283 = vector.extract_strided_slice %271 {offsets = [0, 64], sizes = [32, 32], strides = [1, 1]} : vector<32x96xf32> to vector<32x32xf32>
    %cst_117 = arith.constant dense<0.000000e+00> : vector<16x32xf32>
    %284 = tpu.matmul %154, %283, %cst_117 {dimension_numbers = #tpu.dot_dimension_numbers<[1], [0], [0], [1], [0, 0, 1, 1], [], []>} : vector<16x32xf32>, vector<32x32xf32>, vector<16x32xf32> -> vector<16x32xf32>
    %285 = vector.extract_strided_slice %272 {offsets = [0, 64], sizes = [1, 32], strides = [1, 1]} : vector<1x96xf32> to vector<1x32xf32>
    %286 = vector.broadcast %285 : vector<1x32xf32> to vector<16x32xf32>
    %287 = arith.addf %284, %286 : vector<16x32xf32>
    %288 = vector.extract_strided_slice %277 {offsets = [0, 0], sizes = [8, 8], strides = [1, 1]} : vector<8x32xf32> to vector<8x8xf32>
    %289 = vector.extract_strided_slice %282 {offsets = [0, 0], sizes = [16, 8], strides = [1, 1]} : vector<16x32xf32> to vector<16x8xf32>
    %290 = vector.extract_strided_slice %287 {offsets = [0, 0], sizes = [16, 8], strides = [1, 1]} : vector<16x32xf32> to vector<16x8xf32>
    %cst_118 = arith.constant dense<0.000000e+00> : vector<8x16xf32>
    %291 = tpu.matmul %288, %289, %cst_118 {dimension_numbers = #tpu.dot_dimension_numbers<[1], [1], [0], [0], [0, 0, 1, 0], [], []>} : vector<8x8xf32>, vector<16x8xf32>, vector<8x16xf32> -> vector<8x16xf32>
    %cst_119 = arith.constant 0.353553385 : f32
    %292 = vector.broadcast %cst_119 : f32 to vector<8x16xf32>
    %293 = arith.mulf %291, %292 : vector<8x16xf32>
    %cst_120 = arith.constant dense<0xFF800000> : vector<8xf32>
    %294 = vector.multi_reduction <maximumf>, %293, %cst_120 [1] : vector<8x16xf32> to vector<8xf32>
    %295 = vector.shape_cast %294 : vector<8xf32> to vector<8x1xf32>
    %296 = vector.broadcast %295 : vector<8x1xf32> to vector<8x16xf32>
    %297 = arith.subf %293, %296 : vector<8x16xf32>
    %298 = math.exp %297 : vector<8x16xf32>
    %cst_121 = arith.constant dense<0.000000e+00> : vector<8xf32>
    %299 = vector.multi_reduction <add>, %298, %cst_121 [1] : vector<8x16xf32> to vector<8xf32>
    %300 = vector.shape_cast %299 : vector<8xf32> to vector<8x1xf32>
    %301 = tpu.reciprocal %300 {approx = true} : vector<8x1xf32> -> vector<8x1xf32>
    %302 = vector.broadcast %301 : vector<8x1xf32> to vector<8x16xf32>
    %303 = arith.mulf %298, %302 : vector<8x16xf32>
    %cst_122 = arith.constant dense<0.000000e+00> : vector<8x8xf32>
    %304 = tpu.matmul %303, %290, %cst_122 {dimension_numbers = #tpu.dot_dimension_numbers<[1], [0], [0], [1], [0, 0, 1, 1], [], []>} : vector<8x16xf32>, vector<16x8xf32>, vector<8x8xf32> -> vector<8x8xf32>
    %305 = vector.extract_strided_slice %277 {offsets = [0, 8], sizes = [8, 8], strides = [1, 1]} : vector<8x32xf32> to vector<8x8xf32>
    %306 = vector.extract_strided_slice %282 {offsets = [0, 8], sizes = [16, 8], strides = [1, 1]} : vector<16x32xf32> to vector<16x8xf32>
    %307 = vector.extract_strided_slice %287 {offsets = [0, 8], sizes = [16, 8], strides = [1, 1]} : vector<16x32xf32> to vector<16x8xf32>
    %cst_123 = arith.constant dense<0.000000e+00> : vector<8x16xf32>
    %308 = tpu.matmul %305, %306, %cst_123 {dimension_numbers = #tpu.dot_dimension_numbers<[1], [1], [0], [0], [0, 0, 1, 0], [], []>} : vector<8x8xf32>, vector<16x8xf32>, vector<8x16xf32> -> vector<8x16xf32>
    %cst_124 = arith.constant 0.353553385 : f32
    %309 = vector.broadcast %cst_124 : f32 to vector<8x16xf32>
    %310 = arith.mulf %308, %309 : vector<8x16xf32>
    %cst_125 = arith.constant dense<0xFF800000> : vector<8xf32>
    %311 = vector.multi_reduction <maximumf>, %310, %cst_125 [1] : vector<8x16xf32> to vector<8xf32>
    %312 = vector.shape_cast %311 : vector<8xf32> to vector<8x1xf32>
    %313 = vector.broadcast %312 : vector<8x1xf32> to vector<8x16xf32>
    %314 = arith.subf %310, %313 : vector<8x16xf32>
    %315 = math.exp %314 : vector<8x16xf32>
    %cst_126 = arith.constant dense<0.000000e+00> : vector<8xf32>
    %316 = vector.multi_reduction <add>, %315, %cst_126 [1] : vector<8x16xf32> to vector<8xf32>
    %317 = vector.shape_cast %316 : vector<8xf32> to vector<8x1xf32>
    %318 = tpu.reciprocal %317 {approx = true} : vector<8x1xf32> -> vector<8x1xf32>
    %319 = vector.broadcast %318 : vector<8x1xf32> to vector<8x16xf32>
    %320 = arith.mulf %315, %319 : vector<8x16xf32>
    %cst_127 = arith.constant dense<0.000000e+00> : vector<8x8xf32>
    %321 = tpu.matmul %320, %307, %cst_127 {dimension_numbers = #tpu.dot_dimension_numbers<[1], [0], [0], [1], [0, 0, 1, 1], [], []>} : vector<8x16xf32>, vector<16x8xf32>, vector<8x8xf32> -> vector<8x8xf32>
    %322 = vector.extract_strided_slice %277 {offsets = [0, 16], sizes = [8, 8], strides = [1, 1]} : vector<8x32xf32> to vector<8x8xf32>
    %323 = vector.extract_strided_slice %282 {offsets = [0, 16], sizes = [16, 8], strides = [1, 1]} : vector<16x32xf32> to vector<16x8xf32>
    %324 = vector.extract_strided_slice %287 {offsets = [0, 16], sizes = [16, 8], strides = [1, 1]} : vector<16x32xf32> to vector<16x8xf32>
    %cst_128 = arith.constant dense<0.000000e+00> : vector<8x16xf32>
    %325 = tpu.matmul %322, %323, %cst_128 {dimension_numbers = #tpu.dot_dimension_numbers<[1], [1], [0], [0], [0, 0, 1, 0], [], []>} : vector<8x8xf32>, vector<16x8xf32>, vector<8x16xf32> -> vector<8x16xf32>
    %cst_129 = arith.constant 0.353553385 : f32
    %326 = vector.broadcast %cst_129 : f32 to vector<8x16xf32>
    %327 = arith.mulf %325, %326 : vector<8x16xf32>
    %cst_130 = arith.constant dense<0xFF800000> : vector<8xf32>
    %328 = vector.multi_reduction <maximumf>, %327, %cst_130 [1] : vector<8x16xf32> to vector<8xf32>
    %329 = vector.shape_cast %328 : vector<8xf32> to vector<8x1xf32>
    %330 = vector.broadcast %329 : vector<8x1xf32> to vector<8x16xf32>
    %331 = arith.subf %327, %330 : vector<8x16xf32>
    %332 = math.exp %331 : vector<8x16xf32>
    %cst_131 = arith.constant dense<0.000000e+00> : vector<8xf32>
    %333 = vector.multi_reduction <add>, %332, %cst_131 [1] : vector<8x16xf32> to vector<8xf32>
    %334 = vector.shape_cast %333 : vector<8xf32> to vector<8x1xf32>
    %335 = tpu.reciprocal %334 {approx = true} : vector<8x1xf32> -> vector<8x1xf32>
    %336 = vector.broadcast %335 : vector<8x1xf32> to vector<8x16xf32>
    %337 = arith.mulf %332, %336 : vector<8x16xf32>
    %cst_132 = arith.constant dense<0.000000e+00> : vector<8x8xf32>
    %338 = tpu.matmul %337, %324, %cst_132 {dimension_numbers = #tpu.dot_dimension_numbers<[1], [0], [0], [1], [0, 0, 1, 1], [], []>} : vector<8x16xf32>, vector<16x8xf32>, vector<8x8xf32> -> vector<8x8xf32>
    %339 = vector.extract_strided_slice %277 {offsets = [0, 24], sizes = [8, 8], strides = [1, 1]} : vector<8x32xf32> to vector<8x8xf32>
    %340 = vector.extract_strided_slice %282 {offsets = [0, 24], sizes = [16, 8], strides = [1, 1]} : vector<16x32xf32> to vector<16x8xf32>
    %341 = vector.extract_strided_slice %287 {offsets = [0, 24], sizes = [16, 8], strides = [1, 1]} : vector<16x32xf32> to vector<16x8xf32>
    %cst_133 = arith.constant dense<0.000000e+00> : vector<8x16xf32>
    %342 = tpu.matmul %339, %340, %cst_133 {dimension_numbers = #tpu.dot_dimension_numbers<[1], [1], [0], [0], [0, 0, 1, 0], [], []>} : vector<8x8xf32>, vector<16x8xf32>, vector<8x16xf32> -> vector<8x16xf32>
    %cst_134 = arith.constant 0.353553385 : f32
    %343 = vector.broadcast %cst_134 : f32 to vector<8x16xf32>
    %344 = arith.mulf %342, %343 : vector<8x16xf32>
    %cst_135 = arith.constant dense<0xFF800000> : vector<8xf32>
    %345 = vector.multi_reduction <maximumf>, %344, %cst_135 [1] : vector<8x16xf32> to vector<8xf32>
    %346 = vector.shape_cast %345 : vector<8xf32> to vector<8x1xf32>
    %347 = vector.broadcast %346 : vector<8x1xf32> to vector<8x16xf32>
    %348 = arith.subf %344, %347 : vector<8x16xf32>
    %349 = math.exp %348 : vector<8x16xf32>
    %cst_136 = arith.constant dense<0.000000e+00> : vector<8xf32>
    %350 = vector.multi_reduction <add>, %349, %cst_136 [1] : vector<8x16xf32> to vector<8xf32>
    %351 = vector.shape_cast %350 : vector<8xf32> to vector<8x1xf32>
    %352 = tpu.reciprocal %351 {approx = true} : vector<8x1xf32> -> vector<8x1xf32>
    %353 = vector.broadcast %352 : vector<8x1xf32> to vector<8x16xf32>
    %354 = arith.mulf %349, %353 : vector<8x16xf32>
    %cst_137 = arith.constant dense<0.000000e+00> : vector<8x8xf32>
    %355 = tpu.matmul %354, %341, %cst_137 {dimension_numbers = #tpu.dot_dimension_numbers<[1], [0], [0], [1], [0, 0, 1, 1], [], []>} : vector<8x16xf32>, vector<16x8xf32>, vector<8x8xf32> -> vector<8x8xf32>
    %356 = tpu.concatenate %304, %321, %338, %355 in 1 : vector<8x8xf32>, vector<8x8xf32>, vector<8x8xf32>, vector<8x8xf32> -> vector<8x32xf32>
    %c0_138 = arith.constant 0 : index
    %c0_139 = arith.constant 0 : index
    %357 = vector.load %arg26[%c0_138, %c0_139] : memref<32x32xf32, #tpu.memory_space<vmem>>, vector<32x32xf32>
    %cst_140 = arith.constant dense<0.000000e+00> : vector<8x32xf32>
    %358 = tpu.matmul %356, %357, %cst_140 {dimension_numbers = #tpu.dot_dimension_numbers<[1], [0], [0], [1], [0, 0, 1, 1], [], []>} : vector<8x32xf32>, vector<32x32xf32>, vector<8x32xf32> -> vector<8x32xf32>
    %c0_141 = arith.constant 0 : index
    %c0_142 = arith.constant 0 : index
    %359 = vector.load %arg27[%c0_141, %c0_142] : memref<1x32xf32, #tpu.memory_space<vmem>>, vector<1x32xf32>
    %360 = vector.broadcast %359 : vector<1x32xf32> to vector<8x32xf32>
    %361 = arith.addf %358, %360 : vector<8x32xf32>
    %362 = arith.addf %268, %361 : vector<8x32xf32>
    %c0_143 = arith.constant 0 : index
    %c0_144 = arith.constant 0 : index
    %363 = vector.load %arg28[%c0_143, %c0_144] : memref<1x32xf32, #tpu.memory_space<vmem>>, vector<1x32xf32>
    %c0_145 = arith.constant 0 : index
    %c0_146 = arith.constant 0 : index
    %364 = vector.load %arg29[%c0_145, %c0_146] : memref<1x32xf32, #tpu.memory_space<vmem>>, vector<1x32xf32>
    %cst_147 = arith.constant dense<0.000000e+00> : vector<8xf32>
    %365 = vector.multi_reduction <add>, %362, %cst_147 [1] : vector<8x32xf32> to vector<8xf32>
    %366 = vector.shape_cast %365 : vector<8xf32> to vector<8x1xf32>
    %cst_148 = arith.constant 3.200000e+01 : f32
    %367 = vector.broadcast %cst_148 : f32 to vector<8x1xf32>
    %368 = arith.divf %366, %367 : vector<8x1xf32>
    %369 = vector.broadcast %368 : vector<8x1xf32> to vector<8x32xf32>
    %370 = arith.subf %362, %369 : vector<8x32xf32>
    %371 = arith.mulf %370, %370 : vector<8x32xf32>
    %cst_149 = arith.constant dense<0.000000e+00> : vector<8xf32>
    %372 = vector.multi_reduction <add>, %371, %cst_149 [1] : vector<8x32xf32> to vector<8xf32>
    %373 = vector.shape_cast %372 : vector<8xf32> to vector<8x1xf32>
    %cst_150 = arith.constant 3.200000e+01 : f32
    %374 = vector.broadcast %cst_150 : f32 to vector<8x1xf32>
    %375 = arith.divf %373, %374 : vector<8x1xf32>
    %cst_151 = arith.constant 9.99999974E-6 : f32
    %376 = vector.broadcast %cst_151 : f32 to vector<8x1xf32>
    %377 = arith.addf %375, %376 : vector<8x1xf32>
    %378 = math.rsqrt %377 : vector<8x1xf32>
    %379 = vector.broadcast %378 : vector<8x1xf32> to vector<8x32xf32>
    %380 = arith.mulf %370, %379 : vector<8x32xf32>
    %381 = vector.broadcast %363 : vector<1x32xf32> to vector<8x32xf32>
    %382 = arith.mulf %380, %381 : vector<8x32xf32>
    %383 = vector.broadcast %364 : vector<1x32xf32> to vector<8x32xf32>
    %384 = arith.addf %382, %383 : vector<8x32xf32>
    %c0_152 = arith.constant 0 : index
    %c0_153 = arith.constant 0 : index
    %385 = vector.load %arg30[%c0_152, %c0_153] : memref<32x64xf32, #tpu.memory_space<vmem>>, vector<32x64xf32>
    %cst_154 = arith.constant dense<0.000000e+00> : vector<8x64xf32>
    %386 = tpu.matmul %384, %385, %cst_154 {dimension_numbers = #tpu.dot_dimension_numbers<[1], [0], [0], [1], [0, 0, 1, 1], [], []>} : vector<8x32xf32>, vector<32x64xf32>, vector<8x64xf32> -> vector<8x64xf32>
    %c0_155 = arith.constant 0 : index
    %c0_156 = arith.constant 0 : index
    %387 = vector.load %arg31[%c0_155, %c0_156] : memref<1x64xf32, #tpu.memory_space<vmem>>, vector<1x64xf32>
    %388 = vector.broadcast %387 : vector<1x64xf32> to vector<8x64xf32>
    %389 = arith.addf %386, %388 : vector<8x64xf32>
    %cst_157 = arith.constant 0.000000e+00 : f32
    %390 = vector.broadcast %cst_157 : f32 to vector<8x64xf32>
    %391 = arith.maximumf %389, %390 : vector<8x64xf32>
    %c0_158 = arith.constant 0 : index
    %c0_159 = arith.constant 0 : index
    %392 = vector.load %arg32[%c0_158, %c0_159] : memref<64x32xf32, #tpu.memory_space<vmem>>, vector<64x32xf32>
    %cst_160 = arith.constant dense<0.000000e+00> : vector<8x32xf32>
    %393 = tpu.matmul %391, %392, %cst_160 {dimension_numbers = #tpu.dot_dimension_numbers<[1], [0], [0], [1], [0, 0, 1, 1], [], []>} : vector<8x64xf32>, vector<64x32xf32>, vector<8x32xf32> -> vector<8x32xf32>
    %c0_161 = arith.constant 0 : index
    %c0_162 = arith.constant 0 : index
    %394 = vector.load %arg33[%c0_161, %c0_162] : memref<1x32xf32, #tpu.memory_space<vmem>>, vector<1x32xf32>
    %395 = vector.broadcast %394 : vector<1x32xf32> to vector<8x32xf32>
    %396 = arith.addf %393, %395 : vector<8x32xf32>
    %397 = arith.addf %384, %396 : vector<8x32xf32>
    %c0_163 = arith.constant 0 : index
    %c0_164 = arith.constant 0 : index
    %398 = vector.load %arg34[%c0_163, %c0_164] : memref<1x32xf32, #tpu.memory_space<vmem>>, vector<1x32xf32>
    %c0_165 = arith.constant 0 : index
    %c0_166 = arith.constant 0 : index
    %399 = vector.load %arg35[%c0_165, %c0_166] : memref<1x32xf32, #tpu.memory_space<vmem>>, vector<1x32xf32>
    %cst_167 = arith.constant dense<0.000000e+00> : vector<8xf32>
    %400 = vector.multi_reduction <add>, %397, %cst_167 [1] : vector<8x32xf32> to vector<8xf32>
    %401 = vector.shape_cast %400 : vector<8xf32> to vector<8x1xf32>
    %cst_168 = arith.constant 3.200000e+01 : f32
    %402 = vector.broadcast %cst_168 : f32 to vector<8x1xf32>
    %403 = arith.divf %401, %402 : vector<8x1xf32>
    %404 = vector.broadcast %403 : vector<8x1xf32> to vector<8x32xf32>
    %405 = arith.subf %397, %404 : vector<8x32xf32>
    %406 = arith.mulf %405, %405 : vector<8x32xf32>
    %cst_169 = arith.constant dense<0.000000e+00> : vector<8xf32>
    %407 = vector.multi_reduction <add>, %406, %cst_169 [1] : vector<8x32xf32> to vector<8xf32>
    %408 = vector.shape_cast %407 : vector<8xf32> to vector<8x1xf32>
    %cst_170 = arith.constant 3.200000e+01 : f32
    %409 = vector.broadcast %cst_170 : f32 to vector<8x1xf32>
    %410 = arith.divf %408, %409 : vector<8x1xf32>
    %cst_171 = arith.constant 9.99999974E-6 : f32
    %411 = vector.broadcast %cst_171 : f32 to vector<8x1xf32>
    %412 = arith.addf %410, %411 : vector<8x1xf32>
    %413 = math.rsqrt %412 : vector<8x1xf32>
    %414 = vector.broadcast %413 : vector<8x1xf32> to vector<8x32xf32>
    %415 = arith.mulf %405, %414 : vector<8x32xf32>
    %416 = vector.broadcast %398 : vector<1x32xf32> to vector<8x32xf32>
    %417 = arith.mulf %415, %416 : vector<8x32xf32>
    %418 = vector.broadcast %399 : vector<1x32xf32> to vector<8x32xf32>
    %419 = arith.addf %417, %418 : vector<8x32xf32>
    %c0_172 = arith.constant 0 : index
    %c0_173 = arith.constant 0 : index
    %420 = vector.load %arg36[%c0_172, %c0_173] : memref<32x11xf32, #tpu.memory_space<vmem>>, vector<32x11xf32>
    %cst_174 = arith.constant dense<0.000000e+00> : vector<8x11xf32>
    %421 = tpu.matmul %419, %420, %cst_174 {dimension_numbers = #tpu.dot_dimension_numbers<[1], [0], [0], [1], [0, 0, 1, 1], [], []>} : vector<8x32xf32>, vector<32x11xf32>, vector<8x11xf32> -> vector<8x11xf32>
    %c0_175 = arith.constant 0 : index
    %c0_176 = arith.constant 0 : index
    %422 = vector.load %arg37[%c0_175, %c0_176] : memref<1x11xf32, #tpu.memory_space<vmem>>, vector<1x11xf32>
    %423 = vector.broadcast %422 : vector<1x11xf32> to vector<8x11xf32>
    %424 = arith.addf %421, %423 : vector<8x11xf32>
    %c0_177 = arith.constant 0 : index
    %c0_178 = arith.constant 0 : index
    %c0_179 = arith.constant 0 : index
    %425 = vector.load %arg44[%c0_177, %c0_178, %c0_179] : memref<1x8x11xf32, #tpu.memory_space<vmem>>, vector<1x8x11xf32>
    %426 = vector.shape_cast %425 : vector<1x8x11xf32> to vector<8x11xf32>
    %427 = vector.shape_cast %424 : vector<8x11xf32> to vector<1x8x11xf32>
    tpu.vector_store %arg44[%c0_177, %c0_178, %c0_179], %427 {strides = array<i32>} : memref<1x8x11xf32, #tpu.memory_space<vmem>>, vector<1x8x11xf32>,
    %c0_180 = arith.constant 0 : index
    %c0_181 = arith.constant 0 : index
    %428 = vector.load %arg38[%c0_180, %c0_181] : memref<32x32xf32, #tpu.memory_space<vmem>>, vector<32x32xf32>
    %cst_182 = arith.constant dense<0.000000e+00> : vector<8x32xf32>
    %429 = tpu.matmul %419, %428, %cst_182 {dimension_numbers = #tpu.dot_dimension_numbers<[1], [0], [0], [1], [0, 0, 1, 1], [], []>} : vector<8x32xf32>, vector<32x32xf32>, vector<8x32xf32> -> vector<8x32xf32>
    %c0_183 = arith.constant 0 : index
    %c0_184 = arith.constant 0 : index
    %430 = vector.load %arg39[%c0_183, %c0_184] : memref<1x32xf32, #tpu.memory_space<vmem>>, vector<1x32xf32>
    %431 = vector.broadcast %430 : vector<1x32xf32> to vector<8x32xf32>
    %432 = arith.addf %429, %431 : vector<8x32xf32>
    %cst_185 = arith.constant 0.000000e+00 : f32
    %433 = vector.broadcast %cst_185 : f32 to vector<8x32xf32>
    %434 = arith.maximumf %432, %433 : vector<8x32xf32>
    %c0_186 = arith.constant 0 : index
    %c0_187 = arith.constant 0 : index
    %435 = vector.load %arg40[%c0_186, %c0_187] : memref<32x32xf32, #tpu.memory_space<vmem>>, vector<32x32xf32>
    %cst_188 = arith.constant dense<0.000000e+00> : vector<8x32xf32>
    %436 = tpu.matmul %434, %435, %cst_188 {dimension_numbers = #tpu.dot_dimension_numbers<[1], [0], [0], [1], [0, 0, 1, 1], [], []>} : vector<8x32xf32>, vector<32x32xf32>, vector<8x32xf32> -> vector<8x32xf32>
    %c0_189 = arith.constant 0 : index
    %c0_190 = arith.constant 0 : index
    %437 = vector.load %arg41[%c0_189, %c0_190] : memref<1x32xf32, #tpu.memory_space<vmem>>, vector<1x32xf32>
    %438 = vector.broadcast %437 : vector<1x32xf32> to vector<8x32xf32>
    %439 = arith.addf %436, %438 : vector<8x32xf32>
    %cst_191 = arith.constant 0.000000e+00 : f32
    %440 = vector.broadcast %cst_191 : f32 to vector<8x32xf32>
    %441 = arith.maximumf %439, %440 : vector<8x32xf32>
    %c0_192 = arith.constant 0 : index
    %c0_193 = arith.constant 0 : index
    %442 = vector.load %arg42[%c0_192, %c0_193] : memref<32x4xf32, #tpu.memory_space<vmem>>, vector<32x4xf32>
    %cst_194 = arith.constant dense<0.000000e+00> : vector<8x4xf32>
    %443 = tpu.matmul %441, %442, %cst_194 {dimension_numbers = #tpu.dot_dimension_numbers<[1], [0], [0], [1], [0, 0, 1, 1], [], []>} : vector<8x32xf32>, vector<32x4xf32>, vector<8x4xf32> -> vector<8x4xf32>
    %c0_195 = arith.constant 0 : index
    %c0_196 = arith.constant 0 : index
    %444 = vector.load %arg43[%c0_195, %c0_196] : memref<1x4xf32, #tpu.memory_space<vmem>>, vector<1x4xf32>
    %445 = vector.broadcast %444 : vector<1x4xf32> to vector<8x4xf32>
    %446 = arith.addf %443, %445 : vector<8x4xf32>
    %447 = arith.negf %446 : vector<8x4xf32>
    %448 = math.exp %447 : vector<8x4xf32>
    %cst_197 = arith.constant 1.000000e+00 : f32
    %449 = vector.broadcast %cst_197 : f32 to vector<8x4xf32>
    %450 = arith.addf %449, %448 : vector<8x4xf32>
    %451 = arith.divf %449, %450 : vector<8x4xf32>
    %c0_198 = arith.constant 0 : index
    %c0_199 = arith.constant 0 : index
    %c0_200 = arith.constant 0 : index
    %452 = vector.load %arg45[%c0_198, %c0_199, %c0_200] : memref<1x8x4xf32, #tpu.memory_space<vmem>>, vector<1x8x4xf32>
    %453 = vector.shape_cast %452 : vector<1x8x4xf32> to vector<8x4xf32>
    %454 = vector.shape_cast %451 : vector<8x4xf32> to vector<1x8x4xf32>
    tpu.vector_store %arg45[%c0_198, %c0_199, %c0_200], %454 {strides = array<i32>} : memref<1x8x4xf32, #tpu.memory_space<vmem>>, vector<1x8x4xf32>,
    return
  }
  func.func @transform_0(%arg0: i32) -> (i32, i32, i32) {
    %c0_i32 = arith.constant 0 : i32
    %c0_i32_0 = arith.constant 0 : i32
    %c0_i32_1 = arith.constant 0 : i32
    return %arg0, %c0_i32, %c0_i32_0 : i32, i32, i32
  }
  func.func @transform_1(%arg0: i32) -> (i32, i32) {
    %c0_i32 = arith.constant 0 : i32
    %c0_i32_0 = arith.constant 0 : i32
    %c0_i32_1 = arith.constant 0 : i32
    return %c0_i32, %c0_i32_0 : i32, i32
  }
  func.func @transform_2(%arg0: i32) -> (i32, i32) {
    %c0_i32 = arith.constant 0 : i32
    %c0_i32_0 = arith.constant 0 : i32
    %c0_i32_1 = arith.constant 0 : i32
    return %c0_i32, %c0_i32_0 : i32, i32
  }
  func.func @transform_3(%arg0: i32) -> (i32, i32) {
    %c0_i32 = arith.constant 0 : i32
    %c0_i32_0 = arith.constant 0 : i32
    %c0_i32_1 = arith.constant 0 : i32
    return %c0_i32, %c0_i32_0 : i32, i32
  }
  func.func @transform_4(%arg0: i32) -> (i32, i32) {
    %c0_i32 = arith.constant 0 : i32
    %c0_i32_0 = arith.constant 0 : i32
    %c0_i32_1 = arith.constant 0 : i32
    return %c0_i32, %c0_i32_0 : i32, i32
  }
  func.func @transform_5(%arg0: i32) -> (i32, i32) {
    %c0_i32 = arith.constant 0 : i32
    %c0_i32_0 = arith.constant 0 : i32
    %c0_i32_1 = arith.constant 0 : i32
    return %c0_i32, %c0_i32_0 : i32, i32
  }
  func.func @transform_6(%arg0: i32) -> (i32, i32) {
    %c0_i32 = arith.constant 0 : i32
    %c0_i32_0 = arith.constant 0 : i32
    %c0_i32_1 = arith.constant 0 : i32
    return %c0_i32, %c0_i32_0 : i32, i32
  }
  func.func @transform_7(%arg0: i32) -> (i32, i32) {
    %c0_i32 = arith.constant 0 : i32
    %c0_i32_0 = arith.constant 0 : i32
    %c0_i32_1 = arith.constant 0 : i32
    return %c0_i32, %c0_i32_0 : i32, i32
  }
  func.func @transform_8(%arg0: i32) -> (i32, i32) {
    %c0_i32 = arith.constant 0 : i32
    %c0_i32_0 = arith.constant 0 : i32
    %c0_i32_1 = arith.constant 0 : i32
    return %c0_i32, %c0_i32_0 : i32, i32
  }
  func.func @transform_9(%arg0: i32) -> (i32, i32) {
    %c0_i32 = arith.constant 0 : i32
    %c0_i32_0 = arith.constant 0 : i32
    %c0_i32_1 = arith.constant 0 : i32
    return %c0_i32, %c0_i32_0 : i32, i32
  }
  func.func @transform_10(%arg0: i32) -> (i32, i32) {
    %c0_i32 = arith.constant 0 : i32
    %c0_i32_0 = arith.constant 0 : i32
    %c0_i32_1 = arith.constant 0 : i32
    return %c0_i32, %c0_i32_0 : i32, i32
  }
  func.func @transform_11(%arg0: i32) -> (i32, i32) {
    %c0_i32 = arith.constant 0 : i32
    %c0_i32_0 = arith.constant 0 : i32
    %c0_i32_1 = arith.constant 0 : i32
    return %c0_i32, %c0_i32_0 : i32, i32
  }
  func.func @transform_12(%arg0: i32) -> (i32, i32) {
    %c0_i32 = arith.constant 0 : i32
    %c0_i32_0 = arith.constant 0 : i32
    %c0_i32_1 = arith.constant 0 : i32
    return %c0_i32, %c0_i32_0 : i32, i32
  }
  func.func @transform_13(%arg0: i32) -> (i32, i32) {
    %c0_i32 = arith.constant 0 : i32
    %c0_i32_0 = arith.constant 0 : i32
    %c0_i32_1 = arith.constant 0 : i32
    return %c0_i32, %c0_i32_0 : i32, i32
  }
  func.func @transform_14(%arg0: i32) -> (i32, i32) {
    %c0_i32 = arith.constant 0 : i32
    %c0_i32_0 = arith.constant 0 : i32
    %c0_i32_1 = arith.constant 0 : i32
    return %c0_i32, %c0_i32_0 : i32, i32
  }
  func.func @transform_15(%arg0: i32) -> (i32, i32) {
    %c0_i32 = arith.constant 0 : i32
    %c0_i32_0 = arith.constant 0 : i32
    %c0_i32_1 = arith.constant 0 : i32
    return %c0_i32, %c0_i32_0 : i32, i32
  }
  func.func @transform_16(%arg0: i32) -> (i32, i32) {
    %c0_i32 = arith.constant 0 : i32
    %c0_i32_0 = arith.constant 0 : i32
    %c0_i32_1 = arith.constant 0 : i32
    return %c0_i32, %c0_i32_0 : i32, i32
  }
  func.func @transform_17(%arg0: i32) -> (i32, i32) {
    %c0_i32 = arith.constant 0 : i32
    %c0_i32_0 = arith.constant 0 : i32
    %c0_i32_1 = arith.constant 0 : i32
    return %c0_i32, %c0_i32_0 : i32, i32
  }
  func.func @transform_18(%arg0: i32) -> (i32, i32) {
    %c0_i32 = arith.constant 0 : i32
    %c0_i32_0 = arith.constant 0 : i32
    %c0_i32_1 = arith.constant 0 : i32
    return %c0_i32, %c0_i32_0 : i32, i32
  }
  func.func @transform_19(%arg0: i32) -> (i32, i32) {
    %c0_i32 = arith.constant 0 : i32
    %c0_i32_0 = arith.constant 0 : i32
    %c0_i32_1 = arith.constant 0 : i32
    return %c0_i32, %c0_i32_0 : i32, i32
  }
  func.func @transform_20(%arg0: i32) -> (i32, i32) {
    %c0_i32 = arith.constant 0 : i32
    %c0_i32_0 = arith.constant 0 : i32
    %c0_i32_1 = arith.constant 0 : i32
    return %c0_i32, %c0_i32_0 : i32, i32
  }
  func.func @transform_21(%arg0: i32) -> (i32, i32) {
    %c0_i32 = arith.constant 0 : i32
    %c0_i32_0 = arith.constant 0 : i32
    %c0_i32_1 = arith.constant 0 : i32
    return %c0_i32, %c0_i32_0 : i32, i32
  }
  func.func @transform_22(%arg0: i32) -> (i32, i32) {
    %c0_i32 = arith.constant 0 : i32
    %c0_i32_0 = arith.constant 0 : i32
    %c0_i32_1 = arith.constant 0 : i32
    return %c0_i32, %c0_i32_0 : i32, i32
  }
  func.func @transform_23(%arg0: i32) -> (i32, i32) {
    %c0_i32 = arith.constant 0 : i32
    %c0_i32_0 = arith.constant 0 : i32
    %c0_i32_1 = arith.constant 0 : i32
    return %c0_i32, %c0_i32_0 : i32, i32
  }
  func.func @transform_24(%arg0: i32) -> (i32, i32) {
    %c0_i32 = arith.constant 0 : i32
    %c0_i32_0 = arith.constant 0 : i32
    %c0_i32_1 = arith.constant 0 : i32
    return %c0_i32, %c0_i32_0 : i32, i32
  }
  func.func @transform_25(%arg0: i32) -> (i32, i32) {
    %c0_i32 = arith.constant 0 : i32
    %c0_i32_0 = arith.constant 0 : i32
    %c0_i32_1 = arith.constant 0 : i32
    return %c0_i32, %c0_i32_0 : i32, i32
  }
  func.func @transform_26(%arg0: i32) -> (i32, i32) {
    %c0_i32 = arith.constant 0 : i32
    %c0_i32_0 = arith.constant 0 : i32
    %c0_i32_1 = arith.constant 0 : i32
    return %c0_i32, %c0_i32_0 : i32, i32
  }
  func.func @transform_27(%arg0: i32) -> (i32, i32) {
    %c0_i32 = arith.constant 0 : i32
    %c0_i32_0 = arith.constant 0 : i32
    %c0_i32_1 = arith.constant 0 : i32
    return %c0_i32, %c0_i32_0 : i32, i32
  }
  func.func @transform_28(%arg0: i32) -> (i32, i32) {
    %c0_i32 = arith.constant 0 : i32
    %c0_i32_0 = arith.constant 0 : i32
    %c0_i32_1 = arith.constant 0 : i32
    return %c0_i32, %c0_i32_0 : i32, i32
  }
  func.func @transform_29(%arg0: i32) -> (i32, i32) {
    %c0_i32 = arith.constant 0 : i32
    %c0_i32_0 = arith.constant 0 : i32
    %c0_i32_1 = arith.constant 0 : i32
    return %c0_i32, %c0_i32_0 : i32, i32
  }
  func.func @transform_30(%arg0: i32) -> (i32, i32) {
    %c0_i32 = arith.constant 0 : i32
    %c0_i32_0 = arith.constant 0 : i32
    %c0_i32_1 = arith.constant 0 : i32
    return %c0_i32, %c0_i32_0 : i32, i32
  }
  func.func @transform_31(%arg0: i32) -> (i32, i32) {
    %c0_i32 = arith.constant 0 : i32
    %c0_i32_0 = arith.constant 0 : i32
    %c0_i32_1 = arith.constant 0 : i32
    return %c0_i32, %c0_i32_0 : i32, i32
  }
  func.func @transform_32(%arg0: i32) -> (i32, i32) {
    %c0_i32 = arith.constant 0 : i32
    %c0_i32_0 = arith.constant 0 : i32
    %c0_i32_1 = arith.constant 0 : i32
    return %c0_i32, %c0_i32_0 : i32, i32
  }
  func.func @transform_33(%arg0: i32) -> (i32, i32) {
    %c0_i32 = arith.constant 0 : i32
    %c0_i32_0 = arith.constant 0 : i32
    %c0_i32_1 = arith.constant 0 : i32
    return %c0_i32, %c0_i32_0 : i32, i32
  }
  func.func @transform_34(%arg0: i32) -> (i32, i32) {
    %c0_i32 = arith.constant 0 : i32
    %c0_i32_0 = arith.constant 0 : i32
    %c0_i32_1 = arith.constant 0 : i32
    return %c0_i32, %c0_i32_0 : i32, i32
  }
  func.func @transform_35(%arg0: i32) -> (i32, i32) {
    %c0_i32 = arith.constant 0 : i32
    %c0_i32_0 = arith.constant 0 : i32
    %c0_i32_1 = arith.constant 0 : i32
    return %c0_i32, %c0_i32_0 : i32, i32
  }
  func.func @transform_36(%arg0: i32) -> (i32, i32) {
    %c0_i32 = arith.constant 0 : i32
    %c0_i32_0 = arith.constant 0 : i32
    %c0_i32_1 = arith.constant 0 : i32
    return %c0_i32, %c0_i32_0 : i32, i32
  }
  func.func @transform_37(%arg0: i32) -> (i32, i32) {
    %c0_i32 = arith.constant 0 : i32
    %c0_i32_0 = arith.constant 0 : i32
    %c0_i32_1 = arith.constant 0 : i32
    return %c0_i32, %c0_i32_0 : i32, i32
  }
  func.func @transform_38(%arg0: i32) -> (i32, i32) {
    %c0_i32 = arith.constant 0 : i32
    %c0_i32_0 = arith.constant 0 : i32
    %c0_i32_1 = arith.constant 0 : i32
    return %c0_i32, %c0_i32_0 : i32, i32
  }
  func.func @transform_39(%arg0: i32) -> (i32, i32) {
    %c0_i32 = arith.constant 0 : i32
    %c0_i32_0 = arith.constant 0 : i32
    %c0_i32_1 = arith.constant 0 : i32
    return %c0_i32, %c0_i32_0 : i32, i32
  }
  func.func @transform_40(%arg0: i32) -> (i32, i32) {
    %c0_i32 = arith.constant 0 : i32
    %c0_i32_0 = arith.constant 0 : i32
    %c0_i32_1 = arith.constant 0 : i32
    return %c0_i32, %c0_i32_0 : i32, i32
  }
  func.func @transform_41(%arg0: i32) -> (i32, i32) {
    %c0_i32 = arith.constant 0 : i32
    %c0_i32_0 = arith.constant 0 : i32
    %c0_i32_1 = arith.constant 0 : i32
    return %c0_i32, %c0_i32_0 : i32, i32
  }
  func.func @transform_42(%arg0: i32) -> (i32, i32) {
    %c0_i32 = arith.constant 0 : i32
    %c0_i32_0 = arith.constant 0 : i32
    %c0_i32_1 = arith.constant 0 : i32
    return %c0_i32, %c0_i32_0 : i32, i32
  }
  func.func @transform_43(%arg0: i32) -> (i32, i32, i32) {
    %c0_i32 = arith.constant 0 : i32
    %c0_i32_0 = arith.constant 0 : i32
    %c0_i32_1 = arith.constant 0 : i32
    return %arg0, %c0_i32, %c0_i32_0 : i32, i32, i32
  }
  func.func @transform_44(%arg0: i32) -> (i32, i32, i32) {
    %c0_i32 = arith.constant 0 : i32
    %c0_i32_0 = arith.constant 0 : i32
    %c0_i32_1 = arith.constant 0 : i32
    return %arg0, %c0_i32, %c0_i32_0 : i32, i32, i32
  }
}

</mosaic_0001>

<bundles_post_ra>
// kernel: ddetr_model_forward.1
= control target key start
LH: loop header
LB: loop body
LE: loop exit
PB: predicated region body
PF: predicated region fallthrough
CT: control target
= control target key end

     0   :  { %s6656_s6 = smov 1   ;;  %s6657_s10 = smov 2   ;;  %s7650_s0 = inlined_call_operand.smem [shape: u32[45], index: -1, kind: input, shape index: {}] }
   0x1   :  { %s6724_s5 = sld [smem:[%s7650_s0]]   ;;  %s6658_s14 = smov 3  }
   0x2   :  { %s6729_s9 = sld [smem:[%s7650_s0 + %s6656_s6]]   ;;  %s6659_s18 = smov 4  }
   0x3   :  { %s6734_s13 = sld [smem:[%s7650_s0 + %s6657_s10]]   ;;  %s6660_s22 = smov 5  }
   0x4   :  { %s6739_s17 = sld [smem:[%s7650_s0 + %s6658_s14]]   ;;  %s6661_s26 = smov 6  }
   0x5   :  { %s6744_s21 = sld [smem:[%s7650_s0 + %s6659_s18]]   ;;  %s6662_s30 = smov 7  }
   0x6   :  { %s6749_s25 = sld [smem:[%s7650_s0 + %s6660_s22]]   ;;  %s6663_s4 = smov 8  }
   0x7   :  { %7691 = sst [smem:[#allocation11_spill]] %s6724_s5  ;;  %s6664_s10 = smov 9  }
   0x8   :  { %7692 = sst [smem:[#allocation12_spill]] %s6729_s9  ;;  %s6665_s15 = smov 10  }
   0x9   :  { %s6754_s29 = sld [smem:[%s7650_s0 + %s6661_s26]]   ;;  %s6666_s20 = smov 11  }
   0xa   :  { %s6759_s3 = sld [smem:[%s7650_s0 + %s6662_s30]]   ;;  %s6667_s26 = smov 12  }
   0xb   :  { %7693 = sst [smem:[#allocation13_spill]] %s6744_s21  ;;  %s6668_s1 = smov 13  }
   0xc   :  { %s6764_s8 = sld [smem:[%s7650_s0 + %s6663_s4]]   ;;  %s6669_s7 = smov 14  }
   0xd   :  { %s6769_s14 = sld [smem:[%s7650_s0 + %s6664_s10]]   ;;  %s6671_s22 = smov 16  }
   0xe   :  { %s6774_s19 = sld [smem:[%s7650_s0 + %s6665_s15]]   ;;  %s6670_s15 = smov 15  }
   0xf   :  { %s6779_s24 = sld [smem:[%s7650_s0 + %s6666_s20]]   ;;  %s6672_s28 = smov 17  }
  0x10   :  { %7694 = sst [smem:[#allocation14_spill]] %s6759_s3 }
  0x11   :  { %s6784_s30 = sld [smem:[%s7650_s0 + %s6667_s26]]  }
  0x12   :  { %7695 = sst [smem:[#allocation15_spill]] %s6764_s8 }
  0x13   :  { %s6789_s6 = sld [smem:[%s7650_s0 + %s6668_s1]]  }
  0x14   :  { %s6794_s12 = sld [smem:[%s7650_s0 + %s6669_s7]]   ;;  %s6673_s7 = smov 18  }
  0x15   :  { %s6799_s20 = sld [smem:[%s7650_s0 + %s6670_s15]]   ;;  %s6674_s15 = smov 19  }
  0x16   :  { %s6804_s27 = sld [smem:[%s7650_s0 + %s6671_s22]]   ;;  %s6675_s22 = smov 20  }
  0x17   :  { %7696 = sst [smem:[#allocation16_spill]] %s6784_s30 }
  0x18   :  { %s6809_s4 = sld [smem:[%s7650_s0 + %s6672_s28]]   ;;  %s6676_s28 = smov 21  }
  0x19   :  { %7697 = sst [smem:[#allocation17_spill]] %s6789_s6 }
  0x1a   :  { %7698 = sst [smem:[#allocation18_spill]] %s6794_s12 }
  0x1b   :  { %7699 = sst [smem:[#allocation19_spill]] %s6799_s20 }
  0x1c   :  { %7700 = sst [smem:[#allocation20_spill]] %s6804_s27 }
  0x1d   :  { %s6814_s12 = sld [smem:[%s7650_s0 + %s6673_s7]]   ;;  %s6677_s7 = smov 22  }
  0x1e   :  { %7701 = sst [smem:[#allocation21_spill]] %s6809_s4 }
  0x1f   :  { %s6819_s20 = sld [smem:[%s7650_s0 + %s6674_s15]]   ;;  %s6678_s15 = smov 23  }
  0x20   :  { %s6824_s27 = sld [smem:[%s7650_s0 + %s6675_s22]]   ;;  %s6679_s22 = smov 24  }
  0x21   :  { %s6829_s30 = sld [smem:[%s7650_s0 + %s6676_s28]]   ;;  %s6680_s28 = smov 25  }
  0x23   :  { %7702 = sst [smem:[#allocation22_spill]] %s6814_s12 }
  0x24   :  { %s6834_s12 = sld [smem:[%s7650_s0 + %s6677_s7]]   ;;  %s6681_s7 = smov 26  }
  0x25   :  { %7703 = sst [smem:[#allocation23_spill]] %s6819_s20 }
  0x26   :  { %7704 = sst [smem:[#allocation24_spill]] %s6824_s27 }
  0x27   :  { %7705 = sst [smem:[#allocation25_spill]] %s6829_s30 }
  0x28   :  { %s6839_s20 = sld [smem:[%s7650_s0 + %s6678_s15]]   ;;  %s6682_s15 = smov 27  }
  0x29   :  { %s6844_s27 = sld [smem:[%s7650_s0 + %s6679_s22]]   ;;  %s6683_s22 = smov 28  }
  0x2a   :  { %7706 = sst [smem:[#allocation26_spill]] %s6834_s12 }
  0x2b   :  { %s6849_s30 = sld [smem:[%s7650_s0 + %s6680_s28]]   ;;  %s6684_s28 = smov 29  }
  0x2c   :  { %s6854_s12 = sld [smem:[%s7650_s0 + %s6681_s7]]   ;;  %s6685_s7 = smov 30  }
  0x2e   :  { %7707 = sst [smem:[#allocation27_spill]] %s6839_s20 }
  0x2f   :  { %7708 = sst [smem:[#allocation28_spill]] %s6844_s27 }
  0x30   :  { %s6859_s20 = sld [smem:[%s7650_s0 + %s6682_s15]]   ;;  %s6686_s15 = smov 31  }
  0x31   :  { %7709 = sst [smem:[#allocation29_spill]] %s6849_s30 }
  0x32   :  { %7710 = sst [smem:[#allocation30_spill]] %s6854_s12 }
  0x33   :  { %s6864_s27 = sld [smem:[%s7650_s0 + %s6683_s22]]   ;;  %s6687_s22 = smov 32  }
  0x34   :  { %s6869_s30 = sld [smem:[%s7650_s0 + %s6684_s28]]   ;;  %s6688_s28 = smov 33  }
  0x35   :  { %s6874_s12 = sld [smem:[%s7650_s0 + %s6685_s7]]   ;;  %s6689_s7 = smov 34  }
  0x36   :  { %7711 = sst [smem:[#allocation31_spill]] %s6859_s20 }
  0x37   :  { %s6879_s20 = sld [smem:[%s7650_s0 + %s6686_s15]]   ;;  %s6690_s15 = smov 35  }
  0x39   :  { %7712 = sst [smem:[#allocation32_spill]] %s6864_s27 }
  0x3a   :  { %7713 = sst [smem:[#allocation33_spill]] %s6869_s30 }
  0x3b   :  { %7714 = sst [smem:[#allocation34_spill]] %s6874_s12 }
  0x3c   :  { %s6884_s27 = sld [smem:[%s7650_s0 + %s6687_s22]]   ;;  %s6691_s22 = smov 36  }
  0x3d   :  { %7715 = sst [smem:[#allocation35_spill]] %s6879_s20 }
  0x3e   :  { %s6889_s30 = sld [smem:[%s7650_s0 + %s6688_s28]]   ;;  %s6692_s28 = smov 37  }
  0x3f   :  { %s6894_s12 = sld [smem:[%s7650_s0 + %s6689_s7]]   ;;  %s6693_s7 = smov 38  }
  0x40   :  { %s6899_s20 = sld [smem:[%s7650_s0 + %s6690_s15]]   ;;  %s6694_s15 = smov 39  }
  0x42   :  { %7716 = sst [smem:[#allocation36_spill]] %s6884_s27 }
  0x43   :  { %s6904_s27 = sld [smem:[%s7650_s0 + %s6691_s22]]   ;;  %s6695_s22 = smov 40  }
  0x44   :  { %7717 = sst [smem:[#allocation37_spill]] %s6889_s30 }
  0x45   :  { %7718 = sst [smem:[#allocation38_spill]] %s6894_s12 }
  0x46   :  { %7719 = sst [smem:[#allocation39_spill]] %s6899_s20 }
  0x47   :  { %s6909_s30 = sld [smem:[%s7650_s0 + %s6692_s28]]   ;;  %s6696_s28 = smov 41  }
  0x48   :  { %s6914_s12 = sld [smem:[%s7650_s0 + %s6693_s7]]   ;;  %s6697_s7 = smov 42  }
  0x49   :  { %7720 = sst [smem:[#allocation40_spill]] %s6904_s27 }
  0x4a   :  { %s6919_s20 = sld [smem:[%s7650_s0 + %s6694_s15]]   ;;  %s6698_s15 = smov 43  }
  0x4b   :  { %s6924_s27 = sld [smem:[%s7650_s0 + %s6695_s22]]   ;;  %s6699_s22 = smov 44  }
  0x4c   :  { %s6944_s21 = sld [smem:[%s7650_s0 + %s6699_s22]]  }
  0x4d   :  { %7721 = sst [smem:[#allocation41_spill]] %s6909_s30 }
  0x4e   :  { %7722 = sst [smem:[#allocation42_spill]] %s6914_s12 }
  0x4f   :  { %s6929_s30 = sld [smem:[%s7650_s0 + %s6696_s28]]  }
  0x50   :  { %7723 = sst [smem:[#allocation43_spill]] %s6919_s20 }
  0x51   :  { %s6934_s12 = sld [smem:[%s7650_s0 + %s6697_s7]]  }
  0x52   :  { %s6939_s20 = sld [smem:[%s7650_s0 + %s6698_s15]]  }
  0x57   :  { %7724 = sst [smem:[#allocation44_spill]] %s6934_s12 }
  0x58   :  { %95 = vsyncpa [#allocation3], 0 }
  0x59   :  { %96 = vsyncpa [#allocation6], 0 }
  0x5a   :  { %97 = vsyncpa [#allocation4], 0 }
  0x5b   :  { %99 = vsyncpa [#allocation4 + $0x1], 0  ;;  %s6946_s28 = smov 0   ;;  %s6948_s1 = smov 0  }
  0x5c   :  { %s6950_s2 = smov 0   ;;  %s6952_s7 = smov 0  }
  0x5d LB: > { %s7725_s9 = sld [smem:[#allocation12_spill]]  ;;  %s6967_s0 = sadd.s32 4294967295, %s6654_s7   ;;  %s6654_s7 = sphi %s6952_s7, %s7784_s7   ;;  %s6650_s2 = sphi %s6950_s2, %s7786_s2   ;;  %s6646_s1 = sphi %s6948_s1, %s7788_s1   ;;  %s6642_s28 = sphi %s6946_s28, %s7787_s28  }
  0x5e   : > { %s7726_s6 = sld [smem:[#allocation17_spill]]  ;;  %s5646_s10 = sadd.s32 4294967294, %s6654_s7  }
  0x5f   : > { %s7727_s4 = sld [smem:[#allocation21_spill]]  ;;  %s6971_s11 = sadd.s32 1, %s6654_s7  }
  0x60   : > { %s7728_s3 = sld [smem:[#allocation14_spill]]  ;;  %s1020_s15 = sadd.s32 1, %s6650_s2 }
  0x61   : > { %7729 = sst [smem:[#allocation45_spill]] %s6650_s2  ;;  %s1017_s16 = ssub.s32 %s6654_s7, %s6971_s11 }
  0x62   : > { %7730 = sst [smem:[#allocation46_spill]] %s6971_s11  ;;  %p1030_p0 = scmp.ne.s32.totalorder %s6650_s2, %s6646_s1 }
  0x63   : > { %p1018_p1 = scmp.eq.s32.totalorder %s1017_s16, 0  ;;  %p1031_p2 = scmp.eq.s32.totalorder %s6967_s0, 1 }
  0x64   : > { %p1036_p3 = scmp.ne.s32.totalorder %s6646_s1, %s6642_s28  ;;  %p1037_p4 = scmp.eq.s32.totalorder %s5646_s10, 1 }
  0x65   : > { %s6982_s18 = scalar_select %p1018_p1, %s6650_s2, %s1020_s15  }
  0x66   : > { %p6984_p5 = por %p1031_p2, %p1030_p0  ;;  %p6988_p6 = por %p1037_p4, %p1036_p3 }
  0x67   : > { %7731 = sst [smem:[#allocation47_spill]] %s6982_s18  ;;  %p5647_p7 = scmp.ge.s32.totalorder %s6654_s7, 1 }
  0x68   : > { %s7732_s22 = scalar_select %p6984_p5, 1, 0 }
  0x69   : > { %s7733_s23 = scalar_select %p6988_p6, 1, 0 }
  0x6a   : > { %p1070_p8 = scmp.lt.s32.totalorder %s6654_s7, 3  ;;  %p7662_p9 = scmp.eq.s32.totalorder %s6967_s0, 0 }
  0x6b   : > { %7734 = sst [smem:[#allocation48_spill]] %s7733_s23  ;;  %s6700_s16 = smov [#allocation2]  }
  0x6c   : > { %p6995_p10 = pnand %p5647_p7, %p1070_p8  ;;  %s1200_s10 = sshll.u32 %s6700_s16, 4  ;;  %s1201_s10 = int_to_ptr.vmem [resolvable:$true] %s1200_s10 }
  0x6d   : > { %s6701_s15 = smov [#allocation5]   ;;  %s6545_s11 = scalar_lea.vmem %s1201_s10, 16 }
  0x6e   : > { %s7735_s26 = scalar_select %p6995_p10, 1, 0 }
  0x6f   : > { %p6343_p11 = pneg %p6995_p10  ;;  %s1214_s18 = sshll.u32 %s6701_s15, 4  ;;  %s1215_s18 = int_to_ptr.vmem [resolvable:$true] %s1214_s18 }
  0x70   : > { %p6546_p0 = scmp.ne.s32.totalorder %s1201_s10, %s6545_s11  ;;  %s6552_s16 = scalar_lea.vmem %s1201_s10, 32 }
  0x71   : > { %p7003_p12 = pnand %p7662_p9, %p6343_p11  ;;  %p6553_p3 = scmp.lt.s32.totalorder %s1201_s10, %s1201_s10 }
  0x72   : > { %p6554_p4 = scmp.lt.s32.totalorder %s6552_s16, %s6545_s11 }
  0x73   : > { %p6536_p13 = pneg %p7003_p12 }
  0x74   : > { %p6555_p7 = por %p6554_p4, %p6553_p3 }
  0x75   : > { %p6548_p1 = pnand %p6546_p0, %p6536_p13 }
  0x77   : > { %p6549_p2 = pneg %p6548_p1 }
  0x79   : > { %p6556_p8 = pnand %p6555_p7, %p6549_p2 }
  0x7b   : > { %6559 = shalt.err (!%p6556_p8)
}
  0x7c   : > { %6346 = dma.hbm_to_vmem [thread:$0]  (!%p7003_p12), %s6924_s27, 16, %s1201_s10, [#allocation3]  }
  0x7d   : > { %s6571_s15 = scalar_lea.vmem %s1215_s18, 16  ;;  %s6578_s23 = scalar_lea.vmem %s1215_s18, 32 }
  0x7e   : > { %p6572_p11 = scmp.ne.s32.totalorder %s1215_s18, %s6571_s15  ;;  %p6579_p0 = scmp.lt.s32.totalorder %s1215_s18, %s1215_s18 }
  0x7f   : > { %p6580_p1 = scmp.lt.s32.totalorder %s6578_s23, %s6571_s15 }
  0x80   : > { %p6574_p9 = pnand %p6572_p11, %p6536_p13 }
  0x81   : > { %p6581_p5 = por %p6580_p1, %p6579_p0 }
  0x82   : > { %p6575_p6 = pneg %p6574_p9 }
  0x84   : > { %p6582_p10 = pnand %p6581_p5, %p6575_p6 }
  0x86   : > { %6585 = shalt.err (!%p6582_p10)
}
  0x87   : > { %s7737_s12 = sld [smem:[#allocation44_spill]]  ;;  %p7738_p2 = scmp.ne.s32.totalorder %s7735_s26, 0 }
  0x88   : > { %p7739_p3 = scmp.eq.s32.totalorder (!%p7738_p2), %s6967_s0, 0 }
  0x89   : > { %1235 = sbr.rel (%p7738_p2) target bundleno = 9106 (0x2392), region = 192 }
  0x8d   : > { %6349 = dma.hbm_to_vmem [thread:$0]  (!%p7003_p12), %s7737_s12, 16, %s1215_s18, [#allocation6]  }
  0x8e   : > { %6629 = dma.done.wait (%p7739_p3), [#allocation3], 16   ;;  %p7740_p4 = pmov %p7739_p3 }
  0x8f   : > { %p7741_p9 = pmov %p7739_p3 }
  0x90   : > { %6631 = vsyncadd (%p7740_p4), [#allocation3], 4294967280 }
  0x91   : > { %6633 = dma.done.wait (%p7741_p9), [#allocation6], 16   ;;  %p7742_p13 = pmov %p7739_p3 }
  0x92   : > { %s7743_s5 = sld [smem:[#allocation11_spill]]  ;;  %p1349_p5 = scmp.lt.s32.totalorder %s6967_s0, 1  ;;  %v1365_v0 = vld [vmem:[%s7725_s9 + $0x28] sm:$0xff]  ;;  %v1364_v1 = vld [vmem:[%s7725_s9 + $0x20] sm:$0xff]  ;;  %vm1373_vm0 = vcmask 392192   ;;  %v1363_v2 = vld [vmem:[%s7725_s9 + $0x18] sm:$0xff] }
  0x93   : > { %6635 = vsyncadd (%p7742_p13), [#allocation6], 4294967280  ;;  %5952 = vmatprep.subr.mxu0 %v1365_v0  ;;  %v1362_v4 = vld [vmem:[%s7725_s9 + $0x10] sm:$0xff]  ;;  %v1361_v5 = vld [vmem:[%s7725_s9 + $0x8] sm:$0xff]  ;;  %vm1470_vm1 = vcmask 261120   ;;  %vm1658_vm2 = vcmask 64512  }
  0x94   : > { %s7033_s2 = scalar_select %p1349_p5, %s6967_s0, 1  ;;  %5953 = vmatpush3.msra.mxu0 %v1365_v0  ;;  %v1360_v6 = vld [vmem:[%s7725_s9] sm:$0xff]  ;;  %v1462_v8 = vld [vmem:[%s6749_s25 + $0x18] sm:$0xff]  ;;  %v1461_v9 = vld [vmem:[%s6749_s25 + $0x10] sm:$0xff]  ;;  %vm1744_vm3 = vcmask 130048   ;;  %vm2484_vm4 = vcmask 195584  }
  0x95   : > { %5954 = vmatprep.subr.mxu0 %v1364_v1  ;;  %5967 = vmatprep.subr.mxu1 %v1462_v8  ;;  %v1460_v10 = vld [vmem:[%s6749_s25 + $0x8] sm:$0xff]  ;;  %v1459_v11 = vld [vmem:[%s6749_s25] sm:$0xff]  ;;  %s6702_s23 = smov 88   ;;  %s7682_s26 = smov 96   ;;  %vm6714_vm5 = vmmov 0   ;;  %vm2735_vm6 = vcmask 523264  }
  0x96   : > { %s5766_s11 = sshll.u32 %s7033_s2, 4  ;;  %5955 = vmatpush3.msra.mxu0 %v1364_v1  ;;  %5968 = vmatpush3.msra.mxu1 %v1462_v8  ;;  %v5658_v12 = vld [vmem:[%s6734_s13] ss:$0 sm:$0xff]  ;;  %v1456_v17 = vld [vmem:[%s6739_s17 + $0x8] sm:$0xff]  ;;  %s7680_s10 = smov 120   ;;  %vm5215_vm7 = vcmask 89088  }
  0x97   : > { %5956 = vmatprep.subr.mxu0 %v1363_v2  ;;  %5969 = vmatprep.subr.mxu1 %v1461_v9  ;;  %v1455_v16 = vld [vmem:[%s6739_s17] sm:$0xff]  ;;  %s7666_s16 = smov 64   ;;  %s6706_s15 = smov 80  }
  0x98   : > { %s1353_s18 = scalar_lea.vmem %s7743_s5, %s5766_s11  ;;  %5957 = vmatpush3.msra.mxu0 %v1363_v2  ;;  %5970 = vmatpush3.msra.mxu1 %v1461_v9  ;;  %v7063_v21 = vld [vmem:[%s6754_s29] ss:$0 sm:$0xff]  ;;  %s7669_s11 = smov 112  }
  0x99   : > { %v1358_v3 = vld [vmem:[%s1353_s18] sm:$0xff]  ;;  %5958 = vmatprep.subr.mxu0 %v1362_v4  ;;  %v1359_v7 = vld [vmem:[%s1353_s18 + $0x8] sm:$0xff]  ;;  %5971 = vmatprep.subr.mxu1 %v1460_v10  ;;  %s7668_s18 = smov 72   ;;  %s7744_s8 = sld [smem:[#allocation15_spill]] }
  0x9a   : > { %5964 = vmatprep.mubr.msk.f32.mxu0 %vm1373_vm0, %v1358_v3  ;;  %5959 = vmatpush3.msra.mxu0 %v1362_v4  ;;  %s7759_s5 = sld [smem:[#allocation19_spill]]  ;;  %p7781_p10 = scmp.ne.s32.totalorder %s7732_s22, 0 }
  0x9b   : > { %5960 = vmatprep.subr.mxu0 %v1361_v5  ;;  %5972 = vmatpush3.msra.mxu1 %v1460_v10  ;;  %s6715_s9 = smov [#allocation7]  }
  0x9c   : > { %5961 = vmatpush3.msra.mxu0 %v1361_v5  ;;  %5973 = vmatprep.subr.mxu1 %v1459_v11 }
  0x9d   : > { %5962 = vmatprep.subr.mxu0 %v1360_v6  ;;  %5974 = vmatpush3.msra.mxu1 %v1459_v11 }
  0x9e   : > { %5963 = vmatpush3.msra.mxu0 %v1360_v6 }
  0x9f   : > { %5965 = vmatmul.mubr.msk.f32.vlgmr.msra.gmra.mxu0 %vm1373_vm0, %v1359_v7 }
 0x15f   : > { %v5966_v13 = vpop.f32.mrf.mxu0 }
 0x160   : > { %v7050_v14 = vadd.f32 %v5966_v13, %v5658_v12 }
 0x161   : > { %v1446_v15 = vpop.f32.mrf.mxu0 }
 0x162   : > { %v7054_v18 = vadd.f32 %v5658_v12, %v1446_v15  ;;  %v1458_v20 = vadd.f32 %v1456_v17, %v7050_v14 }
 0x164   : > { %v1457_v19 = vadd.f32 %v1455_v16, %v7054_v18 }
 0x166   : > { %5975 = vmatprep.mubr.msk.f32.mxu1 %vm1470_vm1, %v1457_v19 }
 0x167   : > { %5976 = vmatmul.mubr.msk.f32.vlgmr.msra.gmra.mxu1 %vm1470_vm1, %v1458_v20 }
 0x168   : > { %5986 = vmatprep.mubr.msk.f32.mxu1 %vm1470_vm1, %v7054_v18 }
 0x227   : > { %v5977_v22 = vpop.f32.mrf.mxu1 }
 0x228   : > { %v7066_v23 = vadd.f32 %v5977_v22, %v7063_v21 }
 0x229   : > { %v1543_v24 = vpop.f32.mrf.mxu1 }
 0x22a   : > { %v7069_v25 = vadd.f32 %v7063_v21, %v1543_v24  ;;  %1854 = vrot.lane.b32.xlu1 %v7066_v23, %s6702_s23  ;;  %1656 = vrot.lane.b32.xlu0 %v7066_v23, %s7682_s26 }
 0x22c   : > { %5993 = vmatprep.mubr.msk.f32.mxu0 %vm1658_vm2, %v7069_v25 }
 0x22e   : > { %1852 = vrot.lane.b32.xlu1 %v7069_v25, %s6702_s23  ;;  %1654 = vrot.lane.b32.xlu0 %v7069_v25, %s7682_s26 }
 0x232   : > { %1850 = vrot.lane.b32.xlu1 %v7066_v23, %s7680_s10  ;;  %1848 = vrot.lane.b32.xlu0 %v7069_v25, %s7680_s10 }
 0x236   : > { %1562 = vrot.lane.b32.xlu0 %v1462_v8, %s7666_s16  ;;  %1560 = vrot.lane.b32.xlu1 %v1461_v9, %s7666_s16 }
 0x23a   : > { %1558 = vrot.lane.b32.xlu0 %v1460_v10, %s7666_s16  ;;  %1556 = vrot.lane.b32.xlu1 %v1459_v11, %s7666_s16 }
 0x29c   : > { %v1855_v26 = vpop.permute.xlu1 %1854  ;;  %v1657_v27 = vpop.permute.xlu0 %1656 }
 0x29d   : > { %5989 = vmatprep.subr.msk.mxu0 %vm1658_vm2, %v1657_v27 }
 0x29e   : > { %5990 = vmatpush3.xpose.msk.msra.mxu0 %vm1658_vm2, %v1657_v27 }
 0x2a0   : > { %v1853_v28 = vpop.permute.xlu1 %1852  ;;  %v1655_v29 = vpop.permute.xlu0 %1654 }
 0x2a1   : > { %5991 = vmatprep.subr.msk.mxu0 %vm1658_vm2, %v1655_v29 }
 0x2a2   : > { %5992 = vmatpush3.xpose.msk.msra.mxu0 %vm1658_vm2, %v1655_v29 }
 0x2a3   : > { %6003 = vmatprep.subr.msk.mxu0 %vm1658_vm2, %v1855_v26 }
 0x2a4   : > { %v1851_v30 = vpop.permute.xlu1 %1850  ;;  %v1849_v31 = vpop.permute.xlu0 %1848 }
 0x2a5   : > { %5994 = vmatmul.mubr.msk.f32.vlgmr.msra.gmra.mxu0 %vm1658_vm2, %v7066_v23 }
 0x2a6   : > { %6004 = vmatpush3.xpose.msk.msra.mxu0 %vm1658_vm2, %v1855_v26  ;;  %6007 = vmatprep.mubr.msk.f32.mxu0 %vm1658_vm2, %v1849_v31 }
 0x2a7   : > { %6005 = vmatprep.subr.msk.mxu0 %vm1658_vm2, %v1853_v28 }
 0x2a8   : > { %v1563_v32 = vpop.permute.xlu0 %1562  ;;  %v1561_v33 = vpop.permute.xlu1 %1560 }
 0x2a9   : > { %5978 = vmatprep.subr.mxu1 %v1563_v32 }
 0x2aa   : > { %5979 = vmatpush3.msra.mxu1 %v1563_v32  ;;  %6006 = vmatpush3.xpose.msk.msra.mxu0 %vm1658_vm2, %v1853_v28 }
 0x2ab   : > { %5980 = vmatprep.subr.mxu1 %v1561_v33 }
 0x2ac   : > { %5981 = vmatpush3.msra.mxu1 %v1561_v33  ;;  %v1559_v34 = vpop.permute.xlu0 %1558  ;;  %v1557_v35 = vpop.permute.xlu1 %1556 }
 0x2ad   : > { %5982 = vmatprep.subr.mxu1 %v1559_v34  ;;  %6008 = vmatmul.mubr.msk.f32.vlgmr.msra.gmra.mxu0 %vm1658_vm2, %v1851_v30 }
 0x2ae   : > { %5983 = vmatpush3.msra.mxu1 %v1559_v34 }
 0x2af   : > { %5984 = vmatprep.subr.mxu1 %v1557_v35 }
 0x2b0   : > { %5985 = vmatpush3.msra.mxu1 %v1557_v35 }
 0x2b1   : > { %5987 = vmatmul.mubr.msk.f32.vlgmr.msra.gmra.mxu1 %vm1470_vm1, %v7050_v14 }
 0x365   : > { %v5995_v36 = vpop.f32.mrf.mxu0 }
 0x366   : > { %v1743_v37 = vmul.f32 0.35355338, %v5995_v36 }
 0x367   : > { %v1733_v38 = vpop.f32.mrf.mxu0 }
 0x368   : > { %v1742_v39 = vmul.f32 0.35355338, %v1733_v38  ;;  %v1748_v40 = vsel %vm1744_vm3, %v1743_v37, -inf }
 0x369   : > { %1749 = vmax.xlane.f32.xlu1 %v1748_v40 }
 0x36a   : > { %v1745_v41 = vsel %vm1744_vm3, %v1742_v39, -inf }
 0x36b   : > { %1746 = vmax.xlane.f32.xlu0 %v1745_v41 }
 0x36d   : > { %v6009_v42 = vpop.f32.mrf.mxu0 }
 0x36e   : > { %v1940_v45 = vmul.f32 0.35355338, %v6009_v42 }
 0x36f   : > { %v1930_v43 = vpop.f32.mrf.mxu0 }
 0x370   : > { %v1939_v44 = vmul.f32 0.35355338, %v1930_v43  ;;  %v1944_v47 = vsel %vm1744_vm3, %v1940_v45, -inf }
 0x371   : > { %v5988_v50 = vpop.f32.mrf.mxu1 }
 0x372   : > { %v1941_v46 = vsel %vm1744_vm3, %v1939_v44, -inf }
 0x373   : > { %1942 = vmax.xlane.f32.xlu0 %v1941_v46  ;;  %v1643_v57 = vpop.f32.mrf.mxu1 }
 0x377   : > { %1945 = vmax.xlane.f32.xlu0 %v1944_v47 }
 0x37a   : > { %1568 = vrot.lane.b32.xlu1 %v7063_v21, %s7666_s16  ;;  %s7678_s16 = smov 104  }
 0x3f2   : > { %v1750_v48 = vpop.xlane.xlu1 %1749 }
 0x3f3   : > { %v1752_v49 = vsub.f32 %v1743_v37, %v1750_v48 }
 0x3f4   : > { %v1747_v51 = vpop.xlane.xlu0 %1746 }
 0x3f5   : > { %v1755_v52 = vmul.f32 1.442695, %v1752_v49  ;;  %v1751_v53 = vsub.f32 %v1742_v39, %v1747_v51 }
 0x3f6   : > { %v1569_v54 = vpop.permute.xlu1 %1568 }
 0x3f7   : > { %6450 = vpow2.f32 %v1755_v52  ;;  %v1753_v55 = vmul.f32 1.442695, %v1751_v53  ;;  %v7109_v56 = vadd.f32 %v5988_v50, %v1569_v54  ;;  %v7111_v58 = vadd.f32 %v1643_v57, %v1569_v54 }
 0x3f9   : > { %6452 = vpow2.f32 %v1753_v55  ;;  %1967 = vrot.lane.b32.xlu1 %v7109_v56, %s7680_s10  ;;  %5996 = vmatprep.subr.mxu1 %v7109_v56 }
 0x3fa   : > { %5997 = vmatpush3.msra.mxu1 %v7109_v56 }
 0x3fb   : > { %5998 = vmatprep.subr.mxu1 %v7111_v58 }
 0x3fc   : > { %5999 = vmatpush3.msra.mxu1 %v7111_v58  ;;  %v1943_v59 = vpop.xlane.xlu0 %1942 }
 0x3fd   : > { %2058 = vrot.lane.b32.xlu1 %v7066_v23, %s6706_s15  ;;  %v1947_v60 = vsub.f32 %v1939_v44, %v1943_v59 }
 0x3ff   : > { %v1949_v63 = vmul.f32 1.442695, %v1947_v60 }
 0x400   : > { %v1946_v61 = vpop.xlane.xlu0 %1945 }
 0x401   : > { %v1948_v62 = vsub.f32 %v1940_v45, %v1946_v61  ;;  %2056 = vrot.lane.b32.xlu1 %v7069_v25, %s6706_s15 }
 0x403   : > { %v1951_v0 = vmul.f32 1.442695, %v1948_v62 }
 0x404   : > { %v6451_v1 = vpop.eup %6450 }
 0x405   : > { %6454 = vpow2.f32 %v1951_v0  ;;  %2052 = vrot.lane.b32.xlu1 %v7069_v25, %s7669_s11  ;;  %v1760_v2 = vsel %vm1744_vm3, %v6451_v1, 0.0 }
 0x406   : > { %v6453_v3 = vpop.eup %6452  ;;  %1761 = vadd.xlane.f32.xlu0 %v1760_v2  ;;  %6456 = vpow2.f32 %v1949_v63 }
 0x407   : > { %v1757_v4 = vsel %vm1744_vm3, %v6453_v3, 0.0 }
 0x409   : > { %2054 = vrot.lane.b32.xlu1 %v7066_v23, %s7669_s11 }
 0x40a   : > { %1758 = vadd.xlane.f32.xlu0 %v1757_v4 }
 0x412   : > { %v6455_v5 = vpop.eup %6454 }
 0x413   : > { %v1956_v6 = vsel %vm1744_vm3, %v6455_v5, 0.0  ;;  %v6457_v7 = vpop.eup %6456 }
 0x414   : > { %1957 = vadd.xlane.f32.xlu0 %v1956_v6  ;;  %v1953_v8 = vsel %vm1744_vm3, %v6457_v7, 0.0 }
 0x418   : > { %1954 = vadd.xlane.f32.xlu0 %v1953_v8 }
 0x42e   : > { %1965 = vrot.lane.b32.xlu0 %v7111_v58, %s7680_s10 }
 0x46b   : > { %v1968_v9 = vpop.permute.xlu1 %1967 }
 0x46c   : > { %6010 = vmatprep.subr.mxu1 %v1968_v9 }
 0x46f   : > { %v2059_v21 = vpop.permute.xlu1 %2058 }
 0x473   : > { %v2057_v22 = vpop.permute.xlu1 %2056 }
 0x477   : > { %v2053_v29 = vpop.permute.xlu1 %2052 }
 0x47b   : > { %v2055_v30 = vpop.permute.xlu1 %2054 }
 0x48f   : > { %v1762_v10 = vpop.xlane.xlu0 %1761 }
 0x490   : > { %6458 = vrcp.f32 %v1762_v10 }
 0x493   : > { %v1759_v11 = vpop.xlane.xlu0 %1758 }
 0x494   : > { %6460 = vrcp.f32 %v1759_v11 }
 0x49d   : > { %v1958_v12 = vpop.xlane.xlu0 %1957  ;;  %v6459_v13 = vpop.eup %6458 }
 0x49e   : > { %6462 = vrcp.f32 %v1958_v12  ;;  %v1766_v19 = vmul.f32 %v6459_v13, %v6451_v1 }
 0x4a1   : > { %v6461_v15 = vpop.eup %6460  ;;  %v1955_v16 = vpop.xlane.xlu0 %1954 }
 0x4a2   : > { %6464 = vrcp.f32 %v1955_v16  ;;  %v1765_v17 = vmul.f32 %v6461_v15, %v6453_v3 }
 0x4a4   : > { %6000 = vmatprep.mubr.msk.f32.mxu1 %vm1744_vm3, %v1765_v17 }
 0x4a5   : > { %6001 = vmatmul.mubr.msk.f32.vlgmr.msra.gmra.mxu1 %vm1744_vm3, %v1766_v19  ;;  %v1966_v20 = vpop.permute.xlu0 %1965 }
 0x4a6   : > { %6011 = vmatpush3.msra.mxu1 %v1968_v9 }
 0x4a7   : > { %6012 = vmatprep.subr.mxu1 %v1966_v20 }
 0x4a8   : > { %6013 = vmatpush3.msra.mxu1 %v1966_v20 }
 0x4a9   : > { %6017 = vmatprep.subr.msk.mxu1 %vm1658_vm2, %v2059_v21 }
 0x4ab   : > { %v6463_v24 = vpop.eup %6462 }
 0x4ac   : > { %v1962_v28 = vmul.f32 %v6463_v24, %v6455_v5 }
 0x4af   : > { %v6465_v26 = vpop.eup %6464 }
 0x4b0   : > { %v1961_v27 = vmul.f32 %v6465_v26, %v6457_v7 }
 0x4b2   : > { %6014 = vmatprep.mubr.msk.f32.mxu1 %vm1744_vm3, %v1961_v27  ;;  %v2490_v27 = vld [vmem:[%s7728_s3 + $0x18] sm:$0xff] }
 0x4b3   : > { %6015 = vmatmul.mubr.msk.f32.vlgmr.msra.gmra.mxu1 %vm1744_vm3, %v1962_v28  ;;  %v2489_v28 = vld [vmem:[%s7728_s3 + $0x10] sm:$0xff] }
 0x4b4   : > { %6018 = vmatpush3.xpose.msk.msra.mxu1 %vm1658_vm2, %v2059_v21  ;;  %6021 = vmatprep.mubr.msk.f32.mxu1 %vm1658_vm2, %v2053_v29  ;;  %v2488_v29 = vld [vmem:[%s7728_s3 + $0x8] sm:$0xff] }
 0x4b5   : > { %6019 = vmatprep.subr.msk.mxu1 %vm1658_vm2, %v2057_v22 }
 0x4b8   : > { %6020 = vmatpush3.xpose.msk.msra.mxu1 %vm1658_vm2, %v2057_v22 }
 0x4bb   : > { %6022 = vmatmul.mubr.msk.f32.vlgmr.msra.gmra.mxu1 %vm1658_vm2, %v2055_v30  ;;  %v2487_v30 = vld [vmem:[%s7728_s3] sm:$0xff]  ;;  %s7750_s3 = smov 64  }
 0x565   : > { %v7143_v31 = vpop.f32.mrf.mxu1 }
 0x567   : > { %v7145_v32 = vpop.f32.mrf.mxu1 }
 0x573   : > { %v7147_v33 = vpop.f32.mrf.mxu1 }
 0x575   : > { %v7149_v34 = vpop.f32.mrf.mxu1 }
 0x57b   : > { %v6023_v35 = vpop.f32.mrf.mxu1 }
 0x57c   : > { %v2144_v36 = vmul.f32 0.35355338, %v6023_v35 }
 0x57d   : > { %v2134_v37 = vpop.f32.mrf.mxu1 }
 0x57e   : > { %v2143_v38 = vmul.f32 0.35355338, %v2134_v37  ;;  %v2148_v39 = vsel %vm1744_vm3, %v2144_v36, -inf }
 0x57f   : > { %2149 = vmax.xlane.f32.xlu0 %v2148_v39 }
 0x580   : > { %v2145_v40 = vsel %vm1744_vm3, %v2143_v38, -inf }
 0x581   : > { %2146 = vmax.xlane.f32.xlu1 %v2145_v40 }
 0x608   : > { %v2150_v41 = vpop.xlane.xlu0 %2149 }
 0x609   : > { %v2152_v42 = vsub.f32 %v2144_v36, %v2150_v41 }
 0x60a   : > { %v2147_v43 = vpop.xlane.xlu1 %2146 }
 0x60b   : > { %v2155_v44 = vmul.f32 1.442695, %v2152_v42  ;;  %v2151_v45 = vsub.f32 %v2143_v38, %v2147_v43 }
 0x60d   : > { %6466 = vpow2.f32 %v2155_v44  ;;  %v2153_v46 = vmul.f32 1.442695, %v2151_v45 }
 0x60f   : > { %6468 = vpow2.f32 %v2153_v46 }
 0x61a   : > { %v6467_v47 = vpop.eup %6466 }
 0x61b   : > { %v2160_v48 = vsel %vm1744_vm3, %v6467_v47, 0.0 }
 0x61c   : > { %v6469_v49 = vpop.eup %6468  ;;  %2161 = vadd.xlane.f32.xlu1 %v2160_v48 }
 0x61d   : > { %v2157_v50 = vsel %vm1744_vm3, %v6469_v49, 0.0 }
 0x61e   : > { %2158 = vadd.xlane.f32.xlu0 %v2157_v50 }
 0x62d   : > { %2167 = vrot.lane.b32.xlu1 %v7111_v58, %s7669_s11 }
 0x631   : > { %2260 = vrot.lane.b32.xlu1 %v7066_v23, %s7668_s18 }
 0x634   : > { %2169 = vrot.lane.b32.xlu0 %v7109_v56, %s7669_s11  ;;  %s7671_s11 = smov 16  }
 0x635   : > { %2254 = vrot.lane.b32.xlu1 %v7069_v25, %s7678_s16 }
 0x638   : > { %2258 = vrot.lane.b32.xlu0 %v7069_v25, %s7668_s18  ;;  %s7675_s18 = smov 8  }
 0x63c   : > { %2256 = vrot.lane.b32.xlu0 %v7066_v23, %s7678_s16 }
 0x6a5   : > { %v2162_v51 = vpop.xlane.xlu1 %2161 }
 0x6a6   : > { %6470 = vrcp.f32 %v2162_v51 }
 0x6a7   : > { %v2159_v52 = vpop.xlane.xlu0 %2158 }
 0x6a8   : > { %6472 = vrcp.f32 %v2159_v52 }
 0x6a9   : > { %v2168_v53 = vpop.permute.xlu1 %2167 }
 0x6ab   : > { %v2170_v54 = vpop.permute.xlu0 %2169 }
 0x6ac   : > { %6024 = vmatprep.subr.mxu0 %v2170_v54 }
 0x6ad   : > { %6025 = vmatpush3.msra.mxu0 %v2170_v54  ;;  %v2261_v55 = vpop.permute.xlu1 %2260 }
 0x6ae   : > { %6026 = vmatprep.subr.mxu0 %v2168_v53 }
 0x6af   : > { %6027 = vmatpush3.msra.mxu0 %v2168_v53  ;;  %v2259_v61 = vpop.permute.xlu0 %2258 }
 0x6b0   : > { %6031 = vmatprep.subr.msk.mxu0 %vm1658_vm2, %v2261_v55 }
 0x6b1   : > { %v2255_v23 = vpop.permute.xlu1 %2254 }
 0x6b3   : > { %v6471_v57 = vpop.eup %6470  ;;  %v2257_v62 = vpop.permute.xlu0 %2256 }
 0x6b4   : > { %v2166_v25 = vmul.f32 %v6471_v57, %v6467_v47  ;;  %v5690_v47 = vld [vmem:[%s7744_s8] ss:$0 sm:$0xff] }
 0x6b5   : > { %v6473_v59 = vpop.eup %6472 }
 0x6b6   : > { %v2165_v60 = vmul.f32 %v6473_v59, %v6469_v49 }
 0x6b8   : > { %6028 = vmatprep.mubr.msk.f32.mxu0 %vm1744_vm3, %v2165_v60 }
 0x6b9   : > { %6029 = vmatmul.mubr.msk.f32.vlgmr.msra.gmra.mxu0 %vm1744_vm3, %v2166_v25 }
 0x6ba   : > { %6032 = vmatpush3.xpose.msk.msra.mxu0 %vm1658_vm2, %v2261_v55  ;;  %6035 = vmatprep.mubr.msk.f32.mxu0 %vm1658_vm2, %v2255_v23 }
 0x6bb   : > { %6033 = vmatprep.subr.msk.mxu0 %vm1658_vm2, %v2259_v61 }
 0x6be   : > { %6034 = vmatpush3.xpose.msk.msra.mxu0 %vm1658_vm2, %v2259_v61 }
 0x6c1   : > { %6036 = vmatmul.mubr.msk.f32.vlgmr.msra.gmra.mxu0 %vm1658_vm2, %v2257_v62  ;;  %v2629_v62 = vld [vmem:[%s6779_s24 + $0x18] sm:$0xff] }
 0x6c2   : > { %6056 = vmatprep.subr.mxu0 %v2629_v62 }
 0x6c3   : > { %6057 = vmatpush3.msra.mxu0 %v2629_v62 }
 0x779   : > { %v6030_v63 = vpop.f32.mrf.mxu0 }
 0x77b   : > { %v2245_v0 = vpop.f32.mrf.mxu0 }
 0x781   : > { %v6037_v1 = vpop.f32.mrf.mxu0 }
 0x782   : > { %v2346_v2 = vmul.f32 0.35355338, %v6037_v1  ;;  %v2626_v1 = vld [vmem:[%s6779_s24] sm:$0xff] }
 0x783   : > { %v2336_v3 = vpop.f32.mrf.mxu0 }
 0x784   : > { %v2345_v4 = vmul.f32 0.35355338, %v2336_v3  ;;  %v2350_v5 = vsel %vm1744_vm3, %v2346_v2, -inf  ;;  %v2727_v3 = vld [vmem:[%s7726_s6 + $0x38] sm:$0xff] }
 0x785   : > { %2351 = vmax.xlane.f32.xlu0 %v2350_v5  ;;  %v2725_v5 = vld [vmem:[%s7726_s6 + $0x28] sm:$0xff] }
 0x786   : > { %v2347_v6 = vsel %vm1744_vm3, %v2345_v4, -inf }
 0x787   : > { %2348 = vmax.xlane.f32.xlu1 %v2347_v6  ;;  %v2724_v6 = vld [vmem:[%s7726_s6 + $0x20] sm:$0xff] }
 0x80e   : > { %v2352_v7 = vpop.xlane.xlu0 %2351 }
 0x80f   : > { %v2354_v8 = vsub.f32 %v2346_v2, %v2352_v7  ;;  %v6713_v2 = vmov 0.0  }
 0x810   : > { %v2349_v9 = vpop.xlane.xlu1 %2348 }
 0x811   : > { %v2357_v10 = vmul.f32 1.442695, %v2354_v8  ;;  %v2353_v11 = vsub.f32 %v2345_v4, %v2349_v9  ;;  %v2726_v4 = vld [vmem:[%s7726_s6 + $0x30] sm:$0xff] }
 0x813   : > { %6474 = vpow2.f32 %v2357_v10  ;;  %v2355_v12 = vmul.f32 1.442695, %v2353_v11 }
 0x815   : > { %6476 = vpow2.f32 %v2355_v12 }
 0x820   : > { %v6475_v13 = vpop.eup %6474 }
 0x821   : > { %v2362_v15 = vsel %vm1744_vm3, %v6475_v13, 0.0 }
 0x822   : > { %v6477_v16 = vpop.eup %6476  ;;  %2363 = vadd.xlane.f32.xlu1 %v2362_v15  ;;  %v5693_v15 = vld [vmem:[%s6769_s14] ss:$0 sm:$0xff] }
 0x823   : > { %v2359_v17 = vsel %vm1744_vm3, %v6477_v16, 0.0 }
 0x824   : > { %2360 = vadd.xlane.f32.xlu0 %v2359_v17 }
 0x833   : > { %2369 = vrot.lane.b32.xlu1 %v7111_v58, %s7678_s16 }
 0x837   : > { %2458 = vrot.lane.b32.xlu1 %v7149_v34, %s7675_s18 }
 0x83a   : > { %2371 = vrot.lane.b32.xlu0 %v7109_v56, %s7678_s16 }
 0x83b   : > { %2466 = vrot.lane.b32.xlu1 %v2245_v0, %s7671_s11  ;;  %v2627_v0 = vld [vmem:[%s6779_s24 + $0x8] sm:$0xff] }
 0x83e   : > { %2460 = vrot.lane.b32.xlu0 %v7147_v33, %s7675_s18  ;;  %s7746_s18 = sld [smem:[#allocation16_spill]] }
 0x842   : > { %2468 = vrot.lane.b32.xlu0 %v6030_v63, %s7671_s11  ;;  %s7673_s11 = smov 24   ;;  %v2628_v63 = vld [vmem:[%s6779_s24 + $0x10] sm:$0xff] }
 0x843   : > { %6058 = vmatprep.subr.mxu0 %v2628_v63 }
 0x844   : > { %6059 = vmatpush3.msra.mxu0 %v2628_v63 }
 0x845   : > { %6060 = vmatprep.subr.mxu0 %v2627_v0 }
 0x846   : > { %6061 = vmatpush3.msra.mxu0 %v2627_v0 }
 0x847   : > { %6062 = vmatprep.subr.mxu0 %v2626_v1 }
 0x848   : > { %6063 = vmatpush3.msra.mxu0 %v2626_v1 }
 0x849   : > { %6086 = vmatprep.subr.mxu0 %v6713_v2 }
 0x8ab   : > { %v2364_v19 = vpop.xlane.xlu1 %2363 }
 0x8ac   : > { %6478 = vrcp.f32 %v2364_v19 }
 0x8ad   : > { %v2361_v58 = vpop.xlane.xlu0 %2360 }
 0x8ae   : > { %6480 = vrcp.f32 %v2361_v58 }
 0x8af   : > { %v2370_v21 = vpop.permute.xlu1 %2369 }
 0x8b1   : > { %v2372_v20 = vpop.permute.xlu0 %2371 }
 0x8b2   : > { %6038 = vmatprep.subr.mxu1 %v2372_v20 }
 0x8b3   : > { %6039 = vmatpush3.msra.mxu1 %v2372_v20  ;;  %v2459_v36 = vpop.permute.xlu1 %2458  ;;  %v5694_v20 = vld [vmem:[%s6774_s19] ss:$0 sm:$0xff] }
 0x8b4   : > { %6040 = vmatprep.subr.mxu1 %v2370_v21  ;;  %v2480_v39 = vsel %vm1658_vm2, %v7145_v32, %v2459_v36  ;;  %v5695_v36 = vld [vmem:[%s7746_s18] ss:$0 sm:$0xff]  ;;  %s7748_s18 = smov 112  }
 0x8b5   : > { %6041 = vmatpush3.msra.mxu1 %v2370_v21  ;;  %v2461_v35 = vpop.permute.xlu0 %2460 }
 0x8b6   : > { %6045 = vmatprep.subr.mxu1 %v2490_v27  ;;  %v2481_v41 = vsel %vm1658_vm2, %v7143_v31, %v2461_v35  ;;  %v2720_v35 = vld [vmem:[%s7726_s6] sm:$0xff] }
 0x8b7   : > { %v2467_v38 = vpop.permute.xlu1 %2466 }
 0x8b8   : > { %v2482_v42 = vsel %vm1744_vm3, %v2480_v39, %v2467_v38 }
 0x8b9   : > { %v6479_v56 = vpop.eup %6478  ;;  %v2469_v37 = vpop.permute.xlu0 %2468 }
 0x8ba   : > { %v2368_v26 = vmul.f32 %v6479_v56, %v6475_v13  ;;  %v2483_v44 = vsel %vm1744_vm3, %v2481_v41, %v2469_v37 }
 0x8bb   : > { %v6481_v22 = vpop.eup %6480 }
 0x8bc   : > { %v2367_v24 = vmul.f32 %v6481_v22, %v6477_v16 }
 0x8be   : > { %6042 = vmatprep.mubr.msk.f32.mxu1 %vm1744_vm3, %v2367_v24  ;;  %v2868_v24 = vld [vmem:[%s7727_s4 + $0x18] sm:$0xff] }
 0x8bf   : > { %6043 = vmatmul.mubr.msk.f32.vlgmr.msra.gmra.mxu1 %vm1744_vm3, %v2368_v26  ;;  %v2867_v26 = vld [vmem:[%s7727_s4 + $0x10] sm:$0xff] }
 0x8c0   : > { %6046 = vmatpush3.msra.mxu1 %v2490_v27  ;;  %v2866_v27 = vld [vmem:[%s7727_s4 + $0x8] sm:$0xff] }
 0x8c1   : > { %6047 = vmatprep.subr.mxu1 %v2489_v28 }
 0x8c2   : > { %6048 = vmatpush3.msra.mxu1 %v2489_v28  ;;  %v2865_v28 = vld [vmem:[%s7727_s4] sm:$0xff]  ;;  %s7758_s4 = smov 96  }
 0x8c3   : > { %6049 = vmatprep.subr.mxu1 %v2488_v29 }
 0x8c4   : > { %6050 = vmatpush3.msra.mxu1 %v2488_v29 }
 0x8c5   : > { %6051 = vmatprep.subr.mxu1 %v2487_v30 }
 0x8c6   : > { %6052 = vmatpush3.msra.mxu1 %v2487_v30  ;;  %v2723_v30 = vld [vmem:[%s7726_s6 + $0x18] sm:$0xff] }
 0x8c7   : > { %6067 = vmatprep.subr.mxu1 %v2727_v3 }
 0x97f   : > { %v6044_v33 = vpop.f32.mrf.mxu1 }
 0x980   : > { %2476 = vrot.lane.b32.xlu0 %v6044_v33, %s7673_s11  ;;  %v2722_v33 = vld [vmem:[%s7726_s6 + $0x10] sm:$0xff] }
 0x981   : > { %v2447_v34 = vpop.f32.mrf.mxu1 }
 0x982   : > { %2474 = vrot.lane.b32.xlu1 %v2447_v34, %s7673_s11  ;;  %s7745_s11 = sld [smem:[#allocation13_spill]]  ;;  %v2721_v34 = vld [vmem:[%s7726_s6 + $0x8] sm:$0xff] }
 0x983   : > { %s7760_s6 = sld [smem:[#allocation20_spill]] }
 0x988   : > { %v7242_v29 = vld [vmem:[%s7745_s11] sm:$0xff]  ;;  %s7747_s11 = sld [smem:[#allocation22_spill]] }
 0x9f2   : > { %v2477_v40 = vpop.permute.xlu0 %2476 }
 0x9f3   : > { %v2486_v46 = vsel %vm2484_vm4, %v2483_v44, %v2477_v40 }
 0x9f4   : > { %v2475_v43 = vpop.permute.xlu1 %2474 }
 0x9f5   : > { %v2485_v45 = vsel %vm2484_vm4, %v2482_v42, %v2475_v43  ;;  %v7257_v43 = vld [vmem:[%s7747_s11] ss:$0 sm:$0xff]  ;;  %s7749_s11 = smov 72  }
 0x9f6   : > { %6053 = vmatprep.mubr.msk.f32.mxu1 %vm1470_vm1, %v2485_v45 }
 0x9f7   : > { %6054 = vmatmul.mubr.msk.f32.vlgmr.msra.gmra.mxu1 %vm1470_vm1, %v2486_v46 }
 0x9f8   : > { %6068 = vmatpush3.msra.mxu1 %v2727_v3 }
 0x9f9   : > { %6069 = vmatprep.subr.mxu1 %v2726_v4 }
 0x9fa   : > { %6070 = vmatpush3.msra.mxu1 %v2726_v4 }
 0x9fb   : > { %6071 = vmatprep.subr.mxu1 %v2725_v5 }
 0x9fc   : > { %6072 = vmatpush3.msra.mxu1 %v2725_v5 }
 0x9fd   : > { %6073 = vmatprep.subr.mxu1 %v2724_v6 }
 0x9fe   : > { %6074 = vmatpush3.msra.mxu1 %v2724_v6 }
 0x9ff   : > { %6075 = vmatprep.subr.mxu1 %v2723_v30 }
 0xa00   : > { %6076 = vmatpush3.msra.mxu1 %v2723_v30 }
 0xa01   : > { %6077 = vmatprep.subr.mxu1 %v2722_v33 }
 0xa02   : > { %6078 = vmatpush3.msra.mxu1 %v2722_v33 }
 0xa03   : > { %6079 = vmatprep.subr.mxu1 %v2721_v34 }
 0xa04   : > { %6080 = vmatpush3.msra.mxu1 %v2721_v34 }
 0xa05   : > { %6081 = vmatprep.subr.mxu1 %v2720_v35 }
 0xa06   : > { %6082 = vmatpush3.msra.mxu1 %v2720_v35 }
 0xa07   : > { %6108 = vmatprep.subr.mxu1 %v6713_v2 }
 0xab7   : > { %v6055_v32 = vpop.f32.mrf.mxu1 }
 0xab8   : > { %v2576_v48 = vadd.f32 %v6055_v32, %v5690_v47 }
 0xab9   : > { %v2570_v49 = vpop.f32.mrf.mxu1 }
 0xaba   : > { %v2571_v50 = vadd.f32 %v5690_v47, %v2570_v49  ;;  %v2580_v31 = vadd.f32 %v2576_v48, %v7050_v14 }
 0xabc   : > { %v2586_v51 = vsel %vm1470_vm1, %v2580_v31, 0.0  ;;  %v2579_v52 = vadd.f32 %v2571_v50, %v7054_v18 }
 0xabd   : > { %2587 = vadd.xlane.f32.xlu0 %v2586_v51 }
 0xabe   : > { %v2583_v53 = vsel %vm1470_vm1, %v2579_v52, 0.0 }
 0xabf   : > { %2584 = vadd.xlane.f32.xlu1 %v2583_v53 }
 0xb46   : > { %v2588_v54 = vpop.xlane.xlu0 %2587 }
 0xb47   : > { %v2591_v55 = vmul.f32 0.03125, %v2588_v54 }
 0xb48   : > { %v2585_v57 = vpop.xlane.xlu1 %2584 }
 0xb49   : > { %v2593_v59 = vsub.f32 %v2580_v31, %v2591_v55  ;;  %v2590_v60 = vmul.f32 0.03125, %v2585_v57 }
 0xb4b   : > { %v2592_v25 = vsub.f32 %v2579_v52, %v2590_v60  ;;  %v2595_v23 = vmul.f32 %v2593_v59, %v2593_v59 }
 0xb4d   : > { %v2599_v14 = vsel %vm1470_vm1, %v2595_v23, 0.0  ;;  %v2594_v61 = vmul.f32 %v2592_v25, %v2592_v25 }
 0xb4e   : > { %2600 = vadd.xlane.f32.xlu1 %v2599_v14 }
 0xb4f   : > { %v2596_v18 = vsel %vm1470_vm1, %v2594_v61, 0.0 }
 0xb50   : > { %2597 = vadd.xlane.f32.xlu0 %v2596_v18 }
 0xbd7   : > { %v2601_v7 = vpop.xlane.xlu1 %2600 }
 0xbd8   : > { %v2603_v8 = vmul.f32 0.03125, %v2601_v7 }
 0xbd9   : > { %v2598_v9 = vpop.xlane.xlu0 %2597 }
 0xbda   : > { %v2605_v10 = vadd.f32 1e-05, %v2603_v8  ;;  %v2602_v11 = vmul.f32 0.03125, %v2598_v9 }
 0xbdc   : > { %6482 = vrsqrt.f32 %v2605_v10  ;;  %v2604_v12 = vadd.f32 1e-05, %v2602_v11 }
 0xbde   : > { %6484 = vrsqrt.f32 %v2604_v12 }
 0xbe9   : > { %v6483_v13 = vpop.eup %6482 }
 0xbea   : > { %v2609_v16 = vmul.f32 %v6483_v13, %v2593_v59 }
 0xbeb   : > { %v6485_v17 = vpop.eup %6484 }
 0xbec   : > { %v2608_v19 = vmul.f32 %v6485_v17, %v2592_v25  ;;  %v2617_v58 = vmul.f32 %v5693_v15, %v2609_v16 }
 0xbee   : > { %v2616_v21 = vmul.f32 %v5693_v15, %v2608_v19  ;;  %v7227_v22 = vadd.f32 %v5694_v20, %v2617_v58 }
 0xbf0   : > { %v7225_v56 = vadd.f32 %v5694_v20, %v2616_v21 }
 0xbf2   : > { %6064 = vmatprep.mubr.msk.f32.mxu0 %vm1470_vm1, %v7225_v56 }
 0xbf3   : > { %6065 = vmatmul.mubr.msk.f32.vlgmr.msra.gmra.mxu0 %vm1470_vm1, %v7227_v22 }
 0xbf4   : > { %6087 = vmatpush3.msra.mxu0 %v2868_v24  ;;  %6094 = vmatprep.mubr.msk.f32.mxu0 %vm6714_vm5, %v6713_v2 }
 0xbf5   : > { %6088 = vmatprep.subr.mxu0 %v6713_v2 }
 0xbf6   : > { %6089 = vmatpush3.msra.mxu0 %v2867_v26 }
 0xbf7   : > { %6090 = vmatprep.subr.mxu0 %v6713_v2 }
 0xbf8   : > { %6091 = vmatpush3.msra.mxu0 %v2866_v27 }
 0xbf9   : > { %6092 = vmatprep.subr.mxu0 %v6713_v2 }
 0xbfa   : > { %6093 = vmatpush3.msra.mxu0 %v2865_v28 }
 0xbfb   : > { %6095 = vmatmul.mubr.msk.f32.vlgmr.msra.gmra.mxu0 %vm1470_vm1, %v7242_v29  ;;  %6097 = vmatprep.subr.mxu0 %v6713_v2 }
 0xbfc   : > { %6105 = vmatprep.mubr.msk.f32.mxu0 %vm6714_vm5, %v6713_v2 }
 0xcb3   : > { %v6066_v37 = vpop.f32.mrf.mxu0 }
 0xcb4   : > { %v2715_v38 = vadd.f32 %v6066_v37, %v5695_v36 }
 0xcb5   : > { %v2709_v39 = vpop.f32.mrf.mxu0 }
 0xcb6   : > { %v2710_v40 = vadd.f32 %v5695_v36, %v2709_v39  ;;  %v2719_v42 = vmax.f32 %v2715_v38, 0.0 }
 0xcb8   : > { %v2718_v41 = vmax.f32 %v2710_v40, 0.0 }
 0xcba   : > { %6083 = vmatprep.mubr.msk.f32.mxu1 %vm2735_vm6, %v2718_v41 }
 0xcbb   : > { %v2945_v44 = vpop.f32.mrf.mxu0  ;;  %6084 = vmatmul.mubr.msk.f32.vlgmr.msra.gmra.mxu1 %vm2735_vm6, %v2719_v42 }
 0xcbc   : > { %v2946_v45 = vadd.f32 %v7257_v43, %v2945_v44  ;;  %6110 = vmatprep.mubr.msk.f32.mxu1 %vm6714_vm5, %v6713_v2 }
 0xcbd   : > { %v6096_v46 = vpop.f32.mrf.mxu0 }
 0xcbe   : > { %3205 = vrot.lane.b32.xlu1 %v2946_v45, %s6702_s23  ;;  %3042 = vrot.lane.b32.xlu0 %v2946_v45, %s7682_s26  ;;  %s7751_s23 = sld [smem:[#allocation18_spill]] }
 0xcbf   : > { %s7757_s26 = sld [smem:[#allocation24_spill]] }
 0xcc2   : > { %3203 = vrot.lane.b32.xlu1 %v2946_v45, %s7680_s10  ;;  %3372 = vrot.lane.b32.xlu0 %v2946_v45, %s6706_s15  ;;  %s7752_s15 = sld [smem:[#allocation23_spill]] }
 0xcc4   : > { %v5698_v40 = vld [vmem:[%s7751_s23] ss:$0 sm:$0xff]  ;;  %s7754_s23 = smov 16  }
 0xcc6   : > { %3370 = vrot.lane.b32.xlu1 %v2946_v45, %s7748_s18  ;;  %3538 = vrot.lane.b32.xlu0 %v2946_v45, %s7749_s11  ;;  %s7753_s11 = smov 8  }
 0xcca   : > { %3536 = vrot.lane.b32.xlu1 %v2946_v45, %s7678_s16  ;;  %2959 = vrot.lane.b32.xlu0 %v2868_v24, %s7750_s3 }
 0xcce   : > { %2957 = vrot.lane.b32.xlu1 %v2867_v26, %s7750_s3  ;;  %2955 = vrot.lane.b32.xlu0 %v2866_v27, %s7750_s3 }
 0xcd2   : > { %2953 = vrot.lane.b32.xlu1 %v2865_v28, %s7750_s3 }
 0xd30   : > { %v3206_v47 = vpop.permute.xlu1 %3205  ;;  %v3043_v32 = vpop.permute.xlu0 %3042 }
 0xd31   : > { %6109 = vmatpush3.xpose.msk.msra.mxu1 %vm1658_vm2, %v3043_v32 }
 0xd32   : > { %6118 = vmatprep.subr.mxu1 %v6713_v2 }
 0xd34   : > { %v3204_v48 = vpop.permute.xlu1 %3203  ;;  %v3373_v49 = vpop.permute.xlu0 %3372  ;;  %6111 = vmatmul.mubr.msk.f32.vlgmr.msra.gmra.mxu1 %vm1658_vm2, %v2946_v45 }
 0xd35   : > { %6119 = vmatpush3.xpose.msk.msra.mxu1 %vm1658_vm2, %v3206_v47  ;;  %6120 = vmatprep.mubr.msk.f32.mxu1 %vm6714_vm5, %v6713_v2 }
 0xd36   : > { %6128 = vmatprep.subr.mxu1 %v6713_v2 }
 0xd38   : > { %v3371_v50 = vpop.permute.xlu1 %3370  ;;  %v3539_v31 = vpop.permute.xlu0 %3538  ;;  %6121 = vmatmul.mubr.msk.f32.vlgmr.msra.gmra.mxu1 %vm1658_vm2, %v3204_v48 }
 0xd39   : > { %6129 = vmatpush3.xpose.msk.msra.mxu1 %vm1658_vm2, %v3373_v49  ;;  %6130 = vmatprep.mubr.msk.f32.mxu1 %vm6714_vm5, %v6713_v2 }
 0xd3a   : > { %6138 = vmatprep.subr.mxu1 %v6713_v2 }
 0xd3c   : > { %v3537_v51 = vpop.permute.xlu1 %3536  ;;  %6131 = vmatmul.mubr.msk.f32.vlgmr.msra.gmra.mxu1 %vm1658_vm2, %v3371_v50  ;;  %v2960_v52 = vpop.permute.xlu0 %2959 }
 0xd3d   : > { %6139 = vmatpush3.xpose.msk.msra.mxu1 %vm1658_vm2, %v3539_v31  ;;  %6140 = vmatprep.mubr.msk.f32.mxu1 %vm6714_vm5, %v6713_v2 }
 0xd3e   : > { %6098 = vmatpush3.msra.mxu0 %v2960_v52  ;;  %6148 = vmatprep.subr.mxu1 %v6713_v2 }
 0xd3f   : > { %6099 = vmatprep.subr.mxu0 %v6713_v2 }
 0xd40   : > { %6141 = vmatmul.mubr.msk.f32.vlgmr.msra.gmra.mxu1 %vm1658_vm2, %v3537_v51  ;;  %v2958_v53 = vpop.permute.xlu1 %2957  ;;  %v2956_v54 = vpop.permute.xlu0 %2955 }
 0xd41   : > { %6100 = vmatpush3.msra.mxu0 %v2958_v53  ;;  %6156 = vmatprep.mubr.msk.f32.mxu1 %vm6714_vm5, %v6713_v2 }
 0xd42   : > { %6101 = vmatprep.subr.mxu0 %v6713_v2 }
 0xd43   : > { %6102 = vmatpush3.msra.mxu0 %v2956_v54 }
 0xd44   : > { %v2954_v55 = vpop.permute.xlu1 %2953  ;;  %6103 = vmatprep.subr.mxu0 %v6713_v2 }
 0xd45   : > { %6104 = vmatpush3.msra.mxu0 %v2954_v55 }
 0xd46   : > { %6106 = vmatmul.mubr.f32.vlgmr.msra.gmra.mxu0 %v6713_v2  ;;  %6113 = vmatprep.subr.mxu0 %v6713_v2 }
 0xd47   : > { %6115 = vmatprep.mubr.msk.f32.mxu0 %vm6714_vm5, %v6713_v2 }
 0xd7b   : > { %v6085_v57 = vpop.f32.mrf.mxu1 }
 0xd7c   : > { %v2814_v41 = vadd.f32 %v6085_v57, %v5698_v40  ;;  %v3720_v57 = vld [vmem:[%s7752_s15 + $0x18] sm:$0xff] }
 0xd7d   : > { %v7302_v59 = vpop.f32.mrf.mxu1  ;;  %6149 = vmatpush3.msra.mxu1 %v3720_v57 }
 0xd7e   : > { %v7320_v42 = vadd.f32 %v2814_v41, %v7227_v22  ;;  %6150 = vmatprep.subr.mxu1 %v6713_v2  ;;  %v5702_v41 = vld [vmem:[%s7760_s6] ss:$0 sm:$0xff]  ;;  %s7762_s6 = sld [smem:[#allocation25_spill]] }
 0xdf4   : > { %v3114_v60 = vpop.f32.mrf.mxu1 }
 0xdf5   : > { %v3118_v25 = vmul.f32 0.35355338, %v3114_v60  ;;  %v3719_v60 = vld [vmem:[%s7752_s15 + $0x10] sm:$0xff] }
 0xdf6   : > { %v6112_v23 = vpop.f32.mrf.mxu1  ;;  %6151 = vmatpush3.msra.mxu1 %v3719_v60 }
 0xdf7   : > { %v3119_v14 = vsel %vm1658_vm2, %v3118_v25, -inf  ;;  %6152 = vmatprep.subr.mxu1 %v6713_v2 }
 0xdf8   : > { %3120 = vmax.xlane.f32.xlu0 %v3119_v14  ;;  %v3277_v61 = vpop.f32.mrf.mxu1  ;;  %v3717_v14 = vld [vmem:[%s7752_s15] sm:$0xff] }
 0xdf9   : > { %v3281_v18 = vmul.f32 0.35355338, %v3277_v61 }
 0xdfa   : > { %v6122_v62 = vpop.f32.mrf.mxu1 }
 0xdfb   : > { %v3282_v63 = vsel %vm1658_vm2, %v3281_v18, -inf }
 0xdfc   : > { %3283 = vmax.xlane.f32.xlu1 %v3282_v63  ;;  %v3444_v0 = vpop.f32.mrf.mxu1 }
 0xdfd   : > { %v3448_v1 = vmul.f32 0.35355338, %v3444_v0 }
 0xdfe   : > { %v6132_v3 = vpop.f32.mrf.mxu1 }
 0xdff   : > { %v3449_v4 = vsel %vm1658_vm2, %v3448_v1, -inf }
 0xe00   : > { %3450 = vmax.xlane.f32.xlu0 %v3449_v4  ;;  %v3610_v5 = vpop.f32.mrf.mxu1  ;;  %v2809_v4 = vadd.f32 %v5698_v40, %v7302_v59 }
 0xe01   : > { %v3614_v6 = vmul.f32 0.35355338, %v3610_v5 }
 0xe02   : > { %v6142_v7 = vpop.f32.mrf.mxu1  ;;  %v2817_v5 = vadd.f32 %v2809_v4, %v7225_v56 }
 0xe03   : > { %v3615_v8 = vsel %vm1658_vm2, %v3614_v6, -inf }
 0xe04   : > { %3616 = vmax.xlane.f32.xlu0 %v3615_v8 }
 0xe06   : > { %v3037_v9 = vpop.f32.mrf.mxu0 }
 0xe08   : > { %v6107_v10 = vpop.f32.mrf.mxu0 }
 0xe0d   : > { %2965 = vrot.lane.b32.xlu1 %v7257_v43, %s7750_s3  ;;  %v2824_v43 = vsel %vm1470_vm1, %v7320_v42, 0.0 }
 0xe81   : > { %v3121_v11 = vpop.xlane.xlu0 %3120 }
 0xe82   : > { %v3122_v12 = vsub.f32 %v3118_v25, %v3121_v11  ;;  %v3718_v25 = vld [vmem:[%s7752_s15 + $0x8] sm:$0xff] }
 0xe83   : > { %6153 = vmatpush3.msra.mxu1 %v3718_v25 }
 0xe84   : > { %v3123_v13 = vmul.f32 1.442695, %v3122_v12  ;;  %6154 = vmatprep.subr.mxu1 %v6713_v2 }
 0xe85   : > { %v3284_v15 = vpop.xlane.xlu1 %3283  ;;  %6155 = vmatpush3.msra.mxu1 %v3717_v14 }
 0xe86   : > { %6486 = vpow2.f32 %v3123_v13  ;;  %v3285_v16 = vsub.f32 %v3281_v18, %v3284_v15 }
 0xe88   : > { %v3286_v17 = vmul.f32 1.442695, %v3285_v16 }
 0xe89   : > { %v3451_v19 = vpop.xlane.xlu0 %3450  ;;  %v2966_v58 = vpop.permute.xlu1 %2965 }
 0xe8a   : > { %6488 = vpow2.f32 %v3286_v17  ;;  %v3452_v20 = vsub.f32 %v3448_v1, %v3451_v19  ;;  %v3038_v21 = vadd.f32 %v3037_v9, %v2966_v58 }
 0xe8c   : > { %v3453_v24 = vmul.f32 1.442695, %v3452_v20  ;;  %3294 = vrot.lane.b32.xlu1 %v3038_v21, %s7680_s10  ;;  %6114 = vmatpush3.msra.mxu0 %v3038_v21  ;;  %s7756_s10 = sld [smem:[#allocation27_spill]] }
 0xe8d   : > { %v3617_v26 = vpop.xlane.xlu0 %3616  ;;  %6123 = vmatprep.subr.mxu0 %v6713_v2 }
 0xe8e   : > { %6490 = vpow2.f32 %v3453_v24  ;;  %v3618_v27 = vsub.f32 %v3614_v6, %v3617_v26  ;;  %v2821_v6 = vsel %vm1470_vm1, %v2817_v5, 0.0 }
 0xe90   : > { %v3619_v28 = vmul.f32 1.442695, %v3618_v27  ;;  %3626 = vrot.lane.b32.xlu1 %v3038_v21, %s7678_s16  ;;  %s7755_s16 = smov 24  }
 0xe92   : > { %6492 = vpow2.f32 %v3619_v28  ;;  %v3837_v17 = vld [vmem:[%s7756_s10 + $0x18] sm:$0xff]  ;;  %v3836_v19 = vld [vmem:[%s7756_s10 + $0x10] sm:$0xff] }
 0xe93   : > { %v6487_v30 = vpop.eup %6486 }
 0xe94   : > { %v3125_v33 = vsel %vm1658_vm2, %v6487_v30, 0.0 }
 0xe95   : > { %3126 = vadd.xlane.f32.xlu0 %v3125_v33 }
 0xe97   : > { %v6489_v34 = vpop.eup %6488 }
 0xe98   : > { %v3288_v35 = vsel %vm1658_vm2, %v6489_v34, 0.0 }
 0xe99   : > { %3289 = vadd.xlane.f32.xlu0 %v3288_v35 }
 0xe9b   : > { %v6491_v36 = vpop.eup %6490 }
 0xe9c   : > { %v3455_v37 = vsel %vm1658_vm2, %v6491_v36, 0.0 }
 0xe9d   : > { %3456 = vadd.xlane.f32.xlu0 %v3455_v37 }
 0xe9f   : > { %v6493_v38 = vpop.eup %6492 }
 0xea0   : > { %v3621_v39 = vsel %vm1658_vm2, %v6493_v38, 0.0 }
 0xea1   : > { %3622 = vadd.xlane.f32.xlu0 %v3621_v39  ;;  %v5701_v39 = vld [vmem:[%s7759_s5] ss:$0 sm:$0xff]  ;;  %s7761_s5 = sld [smem:[#allocation28_spill]] }
 0xeb7   : > { %3460 = vrot.lane.b32.xlu0 %v3038_v21, %s7748_s18  ;;  %v5717_v21 = vld [vmem:[%s7757_s26] ss:$0 sm:$0xff]  ;;  %s7764_s26 = smov 120  }
 0xed6   : > { %2825 = vadd.xlane.f32.xlu0 %v2824_v43 }
 0xefe   : > { %v3295_v49 = vpop.permute.xlu1 %3294 }
 0xf02   : > { %v3627_v53 = vpop.permute.xlu1 %3626 }
 0xf1e   : > { %v3127_v44 = vpop.xlane.xlu0 %3126 }
 0xf1f   : > { %6494 = vrcp.f32 %v3127_v44  ;;  %v6532_v44 = vld [vmem:[%s6739_s17] sm:$0xff] }
 0xf22   : > { %v3290_v45 = vpop.xlane.xlu0 %3289 }
 0xf23   : > { %6496 = vrcp.f32 %v3290_v45 }
 0xf26   : > { %v3457_v46 = vpop.xlane.xlu0 %3456 }
 0xf27   : > { %6498 = vrcp.f32 %v3457_v46  ;;  %v3835_v46 = vld [vmem:[%s7756_s10 + $0x8] sm:$0xff] }
 0xf2a   : > { %v3623_v47 = vpop.xlane.xlu0 %3622 }
 0xf2b   : > { %6500 = vrcp.f32 %v3623_v47  ;;  %v3834_v47 = vld [vmem:[%s7756_s10] sm:$0xff]  ;;  %s6590_s10 = sshll.u32 %s6715_s9, 4  ;;  %s6591_s10 = int_to_ptr.vmem [resolvable:$false] %s6590_s10 }
 0xf2c   : > { %v6495_v32 = vpop.eup %6494  ;;  %s6592_s12 = scalar_lea.vmem %s6591_s10, 256 }
 0xf2d   : > { %v3129_v48 = vmul.f32 %v6495_v32, %v6487_v30 }
 0xf2e   : > { %v3461_v22 = vpop.permute.xlu0 %3460 }
 0xf2f   : > { %6116 = vmatmul.mubr.msk.f32.vlgmr.msra.gmra.mxu0 %vm1658_vm2, %v3129_v48 }
 0xf30   : > { %v6497_v50 = vpop.eup %6496  ;;  %6124 = vmatpush3.msra.mxu0 %v3295_v49  ;;  %6125 = vmatprep.mubr.msk.f32.mxu0 %vm6714_vm5, %v6713_v2 }
 0xf31   : > { %6133 = vmatprep.subr.mxu0 %v6713_v2  ;;  %v3292_v31 = vmul.f32 %v6497_v50, %v6489_v34 }
 0xf33   : > { %6126 = vmatmul.mubr.msk.f32.vlgmr.msra.gmra.mxu0 %vm1658_vm2, %v3292_v31 }
 0xf34   : > { %v6499_v51 = vpop.eup %6498  ;;  %6134 = vmatpush3.msra.mxu0 %v3461_v22  ;;  %6135 = vmatprep.mubr.msk.f32.mxu0 %vm6714_vm5, %v6713_v2 }
 0xf35   : > { %6143 = vmatprep.subr.mxu0 %v6713_v2  ;;  %v3459_v52 = vmul.f32 %v6499_v51, %v6491_v36 }
 0xf37   : > { %6136 = vmatmul.mubr.msk.f32.vlgmr.msra.gmra.mxu0 %vm1658_vm2, %v3459_v52 }
 0xf38   : > { %v6501_v54 = vpop.eup %6500  ;;  %6144 = vmatpush3.msra.mxu0 %v3627_v53  ;;  %6145 = vmatprep.mubr.msk.f32.mxu0 %vm6714_vm5, %v6713_v2  ;;  %v7383_v53 = vld [vmem:[%s7761_s5] ss:$0 sm:$0xff]  ;;  %s7770_s5 = sld [smem:[#allocation31_spill]] }
 0xf39   : > { %v3625_v55 = vmul.f32 %v6501_v54, %v6493_v38  ;;  %6159 = vmatprep.subr.mxu0 %v6713_v2 }
 0xf3b   : > { %6146 = vmatmul.mubr.msk.f32.vlgmr.msra.gmra.mxu0 %vm1658_vm2, %v3625_v55 }
 0xf3c   : > { %6167 = vmatprep.mubr.msk.f32.mxu0 %vm6714_vm5, %v6713_v2  ;;  %6160 = vmatpush3.msra.mxu0 %v3837_v17 }
 0xf3d   : > { %6161 = vmatprep.subr.mxu0 %v6713_v2 }
 0xf3e   : > { %6162 = vmatpush3.msra.mxu0 %v3836_v19 }
 0xf3f   : > { %6163 = vmatprep.subr.mxu0 %v6713_v2 }
 0xf40   : > { %6164 = vmatpush3.msra.mxu0 %v3835_v46 }
 0xf41   : > { %6165 = vmatprep.subr.mxu0 %v6713_v2 }
 0xf42   : > { %6166 = vmatpush3.msra.mxu0 %v3834_v47 }
 0xf5f   : > { %v2826_v58 = vpop.xlane.xlu0 %2825 }
 0xf60   : > { %v2828_v20 = vmul.f32 0.03125, %v2826_v58 }
 0xf62   : > { %v2830_v24 = vsub.f32 %v7320_v42, %v2828_v20 }
 0xf64   : > { %v2832_v33 = vmul.f32 %v2830_v24, %v2830_v24 }
 0xf66   : > { %v2836_v34 = vsel %vm1470_vm1, %v2832_v33, 0.0 }
 0xfef   : > { %v3199_v23 = vpop.f32.mrf.mxu0 }
 0xff1   : > { %v6117_v61 = vpop.f32.mrf.mxu0 }
 0xff3   : > { %v3366_v18 = vpop.f32.mrf.mxu0 }
 0xff4   : > { %3703 = vrot.lane.b32.xlu1 %v3366_v18, %s7753_s11 }
 0xff5   : > { %v6127_v62 = vpop.f32.mrf.mxu0 }
 0xff7   : > { %v3532_v63 = vpop.f32.mrf.mxu0 }
 0xff8   : > { %3707 = vrot.lane.b32.xlu1 %v3532_v63, %s7754_s23 }
 0xff9   : > { %v6137_v0 = vpop.f32.mrf.mxu0 }
 0xffb   : > { %v3698_v1 = vpop.f32.mrf.mxu0 }
 0xffc   : > { %3711 = vrot.lane.b32.xlu1 %v3698_v1, %s7755_s16  ;;  %v6533_v1 = vld [vmem:[%s6739_s17 + $0x8] sm:$0xff] }
 0xffd   : > { %v6147_v3 = vpop.f32.mrf.mxu0 }
0x1020   : > { %2822 = vadd.xlane.f32.xlu1 %v2821_v6  ;;  %v5719_v6 = vld [vmem:[%s7762_s6] ss:$0 sm:$0xff]  ;;  %s7771_s6 = sld [smem:[#allocation32_spill]] }
0x1066   : > { %v3704_v7 = vpop.permute.xlu1 %3703 }
0x1067   : > { %v3714_v9 = vsel %vm1658_vm2, %v3199_v23, %v3704_v7 }
0x106a   : > { %v3708_v8 = vpop.permute.xlu1 %3707 }
0x106b   : > { %v3715_v10 = vsel %vm1744_vm3, %v3714_v9, %v3708_v8 }
0x106e   : > { %v3712_v11 = vpop.permute.xlu1 %3711 }
0x106f   : > { %v3716_v12 = vsel %vm2484_vm4, %v3715_v10, %v3712_v11 }
0x1070   : > { %6157 = vmatmul.mubr.msk.f32.vlgmr.msra.gmra.mxu1 %vm1470_vm1, %v3716_v12 }
0x10a9   : > { %v2823_v59 = vpop.xlane.xlu1 %2822 }
0x10aa   : > { %v2827_v13 = vmul.f32 0.03125, %v2823_v59 }
0x10ac   : > { %v2829_v56 = vsub.f32 %v2817_v5, %v2827_v13 }
0x10ae   : > { %v2831_v15 = vmul.f32 %v2829_v56, %v2829_v56 }
0x10b0   : > { %v2833_v16 = vsel %vm1470_vm1, %v2831_v15, 0.0 }
0x10b1   : > { %2834 = vadd.xlane.f32.xlu1 %v2833_v16 }
0x10c2   : > { %3926 = vrot.lane.b32.xlu1 %v3836_v19, %s7758_s4 }
0x1130   : > { %v3797_v26 = vpop.f32.mrf.mxu1 }
0x1131   : > { %v3798_v27 = vadd.f32 %v5717_v21, %v3797_v26 }
0x1132   : > { %v6158_v28 = vpop.f32.mrf.mxu1 }
0x1133   : > { %v3804_v30 = vsel %vm1470_vm1, %v3798_v27, 0.0 }
0x1134   : > { %3805 = vadd.xlane.f32.xlu0 %v3804_v30 }
0x1138   : > { %2837 = vadd.xlane.f32.xlu0 %v2836_v34 }
0x113a   : > { %v2835_v35 = vpop.xlane.xlu1 %2834 }
0x113b   : > { %v2839_v36 = vmul.f32 0.03125, %v2835_v35 }
0x113d   : > { %v2841_v37 = vadd.f32 1e-05, %v2839_v36 }
0x113e   : > { %v3927_v52 = vpop.permute.xlu1 %3926 }
0x113f   : > { %6502 = vrsqrt.f32 %v2841_v37 }
0x114c   : > { %v6503_v38 = vpop.eup %6502 }
0x114d   : > { %v2845_v40 = vmul.f32 %v6503_v38, %v2829_v56 }
0x114e   : > { %3928 = vrot.lane.b32.xlu0 %v3837_v17, %s7758_s4 }
0x114f   : > { %v2853_v42 = vmul.f32 %v5701_v39, %v2845_v40 }
0x1151   : > { %v7369_v43 = vadd.f32 %v5702_v41, %v2853_v42 }
0x1152   : > { %3922 = vrot.lane.b32.xlu0 %v3834_v47, %s7758_s4 }
0x1153   : > { %v3832_v45 = vadd.f32 %v6532_v44, %v7369_v43 }
0x1155   : > { %6178 = vmatprep.mubr.msk.f32.mxu1 %vm1470_vm1, %v3832_v45 }
0x1156   : > { %4024 = vrot.lane.b32.xlu0 %v3837_v17, %s7750_s3 }
0x115a   : > { %4020 = vrot.lane.b32.xlu0 %v3835_v46, %s7750_s3 }
0x11bd   : > { %v3806_v32 = vpop.xlane.xlu0 %3805 }
0x11be   : > { %v3807_v48 = vmul.f32 0.03125, %v3806_v32 }
0x11c0   : > { %v3808_v49 = vsub.f32 %v3798_v27, %v3807_v48 }
0x11c1   : > { %v2838_v50 = vpop.xlane.xlu0 %2837 }
0x11c2   : > { %v3809_v22 = vmul.f32 %v3808_v49, %v3808_v49  ;;  %v2840_v57 = vmul.f32 0.03125, %v2838_v50 }
0x11c4   : > { %v3810_v31 = vsel %vm1470_vm1, %v3809_v22, 0.0  ;;  %v2842_v60 = vadd.f32 1e-05, %v2840_v57 }
0x11c5   : > { %3811 = vadd.xlane.f32.xlu1 %v3810_v31  ;;  %v3929_v51 = vpop.permute.xlu0 %3928 }
0x11c6   : > { %6170 = vmatprep.subr.mxu1 %v3929_v51  ;;  %6504 = vrsqrt.f32 %v2842_v60 }
0x11c7   : > { %6171 = vmatpush3.msra.mxu1 %v3929_v51 }
0x11c8   : > { %6172 = vmatprep.subr.mxu1 %v3927_v52 }
0x11c9   : > { %6173 = vmatpush3.msra.mxu1 %v3927_v52  ;;  %v3923_v54 = vpop.permute.xlu0 %3922 }
0x11cd   : > { %v4025_v55 = vpop.permute.xlu0 %4024 }
0x11ce   : > { %6181 = vmatprep.subr.mxu0 %v4025_v55 }
0x11d1   : > { %v4021_v59 = vpop.permute.xlu0 %4020 }
0x11d3   : > { %v6505_v25 = vpop.eup %6504 }
0x11d4   : > { %v2846_v23 = vmul.f32 %v6505_v25, %v2830_v24 }
0x11d6   : > { %3924 = vrot.lane.b32.xlu1 %v3835_v46, %s7758_s4  ;;  %v2854_v14 = vmul.f32 %v5701_v39, %v2846_v23 }
0x11d8   : > { %v2862_v63 = vadd.f32 %v5702_v41, %v2854_v14 }
0x11da   : > { %3934 = vrot.lane.b32.xlu1 %v7383_v53, %s7758_s4  ;;  %s7763_s4 = sld [smem:[#allocation26_spill]]  ;;  %v3833_v3 = vadd.f32 %v6533_v1, %v2862_v63 }
0x11de   : > { %4022 = vrot.lane.b32.xlu1 %v3836_v19, %s7750_s3 }
0x11e0   : > { %v5720_v8 = vld [vmem:[%s7763_s4] ss:$0 sm:$0xff]  ;;  %s7772_s4 = sld [smem:[#allocation34_spill]] }
0x11e2   : > { %4018 = vrot.lane.b32.xlu1 %v3834_v47, %s7750_s3 }
0x124e   : > { %v3812_v61 = vpop.xlane.xlu1 %3811 }
0x124f   : > { %v3813_v18 = vmul.f32 0.03125, %v3812_v61 }
0x1251   : > { %v3814_v62 = vadd.f32 1e-05, %v3813_v18 }
0x1252   : > { %v3925_v0 = vpop.permute.xlu1 %3924 }
0x1253   : > { %6506 = vrsqrt.f32 %v3814_v62  ;;  %6174 = vmatprep.subr.mxu1 %v3925_v0 }
0x1254   : > { %6175 = vmatpush3.msra.mxu1 %v3925_v0 }
0x1255   : > { %6176 = vmatprep.subr.mxu1 %v3923_v54 }
0x1256   : > { %6177 = vmatpush3.msra.mxu1 %v3923_v54  ;;  %v3935_v5 = vpop.permute.xlu1 %3934 }
0x1257   : > { %6179 = vmatmul.mubr.msk.f32.vlgmr.msra.gmra.mxu1 %vm1470_vm1, %v3833_v3  ;;  %6192 = vmatprep.subr.mxu1 %v6713_v2 }
0x1258   : > { %6196 = vmatprep.mubr.msk.f32.mxu1 %vm6714_vm5, %v6713_v2 }
0x125a   : > { %v4023_v11 = vpop.permute.xlu1 %4022 }
0x125e   : > { %v4019_v13 = vpop.permute.xlu1 %4018 }
0x1260   : > { %v6507_v4 = vpop.eup %6506 }
0x1261   : > { %v3816_v7 = vmul.f32 %v6507_v4, %v3808_v49 }
0x1263   : > { %v3823_v9 = vmul.f32 %v5719_v6, %v3816_v7 }
0x1265   : > { %v7396_v10 = vadd.f32 %v5720_v8, %v3823_v9 }
0x1267   : > { %v3831_v12 = vadd.f32 %v7396_v10, %v7242_v29 }
0x1269   : > { %6168 = vmatmul.mubr.msk.f32.vlgmr.msra.gmra.mxu0 %vm1470_vm1, %v3831_v12 }
0x126a   : > { %6182 = vmatpush3.msra.mxu0 %v4025_v55  ;;  %6189 = vmatprep.mubr.msk.f32.mxu0 %vm1470_vm1, %v7369_v43 }
0x126b   : > { %6183 = vmatprep.subr.mxu0 %v4023_v11 }
0x126c   : > { %6184 = vmatpush3.msra.mxu0 %v4023_v11 }
0x126d   : > { %6185 = vmatprep.subr.mxu0 %v4021_v59 }
0x126e   : > { %6186 = vmatpush3.msra.mxu0 %v4021_v59 }
0x126f   : > { %6187 = vmatprep.subr.mxu0 %v4019_v13 }
0x1270   : > { %6188 = vmatpush3.msra.mxu0 %v4019_v13 }
0x1271   : > { %6190 = vmatmul.mubr.msk.f32.vlgmr.msra.gmra.mxu0 %vm1470_vm1, %v2862_v63  ;;  %6199 = vmatprep.subr.mxu0 %v6713_v2 }
0x1272   : > { %6203 = vmatprep.mubr.msk.f32.mxu0 %vm6714_vm5, %v6713_v2 }
0x1317   : > { %v6180_v29 = vpop.f32.mrf.mxu1 }
0x1318   : > { %v7407_v56 = vadd.f32 %v6180_v29, %v3935_v5 }
0x1319   : > { %v4009_v15 = vpop.f32.mrf.mxu1 }
0x131a   : > { %4282 = vrot.lane.b32.xlu1 %v7407_v56, %s7764_s26  ;;  %6193 = vmatpush3.xpose.msk.msra.mxu1 %vm1658_vm2, %v7407_v56  ;;  %v7414_v16 = vadd.f32 %v4009_v15, %v3935_v5 }
0x131b   : > { %6194 = vmatprep.subr.mxu1 %v6713_v2 }
0x131e   : > { %6195 = vmatpush3.xpose.msk.msra.mxu1 %vm1658_vm2, %v7414_v16 }
0x131f   : > { %6213 = vmatprep.subr.mxu1 %v6713_v2 }
0x1329   : > { %v3914_v17 = vpop.f32.mrf.mxu0 }
0x132a   : > { %v7420_v19 = vadd.f32 %v7383_v53, %v3914_v17 }
0x132b   : > { %v6169_v58 = vpop.f32.mrf.mxu0 }
0x132c   : > { %6197 = vmatmul.mubr.msk.f32.vlgmr.msra.gmra.mxu1 %vm1658_vm2, %v7420_v19 }
0x132d   : > { %6217 = vmatprep.mubr.msk.f32.mxu1 %vm6714_vm5, %v6713_v2 }
0x1331   : > { %v6191_v30 = vpop.f32.mrf.mxu0 }
0x1333   : > { %v4105_v36 = vpop.f32.mrf.mxu0 }
0x138c   : > { %v4283_v40 = vpop.permute.xlu1 %4282 }
0x13ec   : > { %v4189_v20 = vpop.f32.mrf.mxu1 }
0x13ed   : > { %v4193_v21 = vmul.f32 0.35355338, %v4189_v20 }
0x13ee   : > { %v6198_v24 = vpop.f32.mrf.mxu1 }
0x13ef   : > { %v4194_v26 = vsel %vm1744_vm3, %v4193_v21, -inf }
0x13f0   : > { %4195 = vmax.xlane.f32.xlu0 %v4194_v26 }
0x1406   : > { %4030 = vrot.lane.b32.xlu0 %v7383_v53, %s7750_s3  ;;  %s7765_s3 = smov 104  }
0x140a   : > { %4280 = vrot.lane.b32.xlu0 %v7414_v16, %s7764_s26 }
0x1479   : > { %v4196_v27 = vpop.xlane.xlu0 %4195 }
0x147a   : > { %v4197_v28 = vsub.f32 %v4193_v21, %v4196_v27 }
0x147c   : > { %v4198_v33 = vmul.f32 1.442695, %v4197_v28 }
0x147d   : > { %v4031_v34 = vpop.permute.xlu0 %4030 }
0x147e   : > { %6508 = vpow2.f32 %v4198_v33  ;;  %v7431_v35 = vadd.f32 %v6191_v30, %v4031_v34  ;;  %v7433_v37 = vadd.f32 %v4105_v36, %v4031_v34 }
0x1480   : > { %6200 = vmatpush3.msra.mxu0 %v7431_v35 }
0x1481   : > { %6201 = vmatprep.subr.mxu0 %v6713_v2  ;;  %v4281_v44 = vpop.permute.xlu0 %4280 }
0x1482   : > { %6202 = vmatpush3.msra.mxu0 %v7433_v37 }
0x1483   : > { %6206 = vmatprep.subr.mxu0 %v6713_v2 }
0x148b   : > { %v6509_v38 = vpop.eup %6508 }
0x148c   : > { %v4200_v39 = vsel %vm1744_vm3, %v6509_v38, 0.0 }
0x148d   : > { %4201 = vadd.xlane.f32.xlu1 %v4200_v39 }
0x149e   : > { %4278 = vrot.lane.b32.xlu1 %v7420_v19, %s7764_s26 }
0x14a2   : > { %4374 = vrot.lane.b32.xlu1 %v7433_v37, %s7764_s26 }
0x1516   : > { %v4202_v41 = vpop.xlane.xlu1 %4201 }
0x1517   : > { %6510 = vrcp.f32 %v4202_v41 }
0x151a   : > { %v4279_v45 = vpop.permute.xlu1 %4278 }
0x151e   : > { %v4375_v53 = vpop.permute.xlu1 %4374 }
0x1524   : > { %v6511_v42 = vpop.eup %6510 }
0x1525   : > { %v4204_v43 = vmul.f32 %v6511_v42, %v6509_v38 }
0x1527   : > { %6204 = vmatmul.mubr.msk.f32.vlgmr.msra.gmra.mxu0 %vm1744_vm3, %v4204_v43 }
0x1528   : > { %6207 = vmatpush3.xpose.msk.msra.mxu0 %vm1658_vm2, %v4283_v40  ;;  %6210 = vmatprep.mubr.msk.f32.mxu0 %vm6714_vm5, %v6713_v2 }
0x1529   : > { %6208 = vmatprep.subr.mxu0 %v6713_v2 }
0x152c   : > { %6209 = vmatpush3.xpose.msk.msra.mxu0 %vm1658_vm2, %v4281_v44 }
0x152d   : > { %6227 = vmatprep.subr.mxu0 %v6713_v2 }
0x152f   : > { %6211 = vmatmul.mubr.msk.f32.vlgmr.msra.gmra.mxu0 %vm1658_vm2, %v4279_v45 }
0x1530   : > { %6231 = vmatprep.mubr.msk.f32.mxu0 %vm6714_vm5, %v6713_v2 }
0x15e7   : > { %v7454_v46 = vpop.f32.mrf.mxu0 }
0x15e9   : > { %v6205_v47 = vpop.f32.mrf.mxu0 }
0x15ef   : > { %v4356_v32 = vpop.f32.mrf.mxu0 }
0x15f0   : > { %v4360_v48 = vmul.f32 0.35355338, %v4356_v32 }
0x15f1   : > { %v6212_v49 = vpop.f32.mrf.mxu0 }
0x15f2   : > { %v4361_v50 = vsel %vm1744_vm3, %v4360_v48, -inf }
0x15f3   : > { %4362 = vmax.xlane.f32.xlu0 %v4361_v50 }
0x1609   : > { %4376 = vrot.lane.b32.xlu0 %v7431_v35, %s7764_s26  ;;  %s7773_s26 = sld [smem:[#allocation36_spill]] }
0x160d   : > { %4457 = vrot.lane.b32.xlu0 %v7407_v56, %s7748_s18 }
0x1611   : > { %4453 = vrot.lane.b32.xlu0 %v7420_v19, %s7748_s18 }
0x167c   : > { %v4363_v22 = vpop.xlane.xlu0 %4362 }
0x167d   : > { %v4364_v31 = vsub.f32 %v4360_v48, %v4363_v22 }
0x167f   : > { %v4365_v51 = vmul.f32 1.442695, %v4364_v31 }
0x1680   : > { %v4377_v52 = vpop.permute.xlu0 %4376 }
0x1681   : > { %6512 = vpow2.f32 %v4365_v51  ;;  %6214 = vmatpush3.msra.mxu1 %v4377_v52 }
0x1682   : > { %6215 = vmatprep.subr.mxu1 %v6713_v2 }
0x1683   : > { %6216 = vmatpush3.msra.mxu1 %v4375_v53 }
0x1684   : > { %6220 = vmatprep.subr.mxu1 %v6713_v2  ;;  %v4458_v23 = vpop.permute.xlu0 %4457 }
0x1688   : > { %v4454_v61 = vpop.permute.xlu0 %4453 }
0x168e   : > { %v6513_v54 = vpop.eup %6512 }
0x168f   : > { %v4367_v55 = vsel %vm1744_vm3, %v6513_v54, 0.0 }
0x1690   : > { %4368 = vadd.xlane.f32.xlu1 %v4367_v55 }
0x16a1   : > { %4455 = vrot.lane.b32.xlu1 %v7414_v16, %s7748_s18 }
0x1719   : > { %v4369_v57 = vpop.xlane.xlu1 %4368 }
0x171a   : > { %6514 = vrcp.f32 %v4369_v57 }
0x171d   : > { %v4456_v14 = vpop.permute.xlu1 %4455 }
0x1727   : > { %v6515_v60 = vpop.eup %6514 }
0x1728   : > { %v4371_v25 = vmul.f32 %v6515_v60, %v6513_v54 }
0x172a   : > { %6218 = vmatmul.mubr.msk.f32.vlgmr.msra.gmra.mxu1 %vm1744_vm3, %v4371_v25 }
0x172b   : > { %6221 = vmatpush3.xpose.msk.msra.mxu1 %vm1658_vm2, %v4458_v23  ;;  %6224 = vmatprep.mubr.msk.f32.mxu1 %vm6714_vm5, %v6713_v2 }
0x172c   : > { %6222 = vmatprep.subr.mxu1 %v6713_v2 }
0x172f   : > { %6223 = vmatpush3.xpose.msk.msra.mxu1 %vm1658_vm2, %v4456_v14 }
0x1730   : > { %6241 = vmatprep.subr.mxu1 %v6713_v2 }
0x1732   : > { %6225 = vmatmul.mubr.msk.f32.vlgmr.msra.gmra.mxu1 %vm1658_vm2, %v4454_v61 }
0x1733   : > { %6245 = vmatprep.mubr.msk.f32.mxu1 %vm6714_vm5, %v6713_v2 }
0x17ea   : > { %v4449_v18 = vpop.f32.mrf.mxu1 }
0x17ec   : > { %v6219_v62 = vpop.f32.mrf.mxu1 }
0x17f2   : > { %v4531_v63 = vpop.f32.mrf.mxu1 }
0x17f3   : > { %v4535_v0 = vmul.f32 0.35355338, %v4531_v63 }
0x17f4   : > { %v6226_v1 = vpop.f32.mrf.mxu1 }
0x17f5   : > { %v4536_v3 = vsel %vm1744_vm3, %v4535_v0, -inf }
0x17f6   : > { %4537 = vmax.xlane.f32.xlu1 %v4536_v3 }
0x1807   : > { %4547 = vrot.lane.b32.xlu1 %v7433_v37, %s7748_s18 }
0x180b   : > { %4630 = vrot.lane.b32.xlu1 %v7407_v56, %s7765_s3 }
0x180f   : > { %4626 = vrot.lane.b32.xlu1 %v7420_v19, %s7765_s3 }
0x187f   : > { %v4538_v4 = vpop.xlane.xlu1 %4537 }
0x1880   : > { %v4539_v5 = vsub.f32 %v4535_v0, %v4538_v4 }
0x1882   : > { %v4540_v6 = vmul.f32 1.442695, %v4539_v5 }
0x1883   : > { %v4548_v12 = vpop.permute.xlu1 %4547 }
0x1884   : > { %6516 = vpow2.f32 %v4540_v6  ;;  %v5745_v6 = vld [vmem:[%s7770_s5] ss:$0 sm:$0xff]  ;;  %s7776_s5 = sld [smem:[#allocation38_spill]] }
0x1887   : > { %v4631_v29 = vpop.permute.xlu1 %4630 }
0x188b   : > { %v4627_v15 = vpop.permute.xlu1 %4626 }
0x1891   : > { %v6517_v7 = vpop.eup %6516 }
0x1892   : > { %v4542_v8 = vsel %vm1744_vm3, %v6517_v7, 0.0 }
0x1893   : > { %4543 = vadd.xlane.f32.xlu0 %v4542_v8  ;;  %v5746_v8 = vld [vmem:[%s7771_s6] ss:$0 sm:$0xff]  ;;  %s7777_s6 = sld [smem:[#allocation41_spill]] }
0x18a9   : > { %4549 = vrot.lane.b32.xlu0 %v7431_v35, %s7748_s18  ;;  %s7766_s18 = sld [smem:[#allocation29_spill]] }
0x18ad   : > { %4628 = vrot.lane.b32.xlu0 %v7414_v16, %s7765_s3 }
0x18af   : > { %v4817_v39 = vld [vmem:[%s7766_s18 + $0x18] sm:$0xff]  ;;  %v4816_v40 = vld [vmem:[%s7766_s18 + $0x10] sm:$0xff]  ;;  %v4814_v41 = vld [vmem:[%s7766_s18] sm:$0xff] }
0x191c   : > { %v4544_v9 = vpop.xlane.xlu0 %4543 }
0x191d   : > { %6518 = vrcp.f32 %v4544_v9 }
0x1920   : > { %v4550_v11 = vpop.permute.xlu0 %4549 }
0x1921   : > { %6228 = vmatpush3.msra.mxu0 %v4550_v11 }
0x1922   : > { %6229 = vmatprep.subr.mxu0 %v6713_v2 }
0x1923   : > { %6230 = vmatpush3.msra.mxu0 %v4548_v12 }
0x1924   : > { %6234 = vmatprep.subr.mxu0 %v6713_v2  ;;  %v4629_v56 = vpop.permute.xlu0 %4628 }
0x192a   : > { %v6519_v59 = vpop.eup %6518 }
0x192b   : > { %v4546_v13 = vmul.f32 %v6519_v59, %v6517_v7 }
0x192d   : > { %6232 = vmatmul.mubr.msk.f32.vlgmr.msra.gmra.mxu0 %vm1744_vm3, %v4546_v13 }
0x192e   : > { %6235 = vmatpush3.xpose.msk.msra.mxu0 %vm1658_vm2, %v4631_v29  ;;  %6238 = vmatprep.mubr.msk.f32.mxu0 %vm6714_vm5, %v6713_v2  ;;  %v5747_v29 = vld [vmem:[%s7772_s4] ss:$0 sm:$0xff]  ;;  %s7778_s4 = sld [smem:[#allocation43_spill]] }
0x192f   : > { %6236 = vmatprep.subr.mxu0 %v6713_v2 }
0x1932   : > { %6237 = vmatpush3.xpose.msk.msra.mxu0 %vm1658_vm2, %v4629_v56 }
0x1933   : > { %6259 = vmatprep.subr.mxu0 %v6713_v2 }
0x1935   : > { %6239 = vmatmul.mubr.msk.f32.vlgmr.msra.gmra.mxu0 %vm1658_vm2, %v4627_v15 }
0x1936   : > { %6267 = vmatprep.mubr.msk.f32.mxu0 %vm6714_vm5, %v6713_v2 }
0x19ed   : > { %v4622_v16 = vpop.f32.mrf.mxu0 }
0x19ef   : > { %v6233_v17 = vpop.f32.mrf.mxu0 }
0x19f5   : > { %v4704_v19 = vpop.f32.mrf.mxu0 }
0x19f6   : > { %v4708_v58 = vmul.f32 0.35355338, %v4704_v19  ;;  %v5749_v19 = vld [vmem:[%s7773_s26] ss:$0 sm:$0xff]  ;;  %s7779_s26 = sld [smem:[#allocation40_spill]] }
0x19f7   : > { %v6240_v20 = vpop.f32.mrf.mxu0 }
0x19f8   : > { %v4709_v21 = vsel %vm1744_vm3, %v4708_v58, -inf }
0x19f9   : > { %4710 = vmax.xlane.f32.xlu0 %v4709_v21 }
0x1a0f   : > { %4722 = vrot.lane.b32.xlu0 %v7431_v35, %s7765_s3 }
0x1a13   : > { %4800 = vrot.lane.b32.xlu0 %v4449_v18, %s7753_s11  ;;  %s7767_s11 = sld [smem:[#allocation30_spill]] }
0x1a19   : > { %v5743_v50 = vld [vmem:[%s7767_s11] ss:$0 sm:$0xff]  ;;  %s7775_s11 = sld [smem:[#allocation37_spill]] }
0x1a82   : > { %v4711_v24 = vpop.xlane.xlu0 %4710 }
0x1a83   : > { %v4712_v26 = vsub.f32 %v4708_v58, %v4711_v24 }
0x1a85   : > { %v4713_v27 = vmul.f32 1.442695, %v4712_v26 }
0x1a86   : > { %v4723_v28 = vpop.permute.xlu0 %4722 }
0x1a87   : > { %6520 = vpow2.f32 %v4713_v27  ;;  %6242 = vmatpush3.msra.mxu1 %v4723_v28 }
0x1a88   : > { %6243 = vmatprep.subr.mxu1 %v6713_v2 }
0x1a8a   : > { %v4801_v44 = vpop.permute.xlu0 %4800 }
0x1a8b   : > { %v4811_v47 = vsel %vm1658_vm2, %v7454_v46, %v4801_v44 }
0x1a94   : > { %v6521_v30 = vpop.eup %6520 }
0x1a95   : > { %v4715_v33 = vsel %vm1744_vm3, %v6521_v30, 0.0 }
0x1a96   : > { %4716 = vadd.xlane.f32.xlu1 %v4715_v33 }
0x1aa7   : > { %4720 = vrot.lane.b32.xlu1 %v7433_v37, %s7765_s3  ;;  %v4815_v37 = vld [vmem:[%s7766_s18 + $0x8] sm:$0xff]  ;;  %s7774_s3 = sld [smem:[#allocation39_spill]] }
0x1aab   : > { %4804 = vrot.lane.b32.xlu1 %v4622_v16, %s7754_s23  ;;  %s7768_s23 = sld [smem:[#allocation33_spill]] }
0x1ab1   : > { %v4931_v25 = vld [vmem:[%s7768_s23 + $0x18] sm:$0xff]  ;;  %v4930_v23 = vld [vmem:[%s7768_s23 + $0x10] sm:$0xff]  ;;  %v4928_v14 = vld [vmem:[%s7768_s23] sm:$0xff] }
0x1ab2   : > { %6260 = vmatpush3.msra.mxu0 %v4931_v25 }
0x1ab3   : > { %6261 = vmatprep.subr.mxu0 %v6713_v2 }
0x1ab4   : > { %6262 = vmatpush3.msra.mxu0 %v4930_v23 }
0x1ab5   : > { %6263 = vmatprep.subr.mxu0 %v6713_v2 }
0x1b1f   : > { %v4717_v34 = vpop.xlane.xlu1 %4716 }
0x1b20   : > { %6522 = vrcp.f32 %v4717_v34 }
0x1b23   : > { %v4721_v35 = vpop.permute.xlu1 %4720 }
0x1b24   : > { %6244 = vmatpush3.msra.mxu1 %v4721_v35  ;;  %v5134_v35 = vld [vmem:[%s7774_s3 + $0x18] sm:$0xff] }
0x1b25   : > { %6248 = vmatprep.subr.mxu1 %v6713_v2 }
0x1b27   : > { %v4805_v45 = vpop.permute.xlu1 %4804 }
0x1b28   : > { %v4812_v32 = vsel %vm1744_vm3, %v4811_v47, %v4805_v45  ;;  %v5752_v45 = vld [vmem:[%s7776_s5] ss:$0 sm:$0xff]  ;;  %s1340_s5 = sand.u32 1, %s6646_s1  }
0x1b2d   : > { %v6523_v36 = vpop.eup %6522 }
0x1b2e   : > { %v4719_v38 = vmul.f32 %v6523_v36, %v6521_v30  ;;  %v5133_v36 = vld [vmem:[%s7774_s3 + $0x10] sm:$0xff] }
0x1b30   : > { %6246 = vmatmul.mubr.msk.f32.vlgmr.msra.gmra.mxu1 %vm1744_vm3, %v4719_v38  ;;  %v5132_v38 = vld [vmem:[%s7774_s3 + $0x8] sm:$0xff] }
0x1b31   : > { %6256 = vmatprep.mubr.msk.f32.mxu1 %vm6714_vm5, %v6713_v2  ;;  %6249 = vmatpush3.msra.mxu1 %v4817_v39  ;;  %v5131_v39 = vld [vmem:[%s7774_s3] sm:$0xff]  ;;  %s7607_s3 = sshll.u32 %s1340_s5, 3 }
0x1b32   : > { %6250 = vmatprep.subr.mxu1 %v6713_v2 }
0x1b33   : > { %6251 = vmatpush3.msra.mxu1 %v4816_v40 }
0x1b34   : > { %6252 = vmatprep.subr.mxu1 %v6713_v2 }
0x1b35   : > { %6253 = vmatpush3.msra.mxu1 %v4815_v37 }
0x1b36   : > { %6254 = vmatprep.subr.mxu1 %v6713_v2 }
0x1b37   : > { %6255 = vmatpush3.msra.mxu1 %v4814_v41 }
0x1b38   : > { %6270 = vmatprep.subr.mxu1 %v6713_v2 }
0x1bf0   : > { %v4795_v42 = vpop.f32.mrf.mxu1 }
0x1bf1   : > { %4808 = vrot.lane.b32.xlu0 %v4795_v42, %s7755_s16  ;;  %s7769_s16 = sld [smem:[#allocation35_spill]] }
0x1bf2   : > { %v6247_v43 = vpop.f32.mrf.mxu1 }
0x1bf3   : > { %v5751_v43 = vld [vmem:[%s7775_s11] ss:$0 sm:$0xff]  ;;  %s7780_s11 = sld [smem:[#allocation42_spill]] }
0x1bf7   : > { %v5020_v61 = vld [vmem:[%s7769_s16 + $0x38] sm:$0xff]  ;;  %v5019_v18 = vld [vmem:[%s7769_s16 + $0x30] sm:$0xff]  ;;  %v5018_v62 = vld [vmem:[%s7769_s16 + $0x28] sm:$0xff] }
0x1bf8   : > { %v5017_v63 = vld [vmem:[%s7769_s16 + $0x20] sm:$0xff]  ;;  %v5016_v0 = vld [vmem:[%s7769_s16 + $0x18] sm:$0xff]  ;;  %v5015_v12 = vld [vmem:[%s7769_s16 + $0x10] sm:$0xff] }
0x1bf9   : > { %v5014_v59 = vld [vmem:[%s7769_s16 + $0x8] sm:$0xff]  ;;  %v5013_v13 = vld [vmem:[%s7769_s16] sm:$0xff] }
0x1bfa   : > { %v5755_v25 = vld [vmem:[%s7780_s11] ss:$0 sm:$0xff] }
0x1c63   : > { %v4809_v48 = vpop.permute.xlu0 %4808 }
0x1c64   : > { %v4813_v49 = vsel %vm2484_vm4, %v4812_v32, %v4809_v48  ;;  %v5220_v48 = vld [vmem:[%s7777_s6 + $0x18] sm:$0xff] }
0x1c65   : > { %6257 = vmatmul.mubr.msk.f32.vlgmr.msra.gmra.mxu1 %vm1470_vm1, %v4813_v49  ;;  %v5219_v49 = vld [vmem:[%s7777_s6 + $0x10] sm:$0xff] }
0x1c66   : > { %6286 = vmatprep.mubr.msk.f32.mxu1 %vm6714_vm5, %v6713_v2  ;;  %6271 = vmatpush3.msra.mxu1 %v5020_v61 }
0x1c67   : > { %6272 = vmatprep.subr.mxu1 %v6713_v2 }
0x1c68   : > { %6273 = vmatpush3.msra.mxu1 %v5019_v18  ;;  %v5386_v18 = vld [vmem:[%s6929_s30 + $0x10] sm:$0xff] }
0x1c69   : > { %6274 = vmatprep.subr.mxu1 %v6713_v2 }
0x1c6a   : > { %6275 = vmatpush3.msra.mxu1 %v5018_v62  ;;  %v5385_v62 = vld [vmem:[%s6929_s30 + $0x8] sm:$0xff] }
0x1c6b   : > { %6276 = vmatprep.subr.mxu1 %v6713_v2 }
0x1c6c   : > { %6277 = vmatpush3.msra.mxu1 %v5017_v63  ;;  %v5384_v63 = vld [vmem:[%s6929_s30] sm:$0xff] }
0x1c6d   : > { %6278 = vmatprep.subr.mxu1 %v6713_v2 }
0x1c6e   : > { %6279 = vmatpush3.msra.mxu1 %v5016_v0  ;;  %v5757_v0 = vld [vmem:[#allocation2] ss:$0 sm:$0xff] }
0x1c6f   : > { %6280 = vmatprep.subr.mxu1 %v6713_v2 }
0x1c70   : > { %6281 = vmatpush3.msra.mxu1 %v5015_v12 }
0x1c71   : > { %6282 = vmatprep.subr.mxu1 %v6713_v2 }
0x1c72   : > { %6283 = vmatpush3.msra.mxu1 %v5014_v59 }
0x1c73   : > { %6284 = vmatprep.subr.mxu1 %v6713_v2 }
0x1c74   : > { %6285 = vmatpush3.msra.mxu1 %v5013_v13 }
0x1c75   : > { %6311 = vmatprep.subr.mxu1 %v6713_v2 }
0x1d25   : > { %v4894_v22 = vpop.f32.mrf.mxu1 }
0x1d26   : > { %v4895_v31 = vadd.f32 %v5743_v50, %v4894_v22  ;;  %v5218_v50 = vld [vmem:[%s7777_s6 + $0x8] sm:$0xff]  ;;  %v5217_v22 = vld [vmem:[%s7777_s6] sm:$0xff]  ;;  %s1342_s6 = scalar_lea.vmem [#allocation7], %s7607_s3  ;;  %s5763_s3 = sshll.u32 %s6967_s0, 7 }
0x1d27   : > { %v6258_v51 = vpop.f32.mrf.mxu1  ;;  %s5492_s11 = scalar_lea.hbm %s6939_s20, %s5763_s3 }
0x1d28   : > { %v4898_v52 = vadd.f32 %v4895_v31, %v7396_v10  ;;  %v4929_v10 = vld [vmem:[%s7768_s23 + $0x8] sm:$0xff]  ;;  %v5302_v31 = vld [vmem:[%s7778_s4 + $0x18] sm:$0xff]  ;;  %v5301_v51 = vld [vmem:[%s7778_s4 + $0x10] sm:$0xff] }
0x1d29   : > { %6264 = vmatpush3.msra.mxu0 %v4929_v10 }
0x1d2a   : > { %v4901_v46 = vsel %vm1470_vm1, %v4898_v52, 0.0  ;;  %6265 = vmatprep.subr.mxu0 %v6713_v2 }
0x1d2b   : > { %4902 = vadd.xlane.f32.xlu1 %v4901_v46  ;;  %6266 = vmatpush3.msra.mxu0 %v4928_v14  ;;  %v5299_v46 = vld [vmem:[%s7778_s4] sm:$0xff] }
0x1d2c   : > { %6289 = vmatprep.subr.mxu0 %v6713_v2 }
0x1db4   : > { %v4903_v53 = vpop.xlane.xlu1 %4902 }
0x1db5   : > { %v4904_v54 = vmul.f32 0.03125, %v4903_v53  ;;  %v5387_v53 = vld [vmem:[%s6929_s30 + $0x18] sm:$0xff] }
0x1db7   : > { %v4905_v55 = vsub.f32 %v4898_v52, %v4904_v54  ;;  %v5300_v52 = vld [vmem:[%s7778_s4 + $0x8] sm:$0xff]  ;;  %v5753_v54 = vld [vmem:[%s7779_s26] ss:$0 sm:$0xff]  ;;  %s5494_s26 = sshll.u32 %s1342_s6, 4  ;;  %s5477_s4 = scalar_lea.sflag [#allocation4], %s1340_s5  ;;  %s5495_s26 = int_to_ptr.vmem [resolvable:$true] %s5494_s26 }
0x1db8   : > { %s6586_s8 = scalar_lea.vmem %s5495_s26, 128  ;;  %p6593_p8 = scmp.lt.s32.totalorder %s5495_s26, %s6591_s10 }
0x1db9   : > { %v4906_v57 = vmul.f32 %v4905_v55, %v4905_v55  ;;  %p6587_p6 = scmp.ne.s32.totalorder %s5495_s26, %s6586_s8  ;;  %p6594_p11 = scmp.lt.s32.totalorder %s6592_s12, %s6586_s8 }
0x1dbb   : > { %v4907_v60 = vsel %vm1470_vm1, %v4906_v57, 0.0  ;;  %p6588_p12 = pnand %p6587_p6, %p7781_p10  ;;  %p6595_p0 = por %p6594_p11, %p6593_p8 }
0x1dbc   : > { %4908 = vadd.xlane.f32.xlu0 %v4907_v60 }
0x1dbd   : > { %p6589_p7 = pneg %p6588_p12 }
0x1dbf   : > { %p6596_p1 = pnand %p6595_p0, %p6589_p7 }
0x1e45   : > { %v4909_v1 = vpop.xlane.xlu0 %4908 }
0x1e46   : > { %v4910_v3 = vmul.f32 0.03125, %v4909_v1 }
0x1e48   : > { %v4911_v4 = vadd.f32 1e-05, %v4910_v3 }
0x1e4a   : > { %6524 = vrsqrt.f32 %v4911_v4 }
0x1e57   : > { %v6525_v5 = vpop.eup %6524 }
0x1e58   : > { %v4913_v7 = vmul.f32 %v6525_v5, %v4905_v55 }
0x1e5a   : > { %v4920_v9 = vmul.f32 %v5745_v6, %v4913_v7 }
0x1e5c   : > { %v4927_v11 = vadd.f32 %v5746_v8, %v4920_v9 }
0x1e5e   : > { %6268 = vmatmul.mubr.msk.f32.vlgmr.msra.gmra.mxu0 %vm1470_vm1, %v4927_v11 }
0x1e5f   : > { %6297 = vmatprep.mubr.msk.f32.mxu0 %vm6714_vm5, %v6713_v2  ;;  %6290 = vmatpush3.msra.mxu0 %v5134_v35 }
0x1e60   : > { %6291 = vmatprep.subr.mxu0 %v6713_v2 }
0x1e61   : > { %6292 = vmatpush3.msra.mxu0 %v5133_v36 }
0x1e62   : > { %6293 = vmatprep.subr.mxu0 %v6713_v2 }
0x1e63   : > { %6294 = vmatpush3.msra.mxu0 %v5132_v38 }
0x1e64   : > { %6295 = vmatprep.subr.mxu0 %v6713_v2 }
0x1e65   : > { %6296 = vmatpush3.msra.mxu0 %v5131_v39 }
0x1e66   : > { %6300 = vmatprep.subr.mxu0 %v6713_v2 }
0x1f1e   : > { %v5008_v56 = vpop.f32.mrf.mxu0 }
0x1f1f   : > { %v5009_v15 = vadd.f32 %v5747_v29, %v5008_v56 }
0x1f20   : > { %v6269_v16 = vpop.f32.mrf.mxu0 }
0x1f21   : > { %v5012_v17 = vmax.f32 %v5009_v15, 0.0 }
0x1f23   : > { %6287 = vmatmul.mubr.msk.f32.vlgmr.msra.gmra.mxu1 %vm2735_vm6, %v5012_v17 }
0x1f24   : > { %6319 = vmatprep.mubr.msk.f32.mxu1 %vm6714_vm5, %v6713_v2  ;;  %6312 = vmatpush3.msra.mxu1 %v5302_v31 }
0x1f25   : > { %6313 = vmatprep.subr.mxu1 %v6713_v2 }
0x1f26   : > { %6314 = vmatpush3.msra.mxu1 %v5301_v51 }
0x1f27   : > { %6315 = vmatprep.subr.mxu1 %v6713_v2 }
0x1f28   : > { %6316 = vmatpush3.msra.mxu1 %v5300_v52 }
0x1f29   : > { %6317 = vmatprep.subr.mxu1 %v6713_v2 }
0x1f2a   : > { %6318 = vmatpush3.msra.mxu1 %v5299_v46 }
0x1fe3   : > { %v5097_v58 = vpop.f32.mrf.mxu1 }
0x1fe4   : > { %v5098_v20 = vadd.f32 %v5749_v19, %v5097_v58 }
0x1fe5   : > { %v6288_v21 = vpop.f32.mrf.mxu1 }
0x1fe6   : > { %v5101_v24 = vadd.f32 %v5098_v20, %v4927_v11 }
0x1fe8   : > { %v5104_v26 = vsel %vm1470_vm1, %v5101_v24, 0.0 }
0x1fe9   : > { %5105 = vadd.xlane.f32.xlu0 %v5104_v26 }
0x2072   : > { %v5106_v27 = vpop.xlane.xlu0 %5105 }
0x2073   : > { %v5107_v28 = vmul.f32 0.03125, %v5106_v27 }
0x2075   : > { %v5108_v30 = vsub.f32 %v5101_v24, %v5107_v28 }
0x2077   : > { %v5109_v33 = vmul.f32 %v5108_v30, %v5108_v30 }
0x2079   : > { %v5110_v34 = vsel %vm1470_vm1, %v5109_v33, 0.0 }
0x207a   : > { %5111 = vadd.xlane.f32.xlu1 %v5110_v34 }
0x2103   : > { %v5112_v40 = vpop.xlane.xlu1 %5111 }
0x2104   : > { %v5113_v37 = vmul.f32 0.03125, %v5112_v40 }
0x2106   : > { %v5114_v41 = vadd.f32 1e-05, %v5113_v37 }
0x2108   : > { %6526 = vrsqrt.f32 %v5114_v41 }
0x2115   : > { %v6527_v42 = vpop.eup %6526 }
0x2116   : > { %v5116_v44 = vmul.f32 %v6527_v42, %v5108_v30 }
0x2118   : > { %v5123_v47 = vmul.f32 %v5751_v43, %v5116_v44 }
0x211a   : > { %v5130_v32 = vadd.f32 %v5752_v45, %v5123_v47 }
0x211c   : > { %6298 = vmatmul.mubr.msk.f32.vlgmr.msra.gmra.mxu0 %vm1470_vm1, %v5130_v32 }
0x211d   : > { %6301 = vmatpush3.msra.mxu0 %v5220_v48  ;;  %6308 = vmatprep.mubr.msk.f32.mxu0 %vm6714_vm5, %v6713_v2 }
0x211e   : > { %6302 = vmatprep.subr.mxu0 %v6713_v2 }
0x211f   : > { %6303 = vmatpush3.msra.mxu0 %v5219_v49 }
0x2120   : > { %6304 = vmatprep.subr.mxu0 %v6713_v2 }
0x2121   : > { %6305 = vmatpush3.msra.mxu0 %v5218_v50 }
0x2122   : > { %6306 = vmatprep.subr.mxu0 %v6713_v2 }
0x2123   : > { %6307 = vmatpush3.msra.mxu0 %v5217_v22 }
0x2124   : > { %6309 = vmatmul.mubr.msk.f32.vlgmr.msra.gmra.mxu0 %vm1470_vm1, %v5130_v32  ;;  %6322 = vmatprep.subr.mxu0 %v6713_v2 }
0x2125   : > { %6330 = vmatprep.mubr.msk.f32.mxu0 %vm6714_vm5, %v6713_v2  ;;  %6323 = vmatpush3.msra.mxu0 %v5387_v53 }
0x2126   : > { %6324 = vmatprep.subr.mxu0 %v6713_v2 }
0x2127   : > { %6325 = vmatpush3.msra.mxu0 %v5386_v18 }
0x2128   : > { %6326 = vmatprep.subr.mxu0 %v6713_v2 }
0x2129   : > { %6327 = vmatpush3.msra.mxu0 %v5385_v62 }
0x212a   : > { %6328 = vmatprep.subr.mxu0 %v6713_v2 }
0x212b   : > { %6329 = vmatpush3.msra.mxu0 %v5384_v63 }
0x21dc   : > { %v5211_v55 = vpop.f32.mrf.mxu0 }
0x21dd   : > { %v5212_v57 = vadd.f32 %v5753_v54, %v5211_v55 }
0x21de   : > { %v6299_v60 = vpop.f32.mrf.mxu0 }
0x21df   : > { %5216 = vst.msk [vmem:[%s1342_s6] sm:$0xff] %vm5215_vm7, %v5212_v57 }
0x21e4   : > { %v5294_v23 = vpop.f32.mrf.mxu0 }
0x21e5   : > { %v5295_v10 = vadd.f32 %v5755_v25, %v5294_v23 }
0x21e6   : > { %v6310_v14 = vpop.f32.mrf.mxu0 }
0x21e7   : > { %v5298_v61 = vmax.f32 %v5295_v10, 0.0 }
0x21e9   : > { %6320 = vmatmul.mubr.msk.f32.vlgmr.msra.gmra.mxu1 %vm1470_vm1, %v5298_v61 }
0x22a9   : > { %v5379_v1 = vpop.f32.mrf.mxu1 }
0x22aa   : > { %v5380_v3 = vadd.f32 %v5757_v0, %v5379_v1 }
0x22ab   : > { %v6321_v4 = vpop.f32.mrf.mxu1 }
0x22ac   : > { %v5383_v5 = vmax.f32 %v5380_v3, 0.0 }
0x22ae   : > { %6331 = vmatmul.mubr.msk.f32.vlgmr.msra.gmra.mxu0 %vm1470_vm1, %v5383_v5 }
0x22af   : > { %6599 = shalt.err (!%p6596_p1)
}
0x22b0   : > { %s6600_s0 = scalar_lea.hbm %s5492_s11, 128  ;;  %s6604_s6 = scalar_lea.hbm %s6939_s20, 256 }
0x22b1   : > { %p6601_p2 = scmp.ne.s32.totalorder %s5492_s11, %s6600_s0  ;;  %p6605_p9 = scmp.lt.s32.totalorder %s5492_s11, %s6939_s20 }
0x22b2   : > { %p6606_p13 = scmp.lt.s32.totalorder %s6604_s6, %s6600_s0 }
0x22b3   : > { %p6602_p3 = pnand %p6601_p2, %p7781_p10 }
0x22b4   : > { %p6607_p5 = por %p6606_p13, %p6605_p9 }
0x22b5   : > { %p6603_p4 = pneg %p6602_p3 }
0x22b7   : > { %p6608_p6 = pnand %p6607_p5, %p6603_p4 }
0x22b9   : > { %6611 = shalt.err (!%p6608_p6)
}
0x22ba   : > { %6341 = dma.vmem_to_hbm [thread:$0]  (%p7781_p10), %s5495_s26, 128, %s5492_s11, %s5477_s4   ;;  %v5759_v2 = vld [vmem:[#allocation5] ss:$0 sm:$0xff]  ;;  %vm5474_vm8 = vcmask 31744  }
0x22bb   : > { %s5657_s9 = sshll.u32 %s7033_s2, 3 }
0x22bc   : > { %s1357_s8 = scalar_lea.vmem %s6944_s21, %s5657_s9 }
0x236e   : > { %v5464_v6 = vpop.f32.mrf.mxu0 }
0x236f   : > { %v5465_v7 = vadd.f32 %v5759_v2, %v5464_v6 }
0x2370   : > { %v6332_v8 = vpop.f32.mrf.mxu0 }
0x2371   : > { %v5761_v9 = vmul.f32 -1.442695, %v5465_v7 }
0x2373   : > { %6528 = vpow2.f32 %v5761_v9 }
0x2380   : > { %v6529_v11 = vpop.eup %6528 }
0x2381   : > { %v5471_v12 = vadd.f32 1.0, %v6529_v11 }
0x2383   : > { %6530 = vrcp.f32 %v5471_v12 }
0x2390   : > { %v6531_v59 = vpop.eup %6530 }
0x2391   : > { %5475 = vst.msk [vmem:[%s1357_s8] sm:$0xff] %vm5474_vm8, %v6531_v59 }
0x2392 PF: > { %s7782_s12 = sld [smem:[#allocation48_spill]]  ;;  %p6358_p12 = scmp.ge.s32.totalorder %s6654_s7, 2 }
0x2393   : > { %s5509_s22 = sand.u32 1, %s6642_s28  }
0x2394   : > { %s5510_s10 = scalar_lea.sflag [#allocation4], %s5509_s22 }
0x2398   : > { %p7783_p10 = scmp.ne.s32.totalorder %s7782_s12, 0 }
0x239a   : > { %p6351_p7 = pnand %p6358_p12, %p7783_p10 }
0x239c   : > { %p6352_p8 = pneg %p6351_p7 }
0x239e   : > { %6637 = dma.done.wait (%p6352_p8), %s5510_s10, 128  }
0x239f   : > { %6639 = vsyncadd (%p6352_p8), %s5510_s10, 4294967168  ;;  %s7784_s7 = sld [smem:[#allocation46_spill]]  ;;  %s7787_s28 = smov %s6646_s1 }
0x23a0   : > { %s7785_s4 = sld [smem:[#allocation45_spill]] }
0x23a1   : > { %s7786_s2 = sld [smem:[#allocation47_spill]] }
0x23a5   : > { %p102_p11 = scmp.ge.s32.totalorder %s7784_s7, 4  }
0x23a6   : > { %s7788_s1 = smov %s7785_s4 }
0x23a7   :  { %104 = sbr.rel (!%p102_p11) target bundleno = 93 (0x5d), region = 292 }
0x23ac   :  { %5522 = vsyncpa [#allocation3], 1 }
0x23ad   :  { %5524 = vsyncpa [#allocation3 + $0x1], 1 }
0x23ae   :  { %5525 = vsyncpa [#allocation6], 1 }
0x23af   :  { %5526 = vsyncpa [#allocation4], 1 }
0x23b0   :  { %5528 = vsyncpa [#allocation4 + $0x1], 1 }

</bundles_post_ra>
